<compile_context>
chip_gen: v7x
topology: tpu7x:2x2x1
jax: 0.10.0
libtpu: 0.0.40
codegen_flags: <defaults>
</compile_context>

<pallas_src>
import math

import jax
import jax.numpy as jnp
from jax import lax
from jax.experimental import pallas as pl
from jax.experimental.pallas import tpu as pltpu


# ---------------------------------------------------------------------------
# In-kernel building blocks.  Activation layout: per image, [H, W*C] with the
# (w, c) pair flattened row-major onto the lane axis (channels-last).
# ---------------------------------------------------------------------------
def _conv_block(act, w_ref, b_ref, *, relu):
    """Valid stride-1 conv as a sum over row-taps of 2-D MXU matmuls.

    act:   [H_in, W_in*C_in]                   value
    w_ref: [kH, W_in*C_in, W_out*C_out]        banded weights (see _conv_band)
    b_ref: [1, W_out*C_out]                    tiled bias row
    """
    kh = w_ref.shape[0]
    oh = act.shape[0] - kh + 1
    acc = jnp.dot(act[0:oh, :], w_ref[0], preferred_element_type=jnp.float32)
    for i in range(1, kh):
        acc = acc + jnp.dot(act[i:i + oh, :], w_ref[i],
                            preferred_element_type=jnp.float32)
    acc = acc + b_ref[...]
    if relu:
        acc = jnp.maximum(acc, 0.0)
    return acc


def _pool_block(act, rsel_ref, csel_ref):
    """2x2 / stride-2 max pool (floor mode) in [H, W*C] layout.

    Shifted elementwise maxima give the 2x2-window max at every anchor; exact 0/1
    selection matmuls then compact rows / lane-blocks by a factor of 2.
    """
    h, wc = act.shape
    c = wc - csel_ref.shape[0]                          # channel count
    m1 = jnp.maximum(act[:, :wc - c], act[:, c:])       # max over the 2 columns
    m2 = jnp.maximum(m1[:h - 1, :], m1[1:, :])          # max over the 2 rows
    t = jnp.dot(rsel_ref[...], m2, preferred_element_type=jnp.float32)
    return jnp.dot(t, csel_ref[...], preferred_element_type=jnp.float32)


def _fused_cnn_kernel(x_ref, w1_ref, b1_ref, r1_ref, c1_ref,
                      w2_ref, b2_ref, r2_ref, c2_ref,
                      w3_ref, b3_ref, w4_ref, b4_ref, o_ref):
    """Entire ProductionCNN forward; all operands VMEM-resident, single grid step."""
    for n in range(x_ref.shape[0]):                     # tiny batch, static unroll
        a = x_ref[n]                                    # [28, 28]   (C = 1)
        a = _conv_block(a, w1_ref, b1_ref, relu=True)   # [26, 26*8]
        a = _pool_block(a, r1_ref, c1_ref)              # [13, 13*8]
        a = _conv_block(a, w2_ref, b2_ref, relu=True)   # [11, 11*16]
        a = _pool_block(a, r2_ref, c2_ref)              # [5, 5*16]
        a = _conv_block(a, w3_ref, b3_ref, relu=True)   # [1, 1*80]
        a = _conv_block(a, w4_ref, b4_ref, relu=False)  # [1, 1*10]
        o_ref[n] = a


# ---------------------------------------------------------------------------
# One-time weight packing (host/XLA side, done once like ProductionCNN.__init__).
# ---------------------------------------------------------------------------
def _layer_sizes(h, w):
    h1, w1 = h - 2, w - 2                    # conv1 (3x3 valid)
    hp1, wp1 = h1 // 2, w1 // 2              # pool 2x2 (floor)
    h2, w2 = hp1 - 2, wp1 - 2                # conv2 (3x3 valid)
    hp2, wp2 = h2 // 2, w2 // 2              # pool 2x2 (floor)
    h3, w3 = hp2 - 4, wp2 - 4                # last_conv1 (5x5 valid); last_conv2 is 1x1
    return (h1, w1), (hp1, wp1), (h2, w2), (hp2, wp2), (h3, w3)


def _conv_band(w, w_in, w_out):
    """Banded per-row-tap weight matrices for the [H, W*C] conv formulation.

    w: [OC, IC, kH, kW] (PyTorch layout).  Returns [kH, w_in*IC, w_out*OC] with
    taps[i][win*IC + ic, wout*OC + oc] = w[oc, ic, i, win - wout] (0 elsewhere).
    """
    oc, ic, kh, kw_n = w.shape
    w = w.astype(jnp.float32)
    taps = []
    for i in range(kh):
        m = jnp.zeros((w_in * ic, w_out * oc), jnp.float32)
        for kw in range(kw_n):
            sel = jnp.eye(w_in, w_out, k=-kw, dtype=jnp.float32)  # sel[wo+kw, wo] = 1
            m = m + jnp.kron(sel, w[:, :, i, kw].T)
        taps.append(m)
    return jnp.stack(taps)


def _pool_mats(h, w, c):
    """Exact 0/1 selection matrices used by the fused 2x2 max pool."""
    oh, ow = h // 2, w // 2
    rsel = jnp.zeros((oh, h - 1), jnp.float32)
    rsel = rsel.at[jnp.arange(oh), 2 * jnp.arange(oh)].set(1.0)       # picks rows 2*oh
    blocks = jnp.zeros((w - 1, ow), jnp.float32)
    blocks = blocks.at[2 * jnp.arange(ow), jnp.arange(ow)].set(1.0)   # picks cols 2*ow
    csel = jnp.kron(blocks, jnp.eye(c, dtype=jnp.float32))
    return rsel, csel


def pack_params(params, image_hw=(28, 28)):
    h, w = image_hw
    (h1, w1), (hp1, wp1), (h2, w2), (hp2, wp2), (h3, w3) = _layer_sizes(h, w)
    r1, c1 = _pool_mats(h1, w1, 8)
    r2, c2 = _pool_mats(h2, w2, 16)
    return dict(
        w1=_conv_band(params["conv1_w"], w, w1),
        b1=jnp.tile(params["conv1_b"].astype(jnp.float32), w1)[None, :],
        r1=r1, c1=c1,
        w2=_conv_band(params["conv2_w"], wp1, w2),
        b2=jnp.tile(params["conv2_b"].astype(jnp.float32), w2)[None, :],
        r2=r2, c2=c2,
        w3=_conv_band(params["last_conv1_w"], wp2, w3),
        b3=jnp.tile(params["last_conv1_b"].astype(jnp.float32), w3)[None, :],
        w4=_conv_band(params["last_conv2_w"], w3, w3),
        b4=jnp.tile(params["last_conv2_b"].astype(jnp.float32), w3)[None, :],
    )


# ---------------------------------------------------------------------------
# Forward pass (ProductionCNN.forward): one pallas_call for the whole network.
# ---------------------------------------------------------------------------
def production_cnn_forward(packed, x):
    n, c, h, w = x.shape
    assert c == 1, "ProductionCNN expects grayscale input"
    h3, w3 = _layer_sizes(h, w)[-1]
    out = pl.pallas_call(
        _fused_cnn_kernel,
        out_shape=jax.ShapeDtypeStruct((n, h3, w3 * 10), jnp.float32),
        in_specs=[pl.BlockSpec(memory_space=pltpu.MemorySpace.VMEM)] * 13,
        out_specs=pl.BlockSpec(memory_space=pltpu.MemorySpace.VMEM),
    )(x.reshape(n, h, w).astype(jnp.float32),
      packed["w1"], packed["b1"], packed["r1"], packed["c1"],
      packed["w2"], packed["b2"], packed["r2"], packed["c2"],
      packed["w3"], packed["b3"], packed["w4"], packed["b4"])
    # Channels-last packed [N, H3, W3*10] -> NCHW only at the model boundary.
    return out.reshape(n, h3, w3, 10).transpose(0, 3, 1, 2)


# ---------------------------------------------------------------------------
# Parameters (deterministic synthetic init matching the module's shapes)
# ---------------------------------------------------------------------------
def _uniform(key, shape, bound):
    return jax.random.uniform(key, shape, jnp.float32, -bound, bound)


def init_params(key):
    ks = jax.random.split(key, 8)

    def conv_init(kw_key, kb_key, oc, ic, k):
        bound = 1.0 / math.sqrt(ic * k * k)
        return _uniform(kw_key, (oc, ic, k, k), bound), _uniform(kb_key, (oc,), bound)

    conv1_w, conv1_b = conv_init(ks[0], ks[1], 8, 1, 3)
    conv2_w, conv2_b = conv_init(ks[2], ks[3], 16, 8, 3)

    fc1_bound = 1.0 / math.sqrt(5 * 5 * 16)
    fc1_w = _uniform(ks[4], (80, 5 * 5 * 16), fc1_bound)
    fc1_b = _uniform(ks[5], (80,), fc1_bound)
    fc2_bound = 1.0 / math.sqrt(80)
    fc2_w = _uniform(ks[6], (10, 80), fc2_bound)
    fc2_b = _uniform(ks[7], (10,), fc2_bound)

    # ProductionCNN.__init__: last_conv weights are the fc weights reshaped.
    return dict(
        conv1_w=conv1_w, conv1_b=conv1_b,
        conv2_w=conv2_w, conv2_b=conv2_b,
        last_conv1_w=fc1_w.reshape(80, 16, 5, 5), last_conv1_b=fc1_b,
        last_conv2_w=fc2_w.reshape(10, 80, 1, 1), last_conv2_b=fc2_b,
    )


# ---------------------------------------------------------------------------
# Pure-JAX reference (for correctness check only)
# ---------------------------------------------------------------------------
def _ref_conv(x, w, b):
    out = lax.conv_general_dilated(
        x, w, (1, 1), "VALID",
        dimension_numbers=("NCHW", "OIHW", "NCHW"),
        precision=lax.Precision.HIGHEST)
    return out + b.reshape(1, -1, 1, 1)


def _ref_pool(x):
    return lax.reduce_window(x, -jnp.inf, lax.max, (1, 1, 2, 2), (1, 1, 2, 2), "VALID")


def reference_forward(params, x):
    x = _ref_pool(jnp.maximum(_ref_conv(x, params["conv1_w"], params["conv1_b"]), 0.0))
    x = _ref_pool(jnp.maximum(_ref_conv(x, params["conv2_w"], params["conv2_b"]), 0.0))
    x = jnp.maximum(_ref_conv(x, params["last_conv1_w"], params["last_conv1_b"]), 0.0)
    x = _ref_conv(x, params["last_conv2_w"], params["last_conv2_b"])
    return x


if __name__ == "__main__":
    key = jax.random.PRNGKey(0)
    pkey, xkey = jax.random.split(key)
    params = init_params(pkey)
    packed = pack_params(params, image_hw=(28, 28))   # one-time weight packing

    # 28x28 grayscale images, batch 2 (the geometry the original CNN was built for).
    x = jax.random.normal(xkey, (2, 1, 28, 28), jnp.float32)

    fwd = jax.jit(production_cnn_forward)
    out = jax.block_until_ready(fwd(packed, x))
    assert out.shape == (2, 10, 1, 1), out.shape

    ref = jax.block_until_ready(reference_forward(params, x))
    max_err = float(jnp.max(jnp.abs(out - ref)))
    assert jnp.allclose(out, ref, atol=2e-3, rtol=2e-3), max_err

    print("KERNEL_OK")
</pallas_src>

<mosaic_0001>
module attributes {stable_mosaic.version = 11 : i64} {
  func.func @_fused_cnn_kernel(%arg0: memref<2x28x28xf32, #tpu.memory_space<vmem>>, %arg1: memref<3x28x208xf32, #tpu.memory_space<vmem>>, %arg2: memref<1x208xf32, #tpu.memory_space<vmem>>, %arg3: memref<13x25xf32, #tpu.memory_space<vmem>>, %arg4: memref<200x104xf32, #tpu.memory_space<vmem>>, %arg5: memref<3x104x176xf32, #tpu.memory_space<vmem>>, %arg6: memref<1x176xf32, #tpu.memory_space<vmem>>, %arg7: memref<5x10xf32, #tpu.memory_space<vmem>>, %arg8: memref<160x80xf32, #tpu.memory_space<vmem>>, %arg9: memref<5x80x80xf32, #tpu.memory_space<vmem>>, %arg10: memref<1x80xf32, #tpu.memory_space<vmem>>, %arg11: memref<1x80x10xf32, #tpu.memory_space<vmem>>, %arg12: memref<1x10xf32, #tpu.memory_space<vmem>>, %arg13: memref<2x1x10xf32, #tpu.memory_space<vmem>>) attributes {dimension_semantics = [], scalar_prefetch = 0 : i64, scratch_operands = 0 : i64, tpu.core_type = #tpu.core_type<tc>} {
    %c0 = arith.constant 0 : index
    %c0_0 = arith.constant 0 : index
    %c0_1 = arith.constant 0 : index
    %0 = vector.load %arg0[%c0, %c0_0, %c0_1] : memref<2x28x28xf32, #tpu.memory_space<vmem>>, vector<1x28x28xf32>
    %1 = vector.shape_cast %0 : vector<1x28x28xf32> to vector<28x28xf32>
    %2 = vector.extract_strided_slice %1 {offsets = [0, 0], sizes = [26, 28], strides = [1, 1]} : vector<28x28xf32> to vector<26x28xf32>
    %c0_2 = arith.constant 0 : index
    %c0_3 = arith.constant 0 : index
    %c0_4 = arith.constant 0 : index
    %3 = vector.load %arg1[%c0_2, %c0_3, %c0_4] : memref<3x28x208xf32, #tpu.memory_space<vmem>>, vector<1x28x208xf32>
    %4 = vector.shape_cast %3 : vector<1x28x208xf32> to vector<28x208xf32>
    %cst = arith.constant dense<0.000000e+00> : vector<26x208xf32>
    %5 = tpu.matmul %2, %4, %cst {dimension_numbers = #tpu.dot_dimension_numbers<[1], [0], [0], [1], [0, 0, 1, 1], [], []>} : vector<26x28xf32>, vector<28x208xf32>, vector<26x208xf32> -> vector<26x208xf32>
    %6 = vector.extract_strided_slice %1 {offsets = [1, 0], sizes = [26, 28], strides = [1, 1]} : vector<28x28xf32> to vector<26x28xf32>
    %c1 = arith.constant 1 : index
    %c0_5 = arith.constant 0 : index
    %c0_6 = arith.constant 0 : index
    %7 = vector.load %arg1[%c1, %c0_5, %c0_6] : memref<3x28x208xf32, #tpu.memory_space<vmem>>, vector<1x28x208xf32>
    %8 = vector.shape_cast %7 : vector<1x28x208xf32> to vector<28x208xf32>
    %cst_7 = arith.constant dense<0.000000e+00> : vector<26x208xf32>
    %9 = tpu.matmul %6, %8, %cst_7 {dimension_numbers = #tpu.dot_dimension_numbers<[1], [0], [0], [1], [0, 0, 1, 1], [], []>} : vector<26x28xf32>, vector<28x208xf32>, vector<26x208xf32> -> vector<26x208xf32>
    %10 = arith.addf %5, %9 : vector<26x208xf32>
    %11 = vector.extract_strided_slice %1 {offsets = [2, 0], sizes = [26, 28], strides = [1, 1]} : vector<28x28xf32> to vector<26x28xf32>
    %c2 = arith.constant 2 : index
    %c0_8 = arith.constant 0 : index
    %c0_9 = arith.constant 0 : index
    %12 = vector.load %arg1[%c2, %c0_8, %c0_9] : memref<3x28x208xf32, #tpu.memory_space<vmem>>, vector<1x28x208xf32>
    %13 = vector.shape_cast %12 : vector<1x28x208xf32> to vector<28x208xf32>
    %cst_10 = arith.constant dense<0.000000e+00> : vector<26x208xf32>
    %14 = tpu.matmul %11, %13, %cst_10 {dimension_numbers = #tpu.dot_dimension_numbers<[1], [0], [0], [1], [0, 0, 1, 1], [], []>} : vector<26x28xf32>, vector<28x208xf32>, vector<26x208xf32> -> vector<26x208xf32>
    %15 = arith.addf %10, %14 : vector<26x208xf32>
    %c0_11 = arith.constant 0 : index
    %c0_12 = arith.constant 0 : index
    %16 = vector.load %arg2[%c0_11, %c0_12] : memref<1x208xf32, #tpu.memory_space<vmem>>, vector<1x208xf32>
    %17 = vector.broadcast %16 : vector<1x208xf32> to vector<26x208xf32>
    %18 = arith.addf %15, %17 : vector<26x208xf32>
    %cst_13 = arith.constant 0.000000e+00 : f32
    %19 = vector.broadcast %cst_13 : f32 to vector<26x208xf32>
    %20 = arith.maximumf %18, %19 : vector<26x208xf32>
    %21 = vector.extract_strided_slice %20 {offsets = [0, 0], sizes = [26, 200], strides = [1, 1]} : vector<26x208xf32> to vector<26x200xf32>
    %22 = vector.extract_strided_slice %20 {offsets = [0, 8], sizes = [26, 200], strides = [1, 1]} : vector<26x208xf32> to vector<26x200xf32>
    %23 = arith.maximumf %21, %22 : vector<26x200xf32>
    %24 = vector.extract_strided_slice %23 {offsets = [0, 0], sizes = [25, 200], strides = [1, 1]} : vector<26x200xf32> to vector<25x200xf32>
    %25 = vector.extract_strided_slice %23 {offsets = [1, 0], sizes = [25, 200], strides = [1, 1]} : vector<26x200xf32> to vector<25x200xf32>
    %26 = arith.maximumf %24, %25 : vector<25x200xf32>
    %c0_14 = arith.constant 0 : index
    %c0_15 = arith.constant 0 : index
    %27 = vector.load %arg3[%c0_14, %c0_15] : memref<13x25xf32, #tpu.memory_space<vmem>>, vector<13x25xf32>
    %cst_16 = arith.constant dense<0.000000e+00> : vector<13x200xf32>
    %28 = tpu.matmul %27, %26, %cst_16 {dimension_numbers = #tpu.dot_dimension_numbers<[1], [0], [0], [1], [0, 0, 1, 1], [], []>} : vector<13x25xf32>, vector<25x200xf32>, vector<13x200xf32> -> vector<13x200xf32>
    %c0_17 = arith.constant 0 : index
    %c0_18 = arith.constant 0 : index
    %29 = vector.load %arg4[%c0_17, %c0_18] : memref<200x104xf32, #tpu.memory_space<vmem>>, vector<200x104xf32>
    %cst_19 = arith.constant dense<0.000000e+00> : vector<13x104xf32>
    %30 = tpu.matmul %28, %29, %cst_19 {dimension_numbers = #tpu.dot_dimension_numbers<[1], [0], [0], [1], [0, 0, 1, 1], [], []>} : vector<13x200xf32>, vector<200x104xf32>, vector<13x104xf32> -> vector<13x104xf32>
    %31 = vector.extract_strided_slice %30 {offsets = [0, 0], sizes = [11, 104], strides = [1, 1]} : vector<13x104xf32> to vector<11x104xf32>
    %c0_20 = arith.constant 0 : index
    %c0_21 = arith.constant 0 : index
    %c0_22 = arith.constant 0 : index
    %32 = vector.load %arg5[%c0_20, %c0_21, %c0_22] : memref<3x104x176xf32, #tpu.memory_space<vmem>>, vector<1x104x176xf32>
    %33 = vector.shape_cast %32 : vector<1x104x176xf32> to vector<104x176xf32>
    %cst_23 = arith.constant dense<0.000000e+00> : vector<11x176xf32>
    %34 = tpu.matmul %31, %33, %cst_23 {dimension_numbers = #tpu.dot_dimension_numbers<[1], [0], [0], [1], [0, 0, 1, 1], [], []>} : vector<11x104xf32>, vector<104x176xf32>, vector<11x176xf32> -> vector<11x176xf32>
    %35 = vector.extract_strided_slice %30 {offsets = [1, 0], sizes = [11, 104], strides = [1, 1]} : vector<13x104xf32> to vector<11x104xf32>
    %c1_24 = arith.constant 1 : index
    %c0_25 = arith.constant 0 : index
    %c0_26 = arith.constant 0 : index
    %36 = vector.load %arg5[%c1_24, %c0_25, %c0_26] : memref<3x104x176xf32, #tpu.memory_space<vmem>>, vector<1x104x176xf32>
    %37 = vector.shape_cast %36 : vector<1x104x176xf32> to vector<104x176xf32>
    %cst_27 = arith.constant dense<0.000000e+00> : vector<11x176xf32>
    %38 = tpu.matmul %35, %37, %cst_27 {dimension_numbers = #tpu.dot_dimension_numbers<[1], [0], [0], [1], [0, 0, 1, 1], [], []>} : vector<11x104xf32>, vector<104x176xf32>, vector<11x176xf32> -> vector<11x176xf32>
    %39 = arith.addf %34, %38 : vector<11x176xf32>
    %40 = vector.extract_strided_slice %30 {offsets = [2, 0], sizes = [11, 104], strides = [1, 1]} : vector<13x104xf32> to vector<11x104xf32>
    %c2_28 = arith.constant 2 : index
    %c0_29 = arith.constant 0 : index
    %c0_30 = arith.constant 0 : index
    %41 = vector.load %arg5[%c2_28, %c0_29, %c0_30] : memref<3x104x176xf32, #tpu.memory_space<vmem>>, vector<1x104x176xf32>
    %42 = vector.shape_cast %41 : vector<1x104x176xf32> to vector<104x176xf32>
    %cst_31 = arith.constant dense<0.000000e+00> : vector<11x176xf32>
    %43 = tpu.matmul %40, %42, %cst_31 {dimension_numbers = #tpu.dot_dimension_numbers<[1], [0], [0], [1], [0, 0, 1, 1], [], []>} : vector<11x104xf32>, vector<104x176xf32>, vector<11x176xf32> -> vector<11x176xf32>
    %44 = arith.addf %39, %43 : vector<11x176xf32>
    %c0_32 = arith.constant 0 : index
    %c0_33 = arith.constant 0 : index
    %45 = vector.load %arg6[%c0_32, %c0_33] : memref<1x176xf32, #tpu.memory_space<vmem>>, vector<1x176xf32>
    %46 = vector.broadcast %45 : vector<1x176xf32> to vector<11x176xf32>
    %47 = arith.addf %44, %46 : vector<11x176xf32>
    %cst_34 = arith.constant 0.000000e+00 : f32
    %48 = vector.broadcast %cst_34 : f32 to vector<11x176xf32>
    %49 = arith.maximumf %47, %48 : vector<11x176xf32>
    %50 = vector.extract_strided_slice %49 {offsets = [0, 0], sizes = [11, 160], strides = [1, 1]} : vector<11x176xf32> to vector<11x160xf32>
    %51 = vector.extract_strided_slice %49 {offsets = [0, 16], sizes = [11, 160], strides = [1, 1]} : vector<11x176xf32> to vector<11x160xf32>
    %52 = arith.maximumf %50, %51 : vector<11x160xf32>
    %53 = vector.extract_strided_slice %52 {offsets = [0, 0], sizes = [10, 160], strides = [1, 1]} : vector<11x160xf32> to vector<10x160xf32>
    %54 = vector.extract_strided_slice %52 {offsets = [1, 0], sizes = [10, 160], strides = [1, 1]} : vector<11x160xf32> to vector<10x160xf32>
    %55 = arith.maximumf %53, %54 : vector<10x160xf32>
    %c0_35 = arith.constant 0 : index
    %c0_36 = arith.constant 0 : index
    %56 = vector.load %arg7[%c0_35, %c0_36] : memref<5x10xf32, #tpu.memory_space<vmem>>, vector<5x10xf32>
    %cst_37 = arith.constant dense<0.000000e+00> : vector<5x160xf32>
    %57 = tpu.matmul %56, %55, %cst_37 {dimension_numbers = #tpu.dot_dimension_numbers<[1], [0], [0], [1], [0, 0, 1, 1], [], []>} : vector<5x10xf32>, vector<10x160xf32>, vector<5x160xf32> -> vector<5x160xf32>
    %c0_38 = arith.constant 0 : index
    %c0_39 = arith.constant 0 : index
    %58 = vector.load %arg8[%c0_38, %c0_39] : memref<160x80xf32, #tpu.memory_space<vmem>>, vector<160x80xf32>
    %cst_40 = arith.constant dense<0.000000e+00> : vector<5x80xf32>
    %59 = tpu.matmul %57, %58, %cst_40 {dimension_numbers = #tpu.dot_dimension_numbers<[1], [0], [0], [1], [0, 0, 1, 1], [], []>} : vector<5x160xf32>, vector<160x80xf32>, vector<5x80xf32> -> vector<5x80xf32>
    %60 = vector.extract_strided_slice %59 {offsets = [0, 0], sizes = [1, 80], strides = [1, 1]} : vector<5x80xf32> to vector<1x80xf32>
    %c0_41 = arith.constant 0 : index
    %c0_42 = arith.constant 0 : index
    %c0_43 = arith.constant 0 : index
    %61 = vector.load %arg9[%c0_41, %c0_42, %c0_43] : memref<5x80x80xf32, #tpu.memory_space<vmem>>, vector<1x80x80xf32>
    %62 = vector.shape_cast %61 : vector<1x80x80xf32> to vector<80x80xf32>
    %cst_44 = arith.constant dense<0.000000e+00> : vector<1x80xf32>
    %63 = tpu.matmul %60, %62, %cst_44 {dimension_numbers = #tpu.dot_dimension_numbers<[1], [0], [0], [1], [0, 0, 1, 1], [], []>} : vector<1x80xf32>, vector<80x80xf32>, vector<1x80xf32> -> vector<1x80xf32>
    %64 = vector.extract_strided_slice %59 {offsets = [1, 0], sizes = [1, 80], strides = [1, 1]} : vector<5x80xf32> to vector<1x80xf32>
    %c1_45 = arith.constant 1 : index
    %c0_46 = arith.constant 0 : index
    %c0_47 = arith.constant 0 : index
    %65 = vector.load %arg9[%c1_45, %c0_46, %c0_47] : memref<5x80x80xf32, #tpu.memory_space<vmem>>, vector<1x80x80xf32>
    %66 = vector.shape_cast %65 : vector<1x80x80xf32> to vector<80x80xf32>
    %cst_48 = arith.constant dense<0.000000e+00> : vector<1x80xf32>
    %67 = tpu.matmul %64, %66, %cst_48 {dimension_numbers = #tpu.dot_dimension_numbers<[1], [0], [0], [1], [0, 0, 1, 1], [], []>} : vector<1x80xf32>, vector<80x80xf32>, vector<1x80xf32> -> vector<1x80xf32>
    %68 = arith.addf %63, %67 : vector<1x80xf32>
    %69 = vector.extract_strided_slice %59 {offsets = [2, 0], sizes = [1, 80], strides = [1, 1]} : vector<5x80xf32> to vector<1x80xf32>
    %c2_49 = arith.constant 2 : index
    %c0_50 = arith.constant 0 : index
    %c0_51 = arith.constant 0 : index
    %70 = vector.load %arg9[%c2_49, %c0_50, %c0_51] : memref<5x80x80xf32, #tpu.memory_space<vmem>>, vector<1x80x80xf32>
    %71 = vector.shape_cast %70 : vector<1x80x80xf32> to vector<80x80xf32>
    %cst_52 = arith.constant dense<0.000000e+00> : vector<1x80xf32>
    %72 = tpu.matmul %69, %71, %cst_52 {dimension_numbers = #tpu.dot_dimension_numbers<[1], [0], [0], [1], [0, 0, 1, 1], [], []>} : vector<1x80xf32>, vector<80x80xf32>, vector<1x80xf32> -> vector<1x80xf32>
    %73 = arith.addf %68, %72 : vector<1x80xf32>
    %74 = vector.extract_strided_slice %59 {offsets = [3, 0], sizes = [1, 80], strides = [1, 1]} : vector<5x80xf32> to vector<1x80xf32>
    %c3 = arith.constant 3 : index
    %c0_53 = arith.constant 0 : index
    %c0_54 = arith.constant 0 : index
    %75 = vector.load %arg9[%c3, %c0_53, %c0_54] : memref<5x80x80xf32, #tpu.memory_space<vmem>>, vector<1x80x80xf32>
    %76 = vector.shape_cast %75 : vector<1x80x80xf32> to vector<80x80xf32>
    %cst_55 = arith.constant dense<0.000000e+00> : vector<1x80xf32>
    %77 = tpu.matmul %74, %76, %cst_55 {dimension_numbers = #tpu.dot_dimension_numbers<[1], [0], [0], [1], [0, 0, 1, 1], [], []>} : vector<1x80xf32>, vector<80x80xf32>, vector<1x80xf32> -> vector<1x80xf32>
    %78 = arith.addf %73, %77 : vector<1x80xf32>
    %79 = vector.extract_strided_slice %59 {offsets = [4, 0], sizes = [1, 80], strides = [1, 1]} : vector<5x80xf32> to vector<1x80xf32>
    %c4 = arith.constant 4 : index
    %c0_56 = arith.constant 0 : index
    %c0_57 = arith.constant 0 : index
    %80 = vector.load %arg9[%c4, %c0_56, %c0_57] : memref<5x80x80xf32, #tpu.memory_space<vmem>>, vector<1x80x80xf32>
    %81 = vector.shape_cast %80 : vector<1x80x80xf32> to vector<80x80xf32>
    %cst_58 = arith.constant dense<0.000000e+00> : vector<1x80xf32>
    %82 = tpu.matmul %79, %81, %cst_58 {dimension_numbers = #tpu.dot_dimension_numbers<[1], [0], [0], [1], [0, 0, 1, 1], [], []>} : vector<1x80xf32>, vector<80x80xf32>, vector<1x80xf32> -> vector<1x80xf32>
    %83 = arith.addf %78, %82 : vector<1x80xf32>
    %c0_59 = arith.constant 0 : index
    %c0_60 = arith.constant 0 : index
    %84 = vector.load %arg10[%c0_59, %c0_60] : memref<1x80xf32, #tpu.memory_space<vmem>>, vector<1x80xf32>
    %85 = arith.addf %83, %84 : vector<1x80xf32>
    %cst_61 = arith.constant 0.000000e+00 : f32
    %86 = vector.broadcast %cst_61 : f32 to vector<1x80xf32>
    %87 = arith.maximumf %85, %86 : vector<1x80xf32>
    %c0_62 = arith.constant 0 : index
    %c0_63 = arith.constant 0 : index
    %c0_64 = arith.constant 0 : index
    %88 = vector.load %arg11[%c0_62, %c0_63, %c0_64] : memref<1x80x10xf32, #tpu.memory_space<vmem>>, vector<1x80x10xf32>
    %89 = vector.shape_cast %88 : vector<1x80x10xf32> to vector<80x10xf32>
    %cst_65 = arith.constant dense<0.000000e+00> : vector<1x10xf32>
    %90 = tpu.matmul %87, %89, %cst_65 {dimension_numbers = #tpu.dot_dimension_numbers<[1], [0], [0], [1], [0, 0, 1, 1], [], []>} : vector<1x80xf32>, vector<80x10xf32>, vector<1x10xf32> -> vector<1x10xf32>
    %c0_66 = arith.constant 0 : index
    %c0_67 = arith.constant 0 : index
    %91 = vector.load %arg12[%c0_66, %c0_67] : memref<1x10xf32, #tpu.memory_space<vmem>>, vector<1x10xf32>
    %92 = arith.addf %90, %91 : vector<1x10xf32>
    %c0_68 = arith.constant 0 : index
    %c0_69 = arith.constant 0 : index
    %c0_70 = arith.constant 0 : index
    %93 = vector.load %arg13[%c0_68, %c0_69, %c0_70] : memref<2x1x10xf32, #tpu.memory_space<vmem>>, vector<1x1x10xf32>
    %94 = vector.shape_cast %93 : vector<1x1x10xf32> to vector<1x10xf32>
    %95 = vector.shape_cast %92 : vector<1x10xf32> to vector<1x1x10xf32>
    tpu.vector_store %arg13[%c0_68, %c0_69, %c0_70], %95 {strides = array<i32>} : memref<2x1x10xf32, #tpu.memory_space<vmem>>, vector<1x1x10xf32>,
    %c1_71 = arith.constant 1 : index
    %c0_72 = arith.constant 0 : index
    %c0_73 = arith.constant 0 : index
    %96 = vector.load %arg0[%c1_71, %c0_72, %c0_73] : memref<2x28x28xf32, #tpu.memory_space<vmem>>, vector<1x28x28xf32>
    %97 = vector.shape_cast %96 : vector<1x28x28xf32> to vector<28x28xf32>
    %98 = vector.extract_strided_slice %97 {offsets = [0, 0], sizes = [26, 28], strides = [1, 1]} : vector<28x28xf32> to vector<26x28xf32>
    %c0_74 = arith.constant 0 : index
    %c0_75 = arith.constant 0 : index
    %c0_76 = arith.constant 0 : index
    %99 = vector.load %arg1[%c0_74, %c0_75, %c0_76] : memref<3x28x208xf32, #tpu.memory_space<vmem>>, vector<1x28x208xf32>
    %100 = vector.shape_cast %99 : vector<1x28x208xf32> to vector<28x208xf32>
    %cst_77 = arith.constant dense<0.000000e+00> : vector<26x208xf32>
    %101 = tpu.matmul %98, %100, %cst_77 {dimension_numbers = #tpu.dot_dimension_numbers<[1], [0], [0], [1], [0, 0, 1, 1], [], []>} : vector<26x28xf32>, vector<28x208xf32>, vector<26x208xf32> -> vector<26x208xf32>
    %102 = vector.extract_strided_slice %97 {offsets = [1, 0], sizes = [26, 28], strides = [1, 1]} : vector<28x28xf32> to vector<26x28xf32>
    %c1_78 = arith.constant 1 : index
    %c0_79 = arith.constant 0 : index
    %c0_80 = arith.constant 0 : index
    %103 = vector.load %arg1[%c1_78, %c0_79, %c0_80] : memref<3x28x208xf32, #tpu.memory_space<vmem>>, vector<1x28x208xf32>
    %104 = vector.shape_cast %103 : vector<1x28x208xf32> to vector<28x208xf32>
    %cst_81 = arith.constant dense<0.000000e+00> : vector<26x208xf32>
    %105 = tpu.matmul %102, %104, %cst_81 {dimension_numbers = #tpu.dot_dimension_numbers<[1], [0], [0], [1], [0, 0, 1, 1], [], []>} : vector<26x28xf32>, vector<28x208xf32>, vector<26x208xf32> -> vector<26x208xf32>
    %106 = arith.addf %101, %105 : vector<26x208xf32>
    %107 = vector.extract_strided_slice %97 {offsets = [2, 0], sizes = [26, 28], strides = [1, 1]} : vector<28x28xf32> to vector<26x28xf32>
    %c2_82 = arith.constant 2 : index
    %c0_83 = arith.constant 0 : index
    %c0_84 = arith.constant 0 : index
    %108 = vector.load %arg1[%c2_82, %c0_83, %c0_84] : memref<3x28x208xf32, #tpu.memory_space<vmem>>, vector<1x28x208xf32>
    %109 = vector.shape_cast %108 : vector<1x28x208xf32> to vector<28x208xf32>
    %cst_85 = arith.constant dense<0.000000e+00> : vector<26x208xf32>
    %110 = tpu.matmul %107, %109, %cst_85 {dimension_numbers = #tpu.dot_dimension_numbers<[1], [0], [0], [1], [0, 0, 1, 1], [], []>} : vector<26x28xf32>, vector<28x208xf32>, vector<26x208xf32> -> vector<26x208xf32>
    %111 = arith.addf %106, %110 : vector<26x208xf32>
    %c0_86 = arith.constant 0 : index
    %c0_87 = arith.constant 0 : index
    %112 = vector.load %arg2[%c0_86, %c0_87] : memref<1x208xf32, #tpu.memory_space<vmem>>, vector<1x208xf32>
    %113 = vector.broadcast %112 : vector<1x208xf32> to vector<26x208xf32>
    %114 = arith.addf %111, %113 : vector<26x208xf32>
    %cst_88 = arith.constant 0.000000e+00 : f32
    %115 = vector.broadcast %cst_88 : f32 to vector<26x208xf32>
    %116 = arith.maximumf %114, %115 : vector<26x208xf32>
    %117 = vector.extract_strided_slice %116 {offsets = [0, 0], sizes = [26, 200], strides = [1, 1]} : vector<26x208xf32> to vector<26x200xf32>
    %118 = vector.extract_strided_slice %116 {offsets = [0, 8], sizes = [26, 200], strides = [1, 1]} : vector<26x208xf32> to vector<26x200xf32>
    %119 = arith.maximumf %117, %118 : vector<26x200xf32>
    %120 = vector.extract_strided_slice %119 {offsets = [0, 0], sizes = [25, 200], strides = [1, 1]} : vector<26x200xf32> to vector<25x200xf32>
    %121 = vector.extract_strided_slice %119 {offsets = [1, 0], sizes = [25, 200], strides = [1, 1]} : vector<26x200xf32> to vector<25x200xf32>
    %122 = arith.maximumf %120, %121 : vector<25x200xf32>
    %c0_89 = arith.constant 0 : index
    %c0_90 = arith.constant 0 : index
    %123 = vector.load %arg3[%c0_89, %c0_90] : memref<13x25xf32, #tpu.memory_space<vmem>>, vector<13x25xf32>
    %cst_91 = arith.constant dense<0.000000e+00> : vector<13x200xf32>
    %124 = tpu.matmul %123, %122, %cst_91 {dimension_numbers = #tpu.dot_dimension_numbers<[1], [0], [0], [1], [0, 0, 1, 1], [], []>} : vector<13x25xf32>, vector<25x200xf32>, vector<13x200xf32> -> vector<13x200xf32>
    %c0_92 = arith.constant 0 : index
    %c0_93 = arith.constant 0 : index
    %125 = vector.load %arg4[%c0_92, %c0_93] : memref<200x104xf32, #tpu.memory_space<vmem>>, vector<200x104xf32>
    %cst_94 = arith.constant dense<0.000000e+00> : vector<13x104xf32>
    %126 = tpu.matmul %124, %125, %cst_94 {dimension_numbers = #tpu.dot_dimension_numbers<[1], [0], [0], [1], [0, 0, 1, 1], [], []>} : vector<13x200xf32>, vector<200x104xf32>, vector<13x104xf32> -> vector<13x104xf32>
    %127 = vector.extract_strided_slice %126 {offsets = [0, 0], sizes = [11, 104], strides = [1, 1]} : vector<13x104xf32> to vector<11x104xf32>
    %c0_95 = arith.constant 0 : index
    %c0_96 = arith.constant 0 : index
    %c0_97 = arith.constant 0 : index
    %128 = vector.load %arg5[%c0_95, %c0_96, %c0_97] : memref<3x104x176xf32, #tpu.memory_space<vmem>>, vector<1x104x176xf32>
    %129 = vector.shape_cast %128 : vector<1x104x176xf32> to vector<104x176xf32>
    %cst_98 = arith.constant dense<0.000000e+00> : vector<11x176xf32>
    %130 = tpu.matmul %127, %129, %cst_98 {dimension_numbers = #tpu.dot_dimension_numbers<[1], [0], [0], [1], [0, 0, 1, 1], [], []>} : vector<11x104xf32>, vector<104x176xf32>, vector<11x176xf32> -> vector<11x176xf32>
    %131 = vector.extract_strided_slice %126 {offsets = [1, 0], sizes = [11, 104], strides = [1, 1]} : vector<13x104xf32> to vector<11x104xf32>
    %c1_99 = arith.constant 1 : index
    %c0_100 = arith.constant 0 : index
    %c0_101 = arith.constant 0 : index
    %132 = vector.load %arg5[%c1_99, %c0_100, %c0_101] : memref<3x104x176xf32, #tpu.memory_space<vmem>>, vector<1x104x176xf32>
    %133 = vector.shape_cast %132 : vector<1x104x176xf32> to vector<104x176xf32>
    %cst_102 = arith.constant dense<0.000000e+00> : vector<11x176xf32>
    %134 = tpu.matmul %131, %133, %cst_102 {dimension_numbers = #tpu.dot_dimension_numbers<[1], [0], [0], [1], [0, 0, 1, 1], [], []>} : vector<11x104xf32>, vector<104x176xf32>, vector<11x176xf32> -> vector<11x176xf32>
    %135 = arith.addf %130, %134 : vector<11x176xf32>
    %136 = vector.extract_strided_slice %126 {offsets = [2, 0], sizes = [11, 104], strides = [1, 1]} : vector<13x104xf32> to vector<11x104xf32>
    %c2_103 = arith.constant 2 : index
    %c0_104 = arith.constant 0 : index
    %c0_105 = arith.constant 0 : index
    %137 = vector.load %arg5[%c2_103, %c0_104, %c0_105] : memref<3x104x176xf32, #tpu.memory_space<vmem>>, vector<1x104x176xf32>
    %138 = vector.shape_cast %137 : vector<1x104x176xf32> to vector<104x176xf32>
    %cst_106 = arith.constant dense<0.000000e+00> : vector<11x176xf32>
    %139 = tpu.matmul %136, %138, %cst_106 {dimension_numbers = #tpu.dot_dimension_numbers<[1], [0], [0], [1], [0, 0, 1, 1], [], []>} : vector<11x104xf32>, vector<104x176xf32>, vector<11x176xf32> -> vector<11x176xf32>
    %140 = arith.addf %135, %139 : vector<11x176xf32>
    %c0_107 = arith.constant 0 : index
    %c0_108 = arith.constant 0 : index
    %141 = vector.load %arg6[%c0_107, %c0_108] : memref<1x176xf32, #tpu.memory_space<vmem>>, vector<1x176xf32>
    %142 = vector.broadcast %141 : vector<1x176xf32> to vector<11x176xf32>
    %143 = arith.addf %140, %142 : vector<11x176xf32>
    %cst_109 = arith.constant 0.000000e+00 : f32
    %144 = vector.broadcast %cst_109 : f32 to vector<11x176xf32>
    %145 = arith.maximumf %143, %144 : vector<11x176xf32>
    %146 = vector.extract_strided_slice %145 {offsets = [0, 0], sizes = [11, 160], strides = [1, 1]} : vector<11x176xf32> to vector<11x160xf32>
    %147 = vector.extract_strided_slice %145 {offsets = [0, 16], sizes = [11, 160], strides = [1, 1]} : vector<11x176xf32> to vector<11x160xf32>
    %148 = arith.maximumf %146, %147 : vector<11x160xf32>
    %149 = vector.extract_strided_slice %148 {offsets = [0, 0], sizes = [10, 160], strides = [1, 1]} : vector<11x160xf32> to vector<10x160xf32>
    %150 = vector.extract_strided_slice %148 {offsets = [1, 0], sizes = [10, 160], strides = [1, 1]} : vector<11x160xf32> to vector<10x160xf32>
    %151 = arith.maximumf %149, %150 : vector<10x160xf32>
    %c0_110 = arith.constant 0 : index
    %c0_111 = arith.constant 0 : index
    %152 = vector.load %arg7[%c0_110, %c0_111] : memref<5x10xf32, #tpu.memory_space<vmem>>, vector<5x10xf32>
    %cst_112 = arith.constant dense<0.000000e+00> : vector<5x160xf32>
    %153 = tpu.matmul %152, %151, %cst_112 {dimension_numbers = #tpu.dot_dimension_numbers<[1], [0], [0], [1], [0, 0, 1, 1], [], []>} : vector<5x10xf32>, vector<10x160xf32>, vector<5x160xf32> -> vector<5x160xf32>
    %c0_113 = arith.constant 0 : index
    %c0_114 = arith.constant 0 : index
    %154 = vector.load %arg8[%c0_113, %c0_114] : memref<160x80xf32, #tpu.memory_space<vmem>>, vector<160x80xf32>
    %cst_115 = arith.constant dense<0.000000e+00> : vector<5x80xf32>
    %155 = tpu.matmul %153, %154, %cst_115 {dimension_numbers = #tpu.dot_dimension_numbers<[1], [0], [0], [1], [0, 0, 1, 1], [], []>} : vector<5x160xf32>, vector<160x80xf32>, vector<5x80xf32> -> vector<5x80xf32>
    %156 = vector.extract_strided_slice %155 {offsets = [0, 0], sizes = [1, 80], strides = [1, 1]} : vector<5x80xf32> to vector<1x80xf32>
    %c0_116 = arith.constant 0 : index
    %c0_117 = arith.constant 0 : index
    %c0_118 = arith.constant 0 : index
    %157 = vector.load %arg9[%c0_116, %c0_117, %c0_118] : memref<5x80x80xf32, #tpu.memory_space<vmem>>, vector<1x80x80xf32>
    %158 = vector.shape_cast %157 : vector<1x80x80xf32> to vector<80x80xf32>
    %cst_119 = arith.constant dense<0.000000e+00> : vector<1x80xf32>
    %159 = tpu.matmul %156, %158, %cst_119 {dimension_numbers = #tpu.dot_dimension_numbers<[1], [0], [0], [1], [0, 0, 1, 1], [], []>} : vector<1x80xf32>, vector<80x80xf32>, vector<1x80xf32> -> vector<1x80xf32>
    %160 = vector.extract_strided_slice %155 {offsets = [1, 0], sizes = [1, 80], strides = [1, 1]} : vector<5x80xf32> to vector<1x80xf32>
    %c1_120 = arith.constant 1 : index
    %c0_121 = arith.constant 0 : index
    %c0_122 = arith.constant 0 : index
    %161 = vector.load %arg9[%c1_120, %c0_121, %c0_122] : memref<5x80x80xf32, #tpu.memory_space<vmem>>, vector<1x80x80xf32>
    %162 = vector.shape_cast %161 : vector<1x80x80xf32> to vector<80x80xf32>
    %cst_123 = arith.constant dense<0.000000e+00> : vector<1x80xf32>
    %163 = tpu.matmul %160, %162, %cst_123 {dimension_numbers = #tpu.dot_dimension_numbers<[1], [0], [0], [1], [0, 0, 1, 1], [], []>} : vector<1x80xf32>, vector<80x80xf32>, vector<1x80xf32> -> vector<1x80xf32>
    %164 = arith.addf %159, %163 : vector<1x80xf32>
    %165 = vector.extract_strided_slice %155 {offsets = [2, 0], sizes = [1, 80], strides = [1, 1]} : vector<5x80xf32> to vector<1x80xf32>
    %c2_124 = arith.constant 2 : index
    %c0_125 = arith.constant 0 : index
    %c0_126 = arith.constant 0 : index
    %166 = vector.load %arg9[%c2_124, %c0_125, %c0_126] : memref<5x80x80xf32, #tpu.memory_space<vmem>>, vector<1x80x80xf32>
    %167 = vector.shape_cast %166 : vector<1x80x80xf32> to vector<80x80xf32>
    %cst_127 = arith.constant dense<0.000000e+00> : vector<1x80xf32>
    %168 = tpu.matmul %165, %167, %cst_127 {dimension_numbers = #tpu.dot_dimension_numbers<[1], [0], [0], [1], [0, 0, 1, 1], [], []>} : vector<1x80xf32>, vector<80x80xf32>, vector<1x80xf32> -> vector<1x80xf32>
    %169 = arith.addf %164, %168 : vector<1x80xf32>
    %170 = vector.extract_strided_slice %155 {offsets = [3, 0], sizes = [1, 80], strides = [1, 1]} : vector<5x80xf32> to vector<1x80xf32>
    %c3_128 = arith.constant 3 : index
    %c0_129 = arith.constant 0 : index
    %c0_130 = arith.constant 0 : index
    %171 = vector.load %arg9[%c3_128, %c0_129, %c0_130] : memref<5x80x80xf32, #tpu.memory_space<vmem>>, vector<1x80x80xf32>
    %172 = vector.shape_cast %171 : vector<1x80x80xf32> to vector<80x80xf32>
    %cst_131 = arith.constant dense<0.000000e+00> : vector<1x80xf32>
    %173 = tpu.matmul %170, %172, %cst_131 {dimension_numbers = #tpu.dot_dimension_numbers<[1], [0], [0], [1], [0, 0, 1, 1], [], []>} : vector<1x80xf32>, vector<80x80xf32>, vector<1x80xf32> -> vector<1x80xf32>
    %174 = arith.addf %169, %173 : vector<1x80xf32>
    %175 = vector.extract_strided_slice %155 {offsets = [4, 0], sizes = [1, 80], strides = [1, 1]} : vector<5x80xf32> to vector<1x80xf32>
    %c4_132 = arith.constant 4 : index
    %c0_133 = arith.constant 0 : index
    %c0_134 = arith.constant 0 : index
    %176 = vector.load %arg9[%c4_132, %c0_133, %c0_134] : memref<5x80x80xf32, #tpu.memory_space<vmem>>, vector<1x80x80xf32>
    %177 = vector.shape_cast %176 : vector<1x80x80xf32> to vector<80x80xf32>
    %cst_135 = arith.constant dense<0.000000e+00> : vector<1x80xf32>
    %178 = tpu.matmul %175, %177, %cst_135 {dimension_numbers = #tpu.dot_dimension_numbers<[1], [0], [0], [1], [0, 0, 1, 1], [], []>} : vector<1x80xf32>, vector<80x80xf32>, vector<1x80xf32> -> vector<1x80xf32>
    %179 = arith.addf %174, %178 : vector<1x80xf32>
    %c0_136 = arith.constant 0 : index
    %c0_137 = arith.constant 0 : index
    %180 = vector.load %arg10[%c0_136, %c0_137] : memref<1x80xf32, #tpu.memory_space<vmem>>, vector<1x80xf32>
    %181 = arith.addf %179, %180 : vector<1x80xf32>
    %cst_138 = arith.constant 0.000000e+00 : f32
    %182 = vector.broadcast %cst_138 : f32 to vector<1x80xf32>
    %183 = arith.maximumf %181, %182 : vector<1x80xf32>
    %c0_139 = arith.constant 0 : index
    %c0_140 = arith.constant 0 : index
    %c0_141 = arith.constant 0 : index
    %184 = vector.load %arg11[%c0_139, %c0_140, %c0_141] : memref<1x80x10xf32, #tpu.memory_space<vmem>>, vector<1x80x10xf32>
    %185 = vector.shape_cast %184 : vector<1x80x10xf32> to vector<80x10xf32>
    %cst_142 = arith.constant dense<0.000000e+00> : vector<1x10xf32>
    %186 = tpu.matmul %183, %185, %cst_142 {dimension_numbers = #tpu.dot_dimension_numbers<[1], [0], [0], [1], [0, 0, 1, 1], [], []>} : vector<1x80xf32>, vector<80x10xf32>, vector<1x10xf32> -> vector<1x10xf32>
    %c0_143 = arith.constant 0 : index
    %c0_144 = arith.constant 0 : index
    %187 = vector.load %arg12[%c0_143, %c0_144] : memref<1x10xf32, #tpu.memory_space<vmem>>, vector<1x10xf32>
    %188 = arith.addf %186, %187 : vector<1x10xf32>
    %c1_145 = arith.constant 1 : index
    %c0_146 = arith.constant 0 : index
    %c0_147 = arith.constant 0 : index
    %189 = vector.load %arg13[%c1_145, %c0_146, %c0_147] : memref<2x1x10xf32, #tpu.memory_space<vmem>>, vector<1x1x10xf32>
    %190 = vector.shape_cast %189 : vector<1x1x10xf32> to vector<1x10xf32>
    %191 = vector.shape_cast %188 : vector<1x10xf32> to vector<1x1x10xf32>
    tpu.vector_store %arg13[%c1_145, %c0_146, %c0_147], %191 {strides = array<i32>} : memref<2x1x10xf32, #tpu.memory_space<vmem>>, vector<1x1x10xf32>,
    return
  }
}

</mosaic_0001>

<bundles_post_ra>
// kernel: production_cnn_forward.1
= control target key start
LH: loop header
LB: loop body
LE: loop exit
PB: predicated region body
PF: predicated region fallthrough
CT: control target
= control target key end

     0   :  { %vm87_vm0 = vcmask 1043456   ;;  %v4969_v7 = vmov 0.0   ;;  %vm4970_vm1 = vmmov 1   ;;  %vm70_vm3 = vcmask 1046528   ;;  %s6803_s0 = inlined_call_operand.vmem [shape: f32[2,28,28], index: 0, kind: input, shape index: {}]   ;;  %s6804_s1 = inlined_call_operand.vmem [shape: f32[3,28,208], index: 1, kind: input, shape index: {}]   ;;  %s6805_s2 = inlined_call_operand.vmem [shape: f32[1,208], index: 2, kind: input, shape index: {}]   ;;  %s6806_s3 = inlined_call_operand.vmem [shape: f32[13,25], index: 3, kind: input, shape index: {}]   ;;  %s6807_s4 = inlined_call_operand.vmem [shape: f32[200,104], index: 4, kind: input, shape index: {}]   ;;  %s6808_s5 = inlined_call_operand.vmem [shape: f32[3,104,176], index: 5, kind: input, shape index: {}]   ;;  %s6809_s6 = inlined_call_operand.vmem [shape: f32[1,176], index: 6, kind: input, shape index: {}]   ;;  %s6810_s7 = inlined_call_operand.vmem [shape: f32[5,10], index: 7, kind: input, shape index: {}]   ;;  %s6811_s8 = inlined_call_operand.vmem [shape: f32[160,80], index: 8, kind: input, shape index: {}]   ;;  %s6812_s9 = inlined_call_operand.vmem [shape: f32[5,80,80], index: 9, kind: input, shape index: {}]   ;;  %s6813_s10 = inlined_call_operand.vmem [shape: f32[1,80], index: 10, kind: input, shape index: {}]   ;;  %s6814_s11 = inlined_call_operand.vmem [shape: f32[1,80,10], index: 11, kind: input, shape index: {}]   ;;  %s6815_s12 = inlined_call_operand.vmem [shape: f32[1,10], index: 12, kind: input, shape index: {}]   ;;  %s6816_s13 = inlined_call_operand.hbm [shape: f32[2,1,10], index: 13, kind: output, shape index: {}]  }
   0x1   :  { %v3573_v0 = vld [vmem:[%s6804_s1 + $0x48] sm:$0xff]  ;;  %v3575_v1 = vld [vmem:[%s6804_s1 + $0x58] sm:$0xff]  ;;  %v3572_v2 = vld [vmem:[%s6804_s1 + $0x40] sm:$0xff]  ;;  %158 = vmatprep.mubr.f32.mxu0 %v4969_v7  ;;  %605 = vmatprep.mubr.f32.mxu1 %v4969_v7  ;;  %vm78_vm4 = vcmask 228352  }
   0x2   :  { %v4280_v3 = vpack.c.bf16 %v3575_v1, %v3573_v0  ;;  %v3574_v4 = vld [vmem:[%s6804_s1 + $0x50] sm:$0xff]  ;;  %v3577_v5 = vld [vmem:[%s6804_s1 + $0x68] sm:$0xff]  ;;  %v3579_v6 = vld [vmem:[%s6804_s1 + $0x78] sm:$0xf] }
   0x3   :  { %v4282_v8 = vpack.c.bf16 %v3574_v4, %v3572_v2  ;;  %v4284_v9 = vpack.c.bf16 %v3579_v6, %v3577_v5  ;;  %vm5069_vm2 = vmpackc.low %vm87_vm0, %vm4970_vm1  ;;  %v3576_v11 = vld [vmem:[%s6804_s1 + $0x60] sm:$0xff]  ;;  %v3578_v12 = vld [vmem:[%s6804_s1 + $0x70] sm:$0xf] }
   0x4   :  { %4281 = vmatprep.subr.bf16.mxu0 %v4280_v3  ;;  %v5082_v13 = vld [vmem:[%s6803_s0] sm:$0xff]  ;;  %v5087_v14 = vld [vmem:[%s6803_s0 + $0x8] sm:$0xff]  ;;  %v4287_v15 = vpack.c.bf16 %v3578_v12, %v3576_v11  ;;  %v52_v19 = vld [vmem:[%s6804_s1 + $0x18] sm:$0xff] }
   0x5   :  { %4283 = vmatpush1.bf16.msra.mxu0 %v4282_v8  ;;  %v71_v16 = vrot.slane %v5082_v13, 1  ;;  %v72_v17 = vrot.slane %v5087_v14, 1  ;;  %v50_v18 = vld [vmem:[%s6804_s1 + $0x8] sm:$0xff]  ;;  %v5102_v20 = vld [vmem:[%s6803_s0 + $0x10] sm:$0xff]  ;;  %v49_v22 = vld [vmem:[%s6804_s1] sm:$0xff] }
   0x6   :  { %4286 = vmatprep.subr.msk.bf16.mxu0 %vm5069_vm2, %v4284_v9  ;;  %v4290_v21 = vpack.c.bf16 %v52_v19, %v50_v18  ;;  %v51_v23 = vld [vmem:[%s6804_s1 + $0x10] sm:$0xff]  ;;  %v54_v24 = vld [vmem:[%s6804_s1 + $0x28] sm:$0xff]  ;;  %v56_v25 = vld [vmem:[%s6804_s1 + $0x38] sm:$0xf]  ;;  %v74_v27 = vrot.slane %v5102_v20, 1 }
   0x7   :  { %v73_v26 = vsel %vm70_vm3, %v71_v16, %v72_v17  ;;  %v4292_v28 = vpack.c.bf16 %v51_v23, %v49_v22  ;;  %v48_v29 = vld [vmem:[%s6803_s0 + $0x18] sm:$0xf]  ;;  %v4294_v30 = vpack.c.bf16 %v56_v25, %v54_v24  ;;  %v53_v31 = vld [vmem:[%s6804_s1 + $0x20] sm:$0xff]  ;;  %v55_v32 = vld [vmem:[%s6804_s1 + $0x30] sm:$0xf] }
   0x8   :  { %v3593_v33 = vld [vmem:[%s6804_s1 + $0x88] sm:$0xff]  ;;  %v3595_v34 = vld [vmem:[%s6804_s1 + $0x98] sm:$0xff] }
   0x9   :  { %4289 = vmatpush1.bf16.msk.msra.mxu0 %vm5069_vm2, %v4287_v15 }
   0xa   :  { %4291 = vmatprep.subr.bf16.mxu0 %v4290_v21 }
   0xb   :  { %18 = vsyncpa [#allocation3], 0  ;;  %v75_v35 = vsel %vm70_vm3, %v72_v17, %v74_v27  ;;  %v76_v36 = vrot.slane %v48_v29, 1  ;;  %v4297_v37 = vpack.c.bf16 %v55_v32, %v53_v31  ;;  %v4300_v38 = vpack.c.bf16 %v3595_v34, %v3593_v33  ;;  %v3592_v40 = vld [vmem:[%s6804_s1 + $0x80] sm:$0xff]  ;;  %v3594_v41 = vld [vmem:[%s6804_s1 + $0x90] sm:$0xff]  ;;  %s4971_s15 = smov 120  }
   0xc   :  { %3582 = vmatmul.mubr.msk.f32.vlgmr.msra.gmra.mrb[0].mxu0 %vm78_vm4, %v73_v26  ;;  %v3597_v42 = vld [vmem:[%s6804_s1 + $0xa8] sm:$0xff]  ;;  %v3599_v43 = vld [vmem:[%s6804_s1 + $0xb8] sm:$0xf]  ;;  %v4302_v44 = vpack.c.bf16 %v3594_v41, %v3592_v40  ;;  %v3596_v46 = vld [vmem:[%s6804_s1 + $0xa0] sm:$0xff]  ;;  %v296_v49 = vrot.slane %v5082_v13, 2  ;;  %v297_v50 = vrot.slane %v5087_v14, 2  ;;  %v416_v56 = vlaneseq }
   0xd   :  { %164 = vmatprep.mubr.f32.mxu0 %v4969_v7  ;;  %4293 = vmatpush1.bf16.msra.mxu0 %v4292_v28  ;;  %v77_v39 = vsel %vm70_vm3, %v74_v27, %v76_v36  ;;  %v4304_v45 = vpack.c.bf16 %v3599_v43, %v3597_v42  ;;  %v3598_v47 = vld [vmem:[%s6804_s1 + $0xb0] sm:$0xf]  ;;  %vm295_vm5 = vcmask 1045504   ;;  %v299_v52 = vrot.slane %v5102_v20, 2  ;;  %v414_v59 = vld [vmem:[%s6805_s2] sm:$0x3] }
   0xe   :  { %4296 = vmatprep.subr.msk.bf16.mxu0 %vm5069_vm2, %v4294_v30  ;;  %v4307_v48 = vpack.c.bf16 %v3598_v47, %v3596_v46  ;;  %v298_v51 = vsel %vm295_vm5, %v296_v49, %v297_v50  ;;  %v301_v54 = vrot.slane %v48_v29, 2  ;;  %v417_v57 = vshrl.u32 %v416_v56, 7  ;;  %s4973_s20 = smov 112  }
   0xf   :  { %v300_v53 = vsel %vm295_vm5, %v297_v50, %v299_v52  ;;  %vm466_vm6 = vcmask 982016   ;;  %vm534_vm7 = vcmask 1040384   ;;  %vm527_vm9 = vcmask 203776  }
  0x10   :  { %3583 = vmatmul.mubr.msk.f32.gmra.mrb[2].mxu0 %vm78_vm4, %v75_v35  ;;  %v302_v55 = vsel %vm295_vm5, %v299_v52, %v301_v54  ;;  %v5196_v58 = vsub.s32 0, %v417_v57  ;;  %v5201_v60 = vsub.s32 1, %v417_v57  ;;  %vm5220_vm8 = vmpackc.low %vm534_vm7, %vm4970_vm1  ;;  %vm643_vm10 = vcmask 588800  }
  0x11   :  { %170 = vmatprep.mubr.f32.mxu0 %v4969_v7  ;;  %4299 = vmatpush1.bf16.msk.msra.mxu0 %vm5069_vm2, %v4297_v37  ;;  %vm783_vm11 = vcmask 850944   ;;  %vm1093_vm12 = vcmask 916480   ;;  %vm1127_vm13 = vcmask 1041408   ;;  %vm1123_vm15 = vcmask 80896  }
  0x12   :  { %4301 = vmatprep.subr.bf16.mxu0 %v4300_v38  ;;  %v419_v61 = vrot.slane %v414_v59, %v5196_v58  ;;  %v423_v62 = vrot.slane %v414_v59, %v5201_v60  ;;  %vm5605_vm14 = vmpackc.low %vm1127_vm13, %vm4970_vm1  ;;  %vm1225_vm0 = vcmask 261120   ;;  %vm4974_vm1 = vmmov 0  }
  0x13   :  { %vm1322_vm7 = vcmask 654336  }
  0x14   :  { %3584 = vmatmul.mubr.msk.f32.gmra.mrb[4].mxu0 %vm78_vm4, %v77_v39 }
  0x15   :  { %176 = vmatprep.mubr.f32.mxu0 %v4969_v7 }
  0x18   :  { %3585 = vmatmul.mubr.msk.f32.gmra.mrb[6].mxu0 %vm78_vm4, %v76_v36 }
  0x19   :  { %261 = vmatprep.mubr.f32.mxu0 %v4969_v7 }
  0x1c   :  { %3588 = vmatmul.mubr.msk.f32.vlgmr.msra.gmra.mrb[0].mxu0 %vm78_vm4, %v5082_v13 }
  0x1d   :  { %267 = vmatprep.mubr.f32.mxu0 %v4969_v7  ;;  %4303 = vmatpush1.bf16.msra.mxu0 %v4302_v44 }
  0x1e   :  { %4306 = vmatprep.subr.msk.bf16.mxu0 %vm5069_vm2, %v4304_v45 }
  0x20   :  { %3589 = vmatmul.mubr.msk.f32.gmra.mrb[2].mxu0 %vm78_vm4, %v5087_v14 }
  0x21   :  { %273 = vmatprep.mubr.f32.mxu0 %v4969_v7  ;;  %4309 = vmatpush1.bf16.msk.msra.mxu0 %vm5069_vm2, %v4307_v48 }
  0x24   :  { %3590 = vmatmul.mubr.msk.f32.gmra.mrb[4].mxu0 %vm78_vm4, %v5102_v20 }
  0x25   :  { %279 = vmatprep.mubr.f32.mxu0 %v4969_v7 }
  0x28   :  { %3591 = vmatmul.mubr.msk.f32.gmra.mrb[6].mxu0 %vm78_vm4, %v48_v29 }
  0x29   :  { %381 = vmatprep.mubr.f32.mxu0 %v4969_v7 }
  0x2c   :  { %3602 = vmatmul.mubr.msk.f32.vlgmr.msra.gmra.mrb[0].mxu0 %vm78_vm4, %v298_v51 }
  0x2d   :  { %387 = vmatprep.mubr.f32.mxu0 %v4969_v7 }
  0x30   :  { %3603 = vmatmul.mubr.msk.f32.gmra.mrb[2].mxu0 %vm78_vm4, %v300_v53 }
  0x31   :  { %393 = vmatprep.mubr.f32.mxu0 %v4969_v7 }
  0x34   :  { %3604 = vmatmul.mubr.msk.f32.gmra.mrb[4].mxu0 %vm78_vm4, %v302_v55 }
  0x35   :  { %399 = vmatprep.mubr.f32.mxu0 %v4969_v7 }
  0x38   :  { %3605 = vmatmul.mubr.msk.f32.gmra.mrb[6].mxu0 %vm78_vm4, %v301_v54 }
  0x39   :  { %852 = vmatprep.mubr.f32.mxu0 %v4969_v7 }
  0xff   :  { %v383_v63 = vpop.f32.mrb[0].mxu0 }
 0x100   :  { %v426_v0 = vadd.f32 %v419_v61, %v383_v63  ;;  %v385_v1 = vpop.f32.mrb[1].mxu0 }
 0x101   :  { %v427_v2 = vadd.f32 %v423_v62, %v385_v1 }
 0x102   :  { %v434_v3 = vmax.f32 %v426_v0, 0.0 }
 0x103   :  { %v435_v4 = vmax.f32 %v427_v2, 0.0  ;;  %v389_v5 = vpop.f32.mrb[2].mxu0 }
 0x104   :  { %v428_v6 = vadd.f32 %v419_v61, %v389_v5  ;;  %v391_v8 = vpop.f32.mrb[3].mxu0 }
 0x105   :  { %v429_v9 = vadd.f32 %v423_v62, %v391_v8  ;;  %v4885_v11 = vpack.i.bf16 %v435_v4, %v434_v3 }
 0x106   :  { %v436_v12 = vmax.f32 %v428_v6, 0.0 }
 0x107   :  { %v437_v13 = vmax.f32 %v429_v9, 0.0  ;;  %4886 = vrot.lane.b32.xlu0 %v4885_v11, %s4971_s15  ;;  %v395_v14 = vpop.f32.mrb[4].mxu0 }
 0x108   :  { %v430_v15 = vadd.f32 %v419_v61, %v395_v14  ;;  %v397_v16 = vpop.f32.mrb[5].mxu0 }
 0x109   :  { %v4890_v17 = vpack.i.bf16 %v437_v13, %v436_v12  ;;  %v431_v18 = vadd.f32 %v423_v62, %v397_v16  ;;  %v2286_v16 = vld [vmem:[%s6806_s3 + $0x8] sm:$0x1f] }
 0x10a   :  { %v438_v19 = vmax.f32 %v430_v15, 0.0 }
 0x10b   :  { %v439_v20 = vmax.f32 %v431_v18, 0.0  ;;  %4891 = vrot.lane.b32.xlu0 %v4890_v17, %s4971_s15  ;;  %v401_v21 = vpop.f32.mrb[6].mxu0 }
 0x10c   :  { %v432_v22 = vadd.f32 %v419_v61, %v401_v21  ;;  %v403_v23 = vpop.f32.mrb[7].mxu0 }
 0x10d   :  { %v433_v24 = vadd.f32 %v423_v62, %v403_v23  ;;  %v4895_v25 = vpack.i.bf16 %v439_v20, %v438_v19 }
 0x10e   :  { %v440_v26 = vmax.f32 %v432_v22, 0.0  ;;  %v525_v22 = vld [vmem:[%s6806_s3] sm:$0xff] }
 0x10f   :  { %v441_v27 = vmax.f32 %v433_v24, 0.0  ;;  %4896 = vrot.lane.b32.xlu1 %v4895_v25, %s4971_s15  ;;  %v4972_v24 = vmov 0.0|0.0   ;;  %v620_v25 = vld [vmem:[%s6807_s4 + $0x10] sm:$0xff] }
 0x111   :  { %v4900_v28 = vpack.i.bf16 %v441_v27, %v440_v26 }
 0x113   :  { %4901 = vrot.lane.b32.xlu1 %v4900_v28, %s4971_s15 }
 0x179   :  { %v4887_v29 = vpop.permute.xlu0 %4886 }
 0x17a   :  { %v4889_v30 = vunpack.i.h.bf16 %v4887_v29  ;;  %v4888_v31 = vunpack.i.l.bf16 %v4887_v29  ;;  %v622_v29 = vld [vmem:[%s6807_s4 + $0x20] sm:$0xff] }
 0x17c   :  { %v467_v33 = vsel %vm466_vm6, %v4888_v31, %v4889_v30  ;;  %v480_v36 = vmax.f32 %v435_v4, %v4889_v30  ;;  %v623_v30 = vld [vmem:[%s6807_s4 + $0x28] sm:$0xff] }
 0x17d   :  { %v4892_v32 = vpop.permute.xlu0 %4891  ;;  %v479_v40 = vmax.f32 %v434_v3, %v467_v33  ;;  %v4327_v31 = vpack.c.bf16 %v623_v30, %v622_v29  ;;  %v625_v33 = vld [vmem:[%s6807_s4 + $0x38] sm:$0xff]  ;;  %v3628_v29 = vld [vmem:[%s6808_s5 + $0x150] sm:$0xff]  ;;  %v3630_v30 = vld [vmem:[%s6808_s5 + $0x160] sm:$0xff] }
 0x17e   :  { %v4894_v34 = vunpack.i.h.bf16 %v4892_v32  ;;  %v4893_v35 = vunpack.i.l.bf16 %v4892_v32  ;;  %v498_v46 = vrot.slane %v480_v36, 1  ;;  %v624_v32 = vld [vmem:[%s6807_s4 + $0x30] sm:$0xff] }
 0x17f   :  { %v495_v51 = vrot.slane %v479_v40, 1 }
 0x180   :  { %v482_v37 = vmax.f32 %v437_v13, %v4894_v34  ;;  %v468_v38 = vsel %vm466_vm6, %v4893_v35, %v4894_v34  ;;  %v4330_v34 = vpack.c.bf16 %v625_v33, %v624_v32  ;;  %v626_v35 = vld [vmem:[%s6807_s4 + $0x40] sm:$0xff] }
 0x181   :  { %v4897_v39 = vpop.permute.xlu1 %4896  ;;  %v481_v41 = vmax.f32 %v436_v12, %v468_v38  ;;  %v628_v38 = vld [vmem:[%s6807_s4 + $0x50] sm:$0xff] }
 0x182   :  { %v499_v42 = vrot.slane %v482_v37, 1  ;;  %v4899_v43 = vunpack.i.h.bf16 %v4897_v39  ;;  %v4898_v44 = vunpack.i.l.bf16 %v4897_v39  ;;  %v629_v39 = vld [vmem:[%s6807_s4 + $0x58] sm:$0xff] }
 0x183   :  { %v496_v45 = vrot.slane %v481_v41, 1 }
 0x184   :  { %v484_v47 = vmax.f32 %v439_v20, %v4899_v43  ;;  %v469_v48 = vsel %vm466_vm6, %v4898_v44, %v4899_v43  ;;  %v500_v55 = vsel %vm70_vm3, %v498_v46, %v499_v42  ;;  %v619_v20 = vld [vmem:[%s6807_s4 + $0x8] sm:$0xff]  ;;  %v632_v44 = vld [vmem:[%s6807_s4 + $0x70] sm:$0xff] }
 0x185   :  { %v483_v49 = vmax.f32 %v438_v19, %v469_v48  ;;  %v4902_v50 = vpop.permute.xlu1 %4901  ;;  %v497_v56 = vsel %vm70_vm3, %v495_v51, %v496_v45  ;;  %v518_v0 = vmax.f32 %v480_v36, %v500_v55  ;;  %v618_v19 = vld [vmem:[%s6807_s4] sm:$0xff]  ;;  %v627_v36 = vld [vmem:[%s6807_s4 + $0x48] sm:$0xff]  ;;  %v637_v51 = vld [vmem:[%s6807_s4 + $0x98] sm:$0xff] }
 0x186   :  { %v503_v52 = vrot.slane %v484_v47, 1  ;;  %v4904_v53 = vunpack.i.h.bf16 %v4902_v50  ;;  %v4903_v54 = vunpack.i.l.bf16 %v4902_v50  ;;  %v517_v4 = vmax.f32 %v479_v40, %v497_v56  ;;  %v635_v48 = vld [vmem:[%s6807_s4 + $0x88] sm:$0xff]  ;;  %v636_v50 = vld [vmem:[%s6807_s4 + $0x90] sm:$0xff] }
 0x187   :  { %v501_v57 = vrot.slane %v483_v49, 1  ;;  %v4321_v23 = vpack.c.bf16 %v619_v20, %v618_v19  ;;  %v4336_v40 = vpack.c.bf16 %v629_v39, %v628_v38  ;;  %v640_v56 = vld [vmem:[%s6807_s4 + $0xb0] sm:$0xff]  ;;  %v3627_v19 = vld [vmem:[%s6808_s5 + $0x148] sm:$0xff] }
 0x188   :  { %v486_v59 = vmax.f32 %v441_v27, %v4904_v53  ;;  %v470_v61 = vsel %vm466_vm6, %v4903_v54, %v4904_v53  ;;  %v504_v62 = vsel %vm70_vm3, %v499_v42, %v503_v52  ;;  %v526_v27 = vld [vmem:[%s6806_s3 + $0x8] sm:$0x1f]  ;;  %v638_v53 = vld [vmem:[%s6807_s4 + $0xa0] sm:$0xff]  ;;  %v3632_v39 = vld [vmem:[%s6808_s5 + $0x170] sm:$0xff] }
 0x189   :  { %v485_v63 = vmax.f32 %v440_v26, %v470_v61  ;;  %v520_v1 = vmax.f32 %v482_v37, %v504_v62  ;;  %v502_v2 = vsel %vm70_vm3, %v496_v45, %v501_v57  ;;  %v621_v26 = vld [vmem:[%s6807_s4 + $0x18] sm:$0xff]  ;;  %v4333_v37 = vpack.c.bf16 %v627_v36, %v626_v35  ;;  %v631_v42 = vld [vmem:[%s6807_s4 + $0x68] sm:$0xff]  ;;  %v642_v61 = vld [vmem:[%s6807_s4 + $0xc0] sm:$0xff] }
 0x18a   :  { %v507_v3 = vrot.slane %v486_v59, 1  ;;  %v519_v5 = vmax.f32 %v481_v41, %v502_v2  ;;  %v4324_v28 = vpack.c.bf16 %v621_v26, %v620_v25  ;;  %v630_v41 = vld [vmem:[%s6807_s4 + $0x60] sm:$0xff]  ;;  %v633_v45 = vld [vmem:[%s6807_s4 + $0x78] sm:$0xff]  ;;  %v639_v54 = vld [vmem:[%s6807_s4 + $0xa8] sm:$0xff] }
 0x18b   :  { %v505_v6 = vrot.slane %v485_v63, 1  ;;  %v4310_v8 = vpack.c.bf16 %v520_v1, %v518_v0  ;;  %v4339_v43 = vpack.c.bf16 %v631_v42, %v630_v41  ;;  %v4342_v46 = vpack.c.bf16 %v633_v45, %v632_v44  ;;  %v3613_v62 = vld [vmem:[%s6808_s5 + $0xd8] sm:$0xff]  ;;  %v3612_v0 = vld [vmem:[%s6808_s5 + $0xd0] sm:$0xff]  ;;  %v3614_v2 = vld [vmem:[%s6808_s5 + $0xe0] sm:$0xff] }
 0x18c   :  { %v508_v9 = vsel %vm70_vm3, %v503_v52, %v507_v3  ;;  %v524_v11 = vmax.f32 %v486_v59, %v507_v3  ;;  %v4312_v12 = vpack.c.bf16 %v519_v5, %v517_v4  ;;  %v4348_v52 = vpack.c.bf16 %v637_v51, %v636_v50  ;;  %v3617_v3 = vld [vmem:[%s6808_s5 + $0xf8] sm:$0xff]  ;;  %v3619_v4 = vld [vmem:[%s6808_s5 + $0x108] sm:$0xff]  ;;  %v3636_v45 = vld [vmem:[%s6808_s5 + $0x190] sm:$0xff] }
 0x18d   :  { %v523_v13 = vmax.f32 %v485_v63, %v505_v6  ;;  %4311 = vmatprep.subr.bf16.mxu1 %v4310_v8  ;;  %v522_v14 = vmax.f32 %v484_v47, %v508_v9  ;;  %v506_v15 = vsel %vm70_vm3, %v501_v57, %v505_v6  ;;  %v634_v47 = vld [vmem:[%s6807_s4 + $0x80] sm:$0xff]  ;;  %v4351_v55 = vpack.c.bf16 %v639_v54, %v638_v53  ;;  %v641_v57 = vld [vmem:[%s6807_s4 + $0xb8] sm:$0xff]  ;;  %v3615_v63 = vld [vmem:[%s6808_s5 + $0xe8] sm:$0xff] }
 0x18e   :  { %4313 = vmatpush1.bf16.msra.mxu1 %v4312_v12  ;;  %v521_v17 = vmax.f32 %v483_v49, %v506_v15  ;;  %v4345_v49 = vpack.c.bf16 %v635_v48, %v634_v47  ;;  %v4354_v59 = vpack.c.bf16 %v641_v57, %v640_v56  ;;  %v4356_v1 = vpack.c.bf16 %v3615_v63, %v3613_v62  ;;  %v3616_v8 = vld [vmem:[%s6808_s5 + $0xf0] sm:$0xff]  ;;  %v3618_v9 = vld [vmem:[%s6808_s5 + $0x100] sm:$0xff]  ;;  %v3623_v12 = vld [vmem:[%s6808_s5 + $0x128] sm:$0xff] }
 0x18f   :  { %v4314_v18 = vpack.c.bf16 %v524_v11, %v522_v14  ;;  %v4358_v5 = vpack.c.bf16 %v3614_v2, %v3612_v0  ;;  %v4360_v6 = vpack.c.bf16 %v3619_v4, %v3617_v3  ;;  %v3621_v11 = vld [vmem:[%s6808_s5 + $0x118] sm:$0xff]  ;;  %v3620_v15 = vld [vmem:[%s6808_s5 + $0x110] sm:$0xff]  ;;  %v3631_v26 = vld [vmem:[%s6808_s5 + $0x168] sm:$0xff] }
 0x190   :  { %v4317_v21 = vpack.c.bf16 %v523_v13, %v521_v17  ;;  %4357 = vmatprep.subr.bf16.mxu0 %v4356_v1  ;;  %v4362_v13 = vpack.c.bf16 %v3618_v9, %v3616_v8  ;;  %v4364_v14 = vpack.c.bf16 %v3623_v12, %v3621_v11  ;;  %v3622_v17 = vld [vmem:[%s6808_s5 + $0x120] sm:$0xff]  ;;  %v3629_v25 = vld [vmem:[%s6808_s5 + $0x158] sm:$0xff]  ;;  %v727_v50 = vld [vmem:[%s6808_s5 + $0x10] sm:$0xff] }
 0x191   :  { %4316 = vmatprep.subr.msk.bf16.mxu1 %vm5220_vm8, %v4314_v18  ;;  %4359 = vmatpush1.bf16.msra.mxu0 %v4358_v5  ;;  %v3625_v18 = vld [vmem:[%s6808_s5 + $0x138] sm:$0xff]  ;;  %v4366_v20 = vpack.c.bf16 %v3622_v17, %v3620_v15  ;;  %v730_v51 = vld [vmem:[%s6808_s5 + $0x28] sm:$0xff]  ;;  %v729_v63 = vld [vmem:[%s6808_s5 + $0x20] sm:$0xff] }
 0x192   :  { %4319 = vmatpush1.bf16.msk.msra.mxu1 %vm5220_vm8, %v4317_v21  ;;  %4361 = vmatprep.subr.bf16.mxu0 %v4360_v6  ;;  %v4368_v21 = vpack.c.bf16 %v3627_v19, %v3625_v18  ;;  %v3633_v36 = vld [vmem:[%s6808_s5 + $0x178] sm:$0xff]  ;;  %v731_v0 = vld [vmem:[%s6808_s5 + $0x30] sm:$0xff]  ;;  %v734_v3 = vld [vmem:[%s6808_s5 + $0x48] sm:$0xff] }
 0x193   :  { %4320 = vmatprep.subr.bf16.mxu1 %v4972_v24  ;;  %v3637_v42 = vld [vmem:[%s6808_s5 + $0x198] sm:$0xff]  ;;  %v4386_v5 = vpack.c.bf16 %v731_v0, %v729_v63  ;;  %v733_v8 = vld [vmem:[%s6808_s5 + $0x40] sm:$0xff]  ;;  %v735_v9 = vld [vmem:[%s6808_s5 + $0x50] sm:$0xff] }
 0x194   :  { %v728_v44 = vld [vmem:[%s6808_s5 + $0x18] sm:$0xff]  ;;  %v738_v11 = vld [vmem:[%s6808_s5 + $0x68] sm:$0xff]  ;;  %v737_v15 = vld [vmem:[%s6808_s5 + $0x60] sm:$0xff] }
 0x195   :  { %3608 = vmatmul.mubr.msk.f32.vlgmr.msra.gmra.mrb[0].mxu1 %vm527_vm9, %v525_v22  ;;  %4363 = vmatpush1.bf16.msra.mxu0 %v4362_v13  ;;  %v3624_v22 = vld [vmem:[%s6808_s5 + $0x130] sm:$0xff]  ;;  %v736_v4 = vld [vmem:[%s6808_s5 + $0x58] sm:$0xff]  ;;  %v4390_v13 = vpack.c.bf16 %v735_v9, %v733_v8  ;;  %v742_v18 = vld [vmem:[%s6808_s5 + $0x88] sm:$0xff] }
 0x196   :  { %611 = vmatprep.mubr.f32.mxu1 %v4969_v7  ;;  %4322 = vmatpush1.bf16.msra.mxu1 %v4321_v23  ;;  %v3626_v23 = vld [vmem:[%s6808_s5 + $0x140] sm:$0xff]  ;;  %v4388_v6 = vpack.c.bf16 %v736_v4, %v734_v3  ;;  %v740_v12 = vld [vmem:[%s6808_s5 + $0x78] sm:$0xff]  ;;  %v739_v17 = vld [vmem:[%s6808_s5 + $0x70] sm:$0xff] }
 0x197   :  { %4323 = vmatprep.subr.bf16.mxu1 %v4972_v24  ;;  %4365 = vmatprep.subr.bf16.mxu0 %v4364_v14  ;;  %v4392_v14 = vpack.c.bf16 %v740_v12, %v738_v11  ;;  %v744_v19 = vld [vmem:[%s6808_s5 + $0x98] sm:$0xff]  ;;  %v3660_v3 = vld [vmem:[%s6808_s5 + $0x230] sm:$0xff]  ;;  %v3663_v4 = vld [vmem:[%s6808_s5 + $0x248] sm:$0xff] }
 0x198   :  { %v3662_v9 = vld [vmem:[%s6808_s5 + $0x240] sm:$0xff]  ;;  %v3664_v11 = vld [vmem:[%s6808_s5 + $0x250] sm:$0xff] }
 0x199   :  { %3609 = vmatmul.mubr.msk.f32.gmra.mrb[2].mxu1 %vm527_vm9, %v526_v27  ;;  %4367 = vmatpush1.bf16.msra.mxu0 %v4366_v20  ;;  %v4370_v27 = vpack.c.bf16 %v3626_v23, %v3624_v22  ;;  %v4394_v20 = vpack.c.bf16 %v739_v17, %v737_v15  ;;  %v741_v22 = vld [vmem:[%s6808_s5 + $0x80] sm:$0xff]  ;;  %v743_v23 = vld [vmem:[%s6808_s5 + $0x90] sm:$0xff]  ;;  %v4426_v12 = vpack.c.bf16 %v3664_v11, %v3662_v9  ;;  %v1212_v9 = vld [vmem:[%s6811_s8 + $0x38] sm:$0xff] }
 0x19a   :  { %4325 = vmatpush1.bf16.msra.mxu1 %v4324_v28  ;;  %4369 = vmatprep.subr.bf16.mxu0 %v4368_v21  ;;  %v4372_v28 = vpack.c.bf16 %v3631_v26, %v3629_v25  ;;  %v4396_v21 = vpack.c.bf16 %v744_v19, %v742_v18  ;;  %v746_v25 = vld [vmem:[%s6808_s5 + $0xa8] sm:$0xff]  ;;  %v748_v26 = vld [vmem:[%s6808_s5 + $0xb8] sm:$0xff]  ;;  %v1061_v15 = vld [vmem:[%s6809_s6] sm:$0x3] }
 0x19b   :  { %4326 = vmatprep.subr.bf16.mxu1 %v4972_v24  ;;  %v1066_v17 = vrot.slane %v1061_v15, %v5196_v58  ;;  %v1070_v18 = vrot.slane %v1061_v15, %v5201_v60  ;;  %v1215_v15 = vld [vmem:[%s6811_s8 + $0x50] sm:$0xff] }
 0x19d   :  { %4371 = vmatpush1.bf16.msra.mxu0 %v4370_v27  ;;  %v4398_v27 = vpack.c.bf16 %v743_v23, %v741_v22 }
 0x19e   :  { %4328 = vmatpush1.bf16.msra.mxu1 %v4327_v31  ;;  %v4374_v31 = vpack.c.bf16 %v3630_v30, %v3628_v29  ;;  %4373 = vmatprep.subr.bf16.mxu0 %v4372_v28  ;;  %v4400_v28 = vpack.c.bf16 %v748_v26, %v746_v25  ;;  %v745_v29 = vld [vmem:[%s6808_s5 + $0xa0] sm:$0xff]  ;;  %v747_v30 = vld [vmem:[%s6808_s5 + $0xb0] sm:$0xff] }
 0x19f   :  { %4329 = vmatprep.subr.bf16.mxu1 %v4972_v24 }
 0x1a1   :  { %4375 = vmatpush1.bf16.msra.mxu0 %v4374_v31  ;;  %v4402_v31 = vpack.c.bf16 %v747_v30, %v745_v29 }
 0x1a2   :  { %4331 = vmatpush1.bf16.msra.mxu1 %v4330_v34 }
 0x1a3   :  { %4332 = vmatprep.subr.bf16.mxu1 %v4972_v24 }
 0x1a6   :  { %4334 = vmatpush1.bf16.msra.mxu1 %v4333_v37  ;;  %v3635_v37 = vld [vmem:[%s6808_s5 + $0x188] sm:$0xff] }
 0x1a7   :  { %4335 = vmatprep.subr.bf16.mxu1 %v4972_v24  ;;  %v4376_v38 = vpack.c.bf16 %v3635_v37, %v3633_v36  ;;  %v3644_v36 = vld [vmem:[%s6808_s5 + $0x1b0] sm:$0xff]  ;;  %v3647_v37 = vld [vmem:[%s6808_s5 + $0x1c8] sm:$0xff] }
 0x1a9   :  { %4377 = vmatprep.subr.bf16.mxu0 %v4376_v38  ;;  %v3649_v38 = vld [vmem:[%s6808_s5 + $0x1d8] sm:$0xff] }
 0x1aa   :  { %4337 = vmatpush1.bf16.msra.mxu1 %v4336_v40  ;;  %v3634_v40 = vld [vmem:[%s6808_s5 + $0x180] sm:$0xff] }
 0x1ab   :  { %4338 = vmatprep.subr.bf16.mxu1 %v4972_v24  ;;  %v4378_v41 = vpack.c.bf16 %v3634_v40, %v3632_v39  ;;  %v749_v39 = vld [vmem:[%s6808_s5 + $0xc0] sm:$0xff] }
 0x1ad   :  { %4379 = vmatpush1.bf16.msra.mxu0 %v4378_v41 }
 0x1ae   :  { %4340 = vmatpush1.bf16.msra.mxu1 %v4339_v43  ;;  %v726_v43 = vld [vmem:[%s6808_s5 + $0x8] sm:$0xff]  ;;  %812 = vmatprep.subr.mxu0 %v3637_v42  ;;  %v4408_v42 = vpack.c.bf16 %v3649_v38, %v3647_v37 }
 0x1af   :  { %4341 = vmatprep.subr.bf16.mxu1 %v4972_v24 }
 0x1b1   :  { %813 = vmatpush1.msra.mxu0 %v3636_v45  ;;  %v3651_v45 = vld [vmem:[%s6808_s5 + $0x1e8] sm:$0xff] }
 0x1b2   :  { %4343 = vmatpush1.bf16.msra.mxu1 %v4342_v46  ;;  %v4380_v46 = vpack.c.bf16 %v728_v44, %v726_v43  ;;  %v3646_v43 = vld [vmem:[%s6808_s5 + $0x1c0] sm:$0xff]  ;;  %v3648_v44 = vld [vmem:[%s6808_s5 + $0x1d0] sm:$0xff] }
 0x1b3   :  { %4344 = vmatprep.subr.bf16.mxu1 %v4972_v24 }
 0x1b4   :  { %4381 = vmatprep.subr.bf16.mxu0 %v4380_v46  ;;  %v3653_v46 = vld [vmem:[%s6808_s5 + $0x1f8] sm:$0xff] }
 0x1b6   :  { %4346 = vmatpush1.bf16.msra.mxu1 %v4345_v49  ;;  %v725_v49 = vld [vmem:[%s6808_s5] sm:$0xff] }
 0x1b7   :  { %4347 = vmatprep.subr.bf16.mxu1 %v4972_v24  ;;  %v4382_v54 = vpack.c.bf16 %v727_v50, %v725_v49  ;;  %v4412_v49 = vpack.c.bf16 %v3653_v46, %v3651_v45  ;;  %v3650_v50 = vld [vmem:[%s6808_s5 + $0x1e0] sm:$0xff] }
 0x1ba   :  { %4349 = vmatpush1.bf16.msra.mxu1 %v4348_v52  ;;  %v732_v52 = vld [vmem:[%s6808_s5 + $0x38] sm:$0xff] }
 0x1bb   :  { %4350 = vmatprep.subr.bf16.mxu1 %v4972_v24  ;;  %v4384_v62 = vpack.c.bf16 %v732_v52, %v730_v51  ;;  %v3652_v51 = vld [vmem:[%s6808_s5 + $0x1f0] sm:$0xff]  ;;  %v3655_v52 = vld [vmem:[%s6808_s5 + $0x208] sm:$0xff] }
 0x1be   :  { %4352 = vmatpush1.bf16.msra.mxu1 %v4351_v55 }
 0x1bf   :  { %4353 = vmatprep.subr.bf16.mxu1 %v4972_v24 }
 0x1c2   :  { %4355 = vmatpush1.bf16.msra.mxu1 %v4354_v59 }
 0x1c3   :  { %698 = vmatprep.subr.mxu1 %v4969_v7 }
 0x1c6   :  { %699 = vmatpush1.msra.mxu1 %v642_v61 }
 0x268   :  { %v607_v32 = vpop.f32.mrb[0].mxu1 }
 0x269   :  { %v609_v33 = vpop.f32.mrb[1].mxu1 }
 0x26a   :  { %3610 = vmatprep.mubr.msk.f32.mxu1 %vm643_vm10, %v609_v33  ;;  %v3643_v33 = vld [vmem:[%s6808_s5 + $0x1a8] sm:$0xff] }
 0x26b   :  { %715 = vmatmul.mubr.f32.vlgmr.msra.gmra.mrb[4].mxu1 %v607_v32  ;;  %v750_v32 = vld [vmem:[%s6808_s5 + $0xc8] sm:$0xff] }
 0x26c   :  { %v613_v34 = vpop.f32.mrb[2].mxu1 }
 0x26d   :  { %v615_v35 = vpop.f32.mrb[3].mxu1 }
 0x26e   :  { %3611 = vmatprep.mubr.msk.f32.mxu1 %vm643_vm10, %v615_v35  ;;  %v3642_v35 = vld [vmem:[%s6808_s5 + $0x1a0] sm:$0xff] }
 0x26f   :  { %720 = vmatmul.mubr.f32.gmra.mrb[6].mxu1 %v613_v34  ;;  %v3645_v34 = vld [vmem:[%s6808_s5 + $0x1b8] sm:$0xff]  ;;  %v4406_v41 = vpack.c.bf16 %v3644_v36, %v3642_v35 }
 0x270   :  { %1198 = vmatprep.mubr.f32.mxu1 %v4969_v7  ;;  %v4404_v40 = vpack.c.bf16 %v3645_v34, %v3643_v33 }
 0x33e   :  { %v5412_v47 = vpop.f32.mrb[4].mxu1 }
 0x33f   :  { %v718_v48 = vpop.f32.mrb[5].mxu1  ;;  %v780_v55 = vrot.slane %v5412_v47, 1  ;;  %v973_v56 = vrot.slane %v5412_v47, 2 }
 0x340   :  { %v4410_v48 = vpack.c.bf16 %v3648_v44, %v3646_v43 }
 0x342   :  { %v5426_v53 = vpop.f32.mrb[6].mxu1 }
 0x343   :  { %v781_v57 = vrot.slane %v5426_v53, 1  ;;  %v974_v59 = vrot.slane %v5426_v53, 2  ;;  %v723_v61 = vpop.f32.mrb[7].mxu1 }
 0x344   :  { %v3659_v61 = vld [vmem:[%s6808_s5 + $0x228] sm:$0xff] }
 0x345   :  { %v782_v1 = vsel %vm70_vm3, %v780_v55, %v781_v57  ;;  %v5442_v2 = vsel %vm295_vm5, %v973_v56, %v974_v59  ;;  %v3654_v56 = vld [vmem:[%s6808_s5 + $0x200] sm:$0xff] }
 0x346   :  { %3638 = vmatmul.mubr.msk.f32.vlgmr.msra.gmra.mrb[8].mxu0 %vm783_vm11, %v782_v1  ;;  %v3658_v1 = vld [vmem:[%s6808_s5 + $0x220] sm:$0xff] }
 0x347   :  { %4383 = vmatpush1.bf16.msra.mxu0 %v4382_v54  ;;  %858 = vmatprep.mubr.f32.mxu0 %v4969_v7  ;;  %v4414_v54 = vpack.c.bf16 %v3652_v51, %v3650_v50 }
 0x348   :  { %4385 = vmatprep.subr.bf16.mxu0 %v4384_v62  ;;  %v3661_v62 = vld [vmem:[%s6808_s5 + $0x238] sm:$0xff] }
 0x349   :  { %v4420_v0 = vpack.c.bf16 %v3661_v62, %v3659_v61  ;;  %v1122_v62 = vld [vmem:[%s6810_s7] sm:$0x1f] }
 0x34a   :  { %3639 = vmatmul.mubr.msk.f32.gmra.mrb[10].mxu0 %vm783_vm11, %v781_v57  ;;  %v3656_v57 = vld [vmem:[%s6808_s5 + $0x210] sm:$0xff] }
 0x34b   :  { %4387 = vmatpush1.bf16.msra.mxu0 %v4386_v5  ;;  %933 = vmatprep.mubr.f32.mxu0 %v4969_v7  ;;  %v4418_v63 = vpack.c.bf16 %v3656_v57, %v3654_v56  ;;  %v3665_v5 = vld [vmem:[%s6808_s5 + $0x258] sm:$0xff]  ;;  %v1205_v56 = vld [vmem:[%s6811_s8] sm:$0xff]  ;;  %v1206_v57 = vld [vmem:[%s6811_s8 + $0x8] sm:$0xff] }
 0x34c   :  { %4389 = vmatprep.subr.bf16.mxu0 %v4388_v6  ;;  %v4422_v6 = vpack.c.bf16 %v3660_v3, %v3658_v1  ;;  %v4424_v8 = vpack.c.bf16 %v3665_v5, %v3663_v4  ;;  %v1208_v1 = vld [vmem:[%s6811_s8 + $0x18] sm:$0xff]  ;;  %v1209_v4 = vld [vmem:[%s6811_s8 + $0x20] sm:$0xff]  ;;  %v1210_v5 = vld [vmem:[%s6811_s8 + $0x28] sm:$0xff] }
 0x34f   :  { %4391 = vmatpush1.bf16.msra.mxu0 %v4390_v13  ;;  %v3667_v13 = vld [vmem:[%s6808_s5 + $0x268] sm:$0xff] }
 0x350   :  { %4393 = vmatprep.subr.bf16.mxu0 %v4392_v14  ;;  %v3666_v14 = vld [vmem:[%s6808_s5 + $0x260] sm:$0xff] }
 0x353   :  { %4395 = vmatpush1.bf16.msra.mxu0 %v4394_v20 }
 0x354   :  { %4397 = vmatprep.subr.bf16.mxu0 %v4396_v21 }
 0x357   :  { %4399 = vmatpush1.bf16.msra.mxu0 %v4398_v27 }
 0x358   :  { %4401 = vmatprep.subr.bf16.mxu0 %v4400_v28 }
 0x35b   :  { %4403 = vmatpush1.bf16.msra.mxu0 %v4402_v31 }
 0x35c   :  { %893 = vmatprep.subr.mxu0 %v750_v32 }
 0x35f   :  { %894 = vmatpush1.msra.mxu0 %v749_v39 }
 0x360   :  { %3640 = vmatmul.mubr.msk.f32.vlgmr.msra.gmra.mrb[8].mxu0 %vm783_vm11, %v5412_v47  ;;  %4405 = vmatprep.subr.bf16.mxu0 %v4404_v40  ;;  %v3657_v47 = vld [vmem:[%s6808_s5 + $0x218] sm:$0xff] }
 0x361   :  { %4407 = vmatpush1.bf16.msra.mxu0 %v4406_v41  ;;  %939 = vmatprep.mubr.f32.mxu0 %v4969_v7  ;;  %v4416_v55 = vpack.c.bf16 %v3657_v47, %v3655_v52 }
 0x362   :  { %4409 = vmatprep.subr.bf16.mxu0 %v4408_v42 }
 0x364   :  { %3641 = vmatmul.mubr.msk.f32.gmra.mrb[10].mxu0 %vm783_vm11, %v5426_v53 }
 0x365   :  { %4411 = vmatpush1.bf16.msra.mxu0 %v4410_v48  ;;  %1044 = vmatprep.mubr.f32.mxu0 %v4969_v7 }
 0x366   :  { %4413 = vmatprep.subr.bf16.mxu0 %v4412_v49 }
 0x369   :  { %4415 = vmatpush1.bf16.msra.mxu0 %v4414_v54 }
 0x36a   :  { %4417 = vmatprep.subr.bf16.mxu0 %v4416_v55 }
 0x36d   :  { %4419 = vmatpush1.bf16.msra.mxu0 %v4418_v63  ;;  %v4435_v63 = vpack.c.bf16 %v1206_v57, %v1205_v56  ;;  %v3680_v57 = vld [vmem:[%s6812_s9 + $0x80] sm:$0xff] }
 0x36e   :  { %4421 = vmatprep.subr.bf16.mxu0 %v4420_v0  ;;  %v1207_v0 = vld [vmem:[%s6811_s8 + $0x10] sm:$0xff] }
 0x36f   :  { %v4438_v3 = vpack.c.bf16 %v1208_v1, %v1207_v0  ;;  %v3683_v0 = vld [vmem:[%s6812_s9 + $0x98] sm:$0xff] }
 0x371   :  { %4423 = vmatpush1.bf16.msra.mxu0 %v4422_v6  ;;  %v4441_v6 = vpack.c.bf16 %v1210_v5, %v1209_v4  ;;  %v3698_v4 = vld [vmem:[%s6812_s9 + $0xf8] sm:$0xff]  ;;  %v3686_v5 = vld [vmem:[%s6812_s9 + $0xa0] sm:$0xff] }
 0x372   :  { %4425 = vmatprep.subr.bf16.mxu0 %v4424_v8  ;;  %v1211_v8 = vld [vmem:[%s6811_s8 + $0x30] sm:$0xff] }
 0x373   :  { %v4444_v11 = vpack.c.bf16 %v1212_v9, %v1211_v8  ;;  %v3699_v9 = vld [vmem:[%s6812_s9 + $0x100] sm:$0xff] }
 0x375   :  { %4427 = vmatpush1.bf16.msra.mxu0 %v4426_v12  ;;  %v1213_v12 = vld [vmem:[%s6811_s8 + $0x40] sm:$0xff] }
 0x376   :  { %1004 = vmatprep.subr.mxu0 %v3667_v13  ;;  %v1214_v13 = vld [vmem:[%s6811_s8 + $0x48] sm:$0xff] }
 0x379   :  { %1005 = vmatpush1.msra.mxu0 %v3666_v14  ;;  %v4447_v14 = vpack.c.bf16 %v1214_v13, %v1213_v12 }
 0x37a   :  { %3668 = vmatmul.mubr.msk.f32.vlgmr.msra.gmra.mrb[8].mxu0 %vm783_vm11, %v5442_v2  ;;  %4479 = vmatprep.subr.bf16.mxu0 %v4972_v24 }
 0x37b   :  { %1050 = vmatprep.mubr.f32.mxu0 %v4969_v7 }
 0x37e   :  { %3669 = vmatmul.mubr.msk.f32.gmra.mrb[10].mxu0 %vm783_vm11, %v974_v59 }
 0x37f   :  { %4047 = vmatprep.mubr.msk.f32.mxu0 %vm4974_vm1, %v4969_v7 }
 0x44d   :  { %v1046_v19 = vpop.f32.mrb[8].mxu0 }
 0x44e   :  { %v1073_v20 = vadd.f32 %v1066_v17, %v1046_v19  ;;  %v1048_v21 = vpop.f32.mrb[9].mxu0  ;;  %v1217_v19 = vld [vmem:[%s6811_s8 + $0x60] sm:$0xff] }
 0x44f   :  { %v1074_v2 = vadd.f32 %v1070_v18, %v1048_v21 }
 0x450   :  { %v1077_v22 = vmax.f32 %v1073_v20, 0.0  ;;  %v1218_v20 = vld [vmem:[%s6811_s8 + $0x68] sm:$0xff] }
 0x451   :  { %v1078_v23 = vmax.f32 %v1074_v2, 0.0  ;;  %v1052_v25 = vpop.f32.mrb[10].mxu0  ;;  %v4453_v21 = vpack.c.bf16 %v1218_v20, %v1217_v19  ;;  %v1219_v2 = vld [vmem:[%s6811_s8 + $0x70] sm:$0xff] }
 0x452   :  { %v1075_v26 = vadd.f32 %v1066_v17, %v1052_v25  ;;  %v1054_v27 = vpop.f32.mrb[11].mxu0  ;;  %v1216_v17 = vld [vmem:[%s6811_s8 + $0x58] sm:$0xff]  ;;  %v1221_v25 = vld [vmem:[%s6811_s8 + $0x80] sm:$0xff]  ;;  %v3701_v20 = vld [vmem:[%s6812_s9 + $0x110] sm:$0xff] }
 0x453   :  { %v4905_v53 = vpack.i.bf16 %v1078_v23, %v1077_v22  ;;  %v1076_v28 = vadd.f32 %v1070_v18, %v1054_v27  ;;  %v4450_v18 = vpack.c.bf16 %v1216_v17, %v1215_v15  ;;  %v3688_v17 = vld [vmem:[%s6812_s9 + $0xb0] sm:$0xff] }
 0x454   :  { %v1079_v59 = vmax.f32 %v1075_v26, 0.0  ;;  %v1222_v26 = vld [vmem:[%s6811_s8 + $0x88] sm:$0xff] }
 0x455   :  { %v1080_v29 = vmax.f32 %v1076_v28, 0.0  ;;  %4906 = vrot.lane.b32.xlu0 %v4905_v53, %s4973_s20  ;;  %v4459_v27 = vpack.c.bf16 %v1222_v26, %v1221_v25  ;;  %v1223_v53 = vld [vmem:[%s6811_s8 + $0x90] sm:$0xff]  ;;  %v1224_v28 = vld [vmem:[%s6811_s8 + $0x98] sm:$0xff]  ;;  %v3703_v26 = vld [vmem:[%s6812_s9 + $0x120] sm:$0xff] }
 0x457   :  { %v4910_v30 = vpack.i.bf16 %v1080_v29, %v1079_v59 }
 0x459   :  { %4911 = vrot.lane.b32.xlu1 %v4910_v30, %s4973_s20  ;;  %v1300_v30 = vld [vmem:[%s6812_s9 + $0x8] sm:$0xff] }
 0x4c7   :  { %v4907_v31 = vpop.permute.xlu0 %4906 }
 0x4c8   :  { %v4909_v32 = vunpack.i.h.bf16 %v4907_v31  ;;  %v4908_v33 = vunpack.i.l.bf16 %v4907_v31 }
 0x4ca   :  { %v1094_v34 = vsel %vm1093_vm12, %v4908_v33, %v4909_v32  ;;  %v1101_v36 = vmax.f32 %v1078_v23, %v4909_v32  ;;  %v1301_v32 = vld [vmem:[%s6812_s9 + $0x10] sm:$0xff]  ;;  %v1302_v33 = vld [vmem:[%s6812_s9 + $0x18] sm:$0xff] }
 0x4cb   :  { %v4912_v35 = vpop.permute.xlu1 %4911  ;;  %v1100_v39 = vmax.f32 %v1077_v22, %v1094_v34  ;;  %v1220_v22 = vld [vmem:[%s6811_s8 + $0x78] sm:$0xff]  ;;  %v4483_v34 = vpack.c.bf16 %v1302_v33, %v1301_v32  ;;  %v3694_v33 = vld [vmem:[%s6812_s9 + $0xe0] sm:$0xff] }
 0x4cc   :  { %v4914_v37 = vunpack.i.h.bf16 %v4912_v35  ;;  %v4913_v38 = vunpack.i.l.bf16 %v4912_v35  ;;  %v1111_v43 = vrot.slane %v1101_v36, 1  ;;  %v4456_v23 = vpack.c.bf16 %v1220_v22, %v1219_v2  ;;  %v1303_v35 = vld [vmem:[%s6812_s9 + $0x20] sm:$0xff] }
 0x4cd   :  { %v1108_v45 = vrot.slane %v1100_v39, 1  ;;  %v3690_v22 = vld [vmem:[%s6812_s9 + $0xc0] sm:$0xff] }
 0x4ce   :  { %v1103_v40 = vmax.f32 %v1080_v29, %v4914_v37  ;;  %v1095_v41 = vsel %vm1093_vm12, %v4913_v38, %v4914_v37  ;;  %v1299_v29 = vld [vmem:[%s6812_s9] sm:$0xff]  ;;  %v1305_v38 = vld [vmem:[%s6812_s9 + $0x30] sm:$0xff] }
 0x4cf   :  { %v1102_v42 = vmax.f32 %v1079_v59, %v1095_v41  ;;  %v4462_v59 = vpack.c.bf16 %v1224_v28, %v1223_v53  ;;  %v4480_v31 = vpack.c.bf16 %v1300_v30, %v1299_v29  ;;  %v1307_v41 = vld [vmem:[%s6812_s9 + $0x40] sm:$0xff]  ;;  %v3692_v28 = vld [vmem:[%s6812_s9 + $0xd0] sm:$0xff] }
 0x4d0   :  { %v1112_v44 = vrot.slane %v1103_v40, 1  ;;  %v3705_v30 = vld [vmem:[%s6812_s9 + $0x130] sm:$0xff] }
 0x4d1   :  { %v1109_v46 = vrot.slane %v1102_v42, 1  ;;  %4481 = vmatpush3.bf16.msra.mxu0 %v4480_v31  ;;  %v3706_v31 = vld [vmem:[%s6812_s9 + $0x138] sm:$0xff] }
 0x4d2   :  { %v1113_v48 = vsel %vm70_vm3, %v1111_v43, %v1112_v44  ;;  %v1121_v49 = vmax.f32 %v1103_v40, %v1112_v44  ;;  %4482 = vmatprep.subr.bf16.mxu0 %v4972_v24  ;;  %v3674_v44 = vld [vmem:[%s6812_s9 + $0x50] sm:$0xff] }
 0x4d3   :  { %v1110_v50 = vsel %vm70_vm3, %v1108_v45, %v1109_v46  ;;  %v1120_v51 = vmax.f32 %v1102_v42, %v1109_v46  ;;  %v1119_v52 = vmax.f32 %v1101_v36, %v1113_v48  ;;  %v1304_v36 = vld [vmem:[%s6812_s9 + $0x28] sm:$0xff]  ;;  %v3675_v45 = vld [vmem:[%s6812_s9 + $0x58] sm:$0xff] }
 0x4d4   :  { %v1118_v47 = vmax.f32 %v1100_v39, %v1110_v50  ;;  %v4486_v37 = vpack.c.bf16 %v1304_v36, %v1303_v35  ;;  %v1306_v39 = vld [vmem:[%s6812_s9 + $0x38] sm:$0xff]  ;;  %v1308_v42 = vld [vmem:[%s6812_s9 + $0x48] sm:$0xff]  ;;  %v4465_v48 = vpack.c.bf16 %v3675_v45, %v3674_v44  ;;  %v3676_v50 = vld [vmem:[%s6812_s9 + $0x60] sm:$0xff]  ;;  %v4522_v35 = vpack.c.bf16 %v3706_v31, %v3705_v30 }
 0x4d5   :  { %v4428_v55 = vpack.c.bf16 %v1121_v49, %v1119_v52  ;;  %4484 = vmatpush3.bf16.msra.mxu0 %v4483_v34  ;;  %v4489_v40 = vpack.c.bf16 %v1306_v39, %v1305_v38  ;;  %v4492_v43 = vpack.c.bf16 %v1308_v42, %v1307_v41  ;;  %v3695_v34 = vld [vmem:[%s6812_s9 + $0xe8] sm:$0xff]  ;;  %v3710_v42 = vld [vmem:[%s6812_s9 + $0x150] sm:$0xff]  ;;  %v3712_v45 = vld [vmem:[%s6812_s9 + $0x160] sm:$0xff] }
 0x4d6   :  { %v4431_v61 = vpack.c.bf16 %v1120_v51, %v1118_v47  ;;  %4485 = vmatprep.subr.bf16.mxu0 %v4972_v24  ;;  %v3677_v51 = vld [vmem:[%s6812_s9 + $0x68] sm:$0xff]  ;;  %v3678_v47 = vld [vmem:[%s6812_s9 + $0x70] sm:$0xff]  ;;  %v4507_v36 = vpack.c.bf16 %v3695_v34, %v3694_v33  ;;  %v3747_v30 = vld [vmem:[%s6804_s1 + $0x98] sm:$0xff] }
 0x4d7   :  { %4430 = vmatprep.subr.msk.bf16.mxu1 %vm5605_vm14, %v4428_v55  ;;  %v4468_v52 = vpack.c.bf16 %v3677_v51, %v3676_v50  ;;  %v3679_v55 = vld [vmem:[%s6812_s9 + $0x78] sm:$0xff]  ;;  %v3709_v38 = vld [vmem:[%s6812_s9 + $0x148] sm:$0xff] }
 0x4d8   :  { %4433 = vmatpush1.bf16.msk.msra.mxu1 %vm5605_vm14, %v4431_v61  ;;  %v4471_v56 = vpack.c.bf16 %v3679_v55, %v3678_v47  ;;  %v3681_v61 = vld [vmem:[%s6812_s9 + $0x88] sm:$0xff]  ;;  %v3715_v50 = vld [vmem:[%s6812_s9 + $0x178] sm:$0xff] }
 0x4d9   :  { %4434 = vmatprep.subr.bf16.mxu1 %v4972_v24  ;;  %4487 = vmatpush3.bf16.msra.mxu0 %v4486_v37  ;;  %v3708_v37 = vld [vmem:[%s6812_s9 + $0x140] sm:$0xff]  ;;  %v3717_v47 = vld [vmem:[%s6812_s9 + $0x188] sm:$0xff] }
 0x4da   :  { %4488 = vmatprep.subr.bf16.mxu0 %v4972_v24  ;;  %v3725_v55 = vld [vmem:[%s6804_s1 + $0x48] sm:$0xff] }
 0x4db   :  { %3672 = vmatmul.mubr.msk.f32.vlgmr.msra.gmra.mrb[8].mxu1 %vm1123_vm15, %v1122_v62  ;;  %v4474_v62 = vpack.c.bf16 %v3681_v61, %v3680_v57 }
 0x4dc   :  { %4436 = vmatpush1.bf16.msra.mxu1 %v4435_v63  ;;  %v3682_v63 = vld [vmem:[%s6812_s9 + $0x90] sm:$0xff] }
 0x4dd   :  { %4437 = vmatprep.subr.bf16.mxu1 %v4972_v24  ;;  %4490 = vmatpush3.bf16.msra.mxu0 %v4489_v40  ;;  %v4477_v1 = vpack.c.bf16 %v3683_v0, %v3682_v63  ;;  %v4525_v40 = vpack.c.bf16 %v3709_v38, %v3708_v37  ;;  %v3726_v63 = vld [vmem:[%s6804_s1 + $0x50] sm:$0xff]  ;;  %v3729_v0 = vld [vmem:[%s6804_s1 + $0x68] sm:$0xff] }
 0x4de   :  { %4491 = vmatprep.subr.bf16.mxu0 %v4972_v24  ;;  %v3746_v37 = vld [vmem:[%s6804_s1 + $0x90] sm:$0xff]  ;;  %v3749_v38 = vld [vmem:[%s6804_s1 + $0xa8] sm:$0xff] }
 0x4e0   :  { %4439 = vmatpush1.bf16.msra.mxu1 %v4438_v3  ;;  %v3697_v3 = vld [vmem:[%s6812_s9 + $0xf0] sm:$0xff] }
 0x4e1   :  { %4440 = vmatprep.subr.bf16.mxu1 %v4972_v24  ;;  %4493 = vmatpush3.bf16.msra.mxu0 %v4492_v43  ;;  %v4510_v8 = vpack.c.bf16 %v3698_v4, %v3697_v3  ;;  %v3711_v43 = vld [vmem:[%s6812_s9 + $0x158] sm:$0xff]  ;;  %v3728_v4 = vld [vmem:[%s6804_s1 + $0x60] sm:$0xff] }
 0x4e2   :  { %4509 = vmatprep.subr.bf16.mxu0 %v4972_v24  ;;  %v4528_v44 = vpack.c.bf16 %v3711_v43, %v3710_v42  ;;  %v3748_v42 = vld [vmem:[%s6804_s1 + $0xa0] sm:$0xff]  ;;  %v3750_v43 = vld [vmem:[%s6804_s1 + $0xb0] sm:$0xf] }
 0x4e4   :  { %4442 = vmatpush1.bf16.msra.mxu1 %v4441_v6  ;;  %v3687_v6 = vld [vmem:[%s6812_s9 + $0xa8] sm:$0xff] }
 0x4e5   :  { %4443 = vmatprep.subr.bf16.mxu1 %v4972_v24  ;;  %v4495_v13 = vpack.c.bf16 %v3687_v6, %v3686_v5 }
 0x4e8   :  { %4445 = vmatpush1.bf16.msra.mxu1 %v4444_v11  ;;  %v3700_v11 = vld [vmem:[%s6812_s9 + $0x108] sm:$0xff] }
 0x4e9   :  { %4446 = vmatprep.subr.bf16.mxu1 %v4972_v24  ;;  %v4513_v19 = vpack.c.bf16 %v3700_v11, %v3699_v9  ;;  %v5913_v9 = vld [vmem:[%s6803_s0 + $0x20] sm:$0xff]  ;;  %v5918_v11 = vld [vmem:[%s6803_s0 + $0x28] sm:$0xff] }
 0x4ec   :  { %4448 = vmatpush1.bf16.msra.mxu1 %v4447_v14 }
 0x4ed   :  { %4449 = vmatprep.subr.bf16.mxu1 %v4972_v24 }
 0x4f0   :  { %4451 = vmatpush1.bf16.msra.mxu1 %v4450_v18  ;;  %v3689_v18 = vld [vmem:[%s6812_s9 + $0xb8] sm:$0xff] }
 0x4f1   :  { %4452 = vmatprep.subr.bf16.mxu1 %v4972_v24  ;;  %v4498_v2 = vpack.c.bf16 %v3689_v18, %v3688_v17  ;;  %v1837_v17 = vrot.slane %v5918_v11, 1  ;;  %v5935_v18 = vld [vmem:[%s6803_s0 + $0x30] sm:$0xff] }
 0x4f4   :  { %4454 = vmatpush1.bf16.msra.mxu1 %v4453_v21  ;;  %v3702_v21 = vld [vmem:[%s6812_s9 + $0x118] sm:$0xff] }
 0x4f5   :  { %4455 = vmatprep.subr.bf16.mxu1 %v4972_v24  ;;  %v4516_v25 = vpack.c.bf16 %v3702_v21, %v3701_v20  ;;  %v1816_v20 = vld [vmem:[%s6804_s1] sm:$0xff]  ;;  %v1818_v21 = vld [vmem:[%s6804_s1 + $0x10] sm:$0xff] }
 0x4f8   :  { %4457 = vmatpush1.bf16.msra.mxu1 %v4456_v23  ;;  %v3691_v23 = vld [vmem:[%s6812_s9 + $0xc8] sm:$0xff] }
 0x4f9   :  { %4458 = vmatprep.subr.bf16.mxu1 %v4972_v24  ;;  %v4501_v53 = vpack.c.bf16 %v3691_v23, %v3690_v22  ;;  %v1823_v22 = vld [vmem:[%s6804_s1 + $0x38] sm:$0xf] }
 0x4fc   :  { %4460 = vmatpush1.bf16.msra.mxu1 %v4459_v27  ;;  %v3704_v27 = vld [vmem:[%s6812_s9 + $0x128] sm:$0xff] }
 0x4fd   :  { %4461 = vmatprep.subr.bf16.mxu1 %v4972_v24  ;;  %v4519_v29 = vpack.c.bf16 %v3704_v27, %v3703_v26  ;;  %v4566_v26 = vpack.c.bf16 %v1818_v21, %v1816_v20  ;;  %v3723_v27 = vld [vmem:[%s6803_s0 + $0x38] sm:$0xf] }
 0x500   :  { %4463 = vmatpush1.bf16.msra.mxu1 %v4462_v59  ;;  %v3693_v59 = vld [vmem:[%s6812_s9 + $0xd8] sm:$0xff] }
 0x501   :  { %4464 = vmatprep.subr.bf16.mxu1 %v4972_v24  ;;  %v4504_v32 = vpack.c.bf16 %v3693_v59, %v3692_v28  ;;  %v1820_v28 = vld [vmem:[%s6804_s1 + $0x20] sm:$0xff]  ;;  %v1822_v59 = vld [vmem:[%s6804_s1 + $0x30] sm:$0xf] }
 0x502   :  { %v4571_v33 = vpack.c.bf16 %v1822_v59, %v1820_v28 }
 0x5ae   :  { %v1200_v46 = vpop.f32.mrb[8].mxu1 }
 0x5af   :  { %v1202_v49 = vpop.f32.mrb[9].mxu1 }
 0x5b0   :  { %3673 = vmatprep.mubr.msk.f32.mxu1 %vm1225_vm0, %v1202_v49  ;;  %v3714_v49 = vld [vmem:[%s6812_s9 + $0x170] sm:$0xff] }
 0x5b1   :  { %1294 = vmatmul.mubr.f32.vlgmr.msra.gmra.mrb[10].mxu1 %v1200_v46  ;;  %v3713_v46 = vld [vmem:[%s6812_s9 + $0x168] sm:$0xff]  ;;  %v4534_v51 = vpack.c.bf16 %v3715_v50, %v3714_v49  ;;  %v2060_v49 = vrot.slane %v5935_v18, 2  ;;  %v2062_v50 = vrot.slane %v3723_v27, 2 }
 0x5b2   :  { %4466 = vmatpush3.bf16.msra.mxu1 %v4465_v48  ;;  %4024 = vmatprep.mubr.msk.f32.mxu1 %vm4974_vm1, %v4969_v7  ;;  %v4531_v48 = vpack.c.bf16 %v3713_v46, %v3712_v45  ;;  %v2057_v45 = vrot.slane %v5913_v9, 2  ;;  %v2058_v46 = vrot.slane %v5918_v11, 2 }
 0x5b3   :  { %4467 = vmatprep.subr.bf16.mxu1 %v4972_v24 }
 0x5b4   :  { %v2061_v10 = vsel %vm295_vm5, %v2058_v46, %v2060_v49 }
 0x5b6   :  { %4469 = vmatpush3.bf16.msra.mxu1 %v4468_v52  ;;  %v3716_v52 = vld [vmem:[%s6812_s9 + $0x180] sm:$0xff] }
 0x5b7   :  { %4470 = vmatprep.subr.bf16.mxu1 %v4972_v24  ;;  %v4537_v57 = vpack.c.bf16 %v3717_v47, %v3716_v52  ;;  %v1725_v52 = vld [vmem:[%s6814_s11] sm:$0xff]  ;;  %v1726_v47 = vld [vmem:[%s6814_s11 + $0x8] sm:$0xff] }
 0x5ba   :  { %4472 = vmatpush3.bf16.msra.mxu1 %v4471_v56  ;;  %v3727_v56 = vld [vmem:[%s6804_s1 + $0x58] sm:$0xff] }
 0x5bb   :  { %4473 = vmatprep.subr.bf16.mxu1 %v4972_v24  ;;  %v4554_v61 = vpack.c.bf16 %v3727_v56, %v3725_v55  ;;  %v1727_v55 = vld [vmem:[%s6814_s11 + $0x10] sm:$0xff]  ;;  %v4540_v56 = vpack.c.bf16 %v1726_v47, %v1725_v52 }
 0x5be   :  { %4475 = vmatpush3.bf16.msra.mxu1 %v4474_v62  ;;  %v3724_v62 = vld [vmem:[%s6804_s1 + $0x40] sm:$0xff] }
 0x5bf   :  { %4476 = vmatprep.subr.bf16.mxu1 %v4972_v24  ;;  %v4556_v3 = vpack.c.bf16 %v3726_v63, %v3724_v62  ;;  %v1729_v62 = vld [vmem:[%s6814_s11 + $0x20] sm:$0xff]  ;;  %v1730_v63 = vld [vmem:[%s6814_s11 + $0x28] sm:$0xff] }
 0x5c2   :  { %4478 = vmatpush3.bf16.msra.mxu1 %v4477_v1  ;;  %v3731_v1 = vld [vmem:[%s6804_s1 + $0x78] sm:$0xf] }
 0x5c3   :  { %4494 = vmatprep.subr.bf16.mxu1 %v4972_v24  ;;  %v4558_v6 = vpack.c.bf16 %v3731_v1, %v3729_v0  ;;  %v4546_v0 = vpack.c.bf16 %v1730_v63, %v1729_v62  ;;  %v1731_v1 = vld [vmem:[%s6814_s11 + $0x30] sm:$0xff] }
 0x684   :  { %v5781_v12 = vpop.f32.mrb[10].mxu1 }
 0x685   :  { %v1321_v14 = vrot.slane %v5781_v12, 1  ;;  %v1297_v15 = vpop.f32.mrb[11].mxu1  ;;  %4048 = vmatmul.mubr.msk.f32.vlgmr.msra.gmra.mrb[12].mxu0 %vm1322_vm7, %v5781_v12  ;;  %v1563_v39 = vrot.slane %v5781_v12, 3  ;;  %v1478_v41 = vrot.slane %v5781_v12, 2  ;;  %v1648_v5 = vrot.slane %v5781_v12, 4  ;;  %v1817_v12 = vld [vmem:[%s6804_s1 + $0x8] sm:$0xff] }
 0x686   :  { %4511 = vmatpush3.bf16.msra.mxu0 %v4510_v8  ;;  %4093 = vmatprep.mubr.msk.f32.mxu0 %vm4974_vm1, %v4969_v7  ;;  %v3730_v8 = vld [vmem:[%s6804_s1 + $0x70] sm:$0xf]  ;;  %v1836_v15 = vrot.slane %v5913_v9, 1 }
 0x687   :  { %4025 = vmatmul.mubr.msk.f32.vlgmr.msra.gmra.mrb[12].mxu1 %vm1322_vm7, %v1321_v14  ;;  %4512 = vmatprep.subr.bf16.mxu0 %v4972_v24  ;;  %v4561_v14 = vpack.c.bf16 %v3730_v8, %v3728_v4 }
 0x688   :  { %4496 = vmatpush3.bf16.msra.mxu1 %v4495_v13  ;;  %4070 = vmatprep.mubr.msk.f32.mxu1 %vm4974_vm1, %v4969_v7  ;;  %v1819_v13 = vld [vmem:[%s6804_s1 + $0x18] sm:$0xff]  ;;  %v1838_v23 = vsel %vm70_vm3, %v1836_v15, %v1837_v17 }
 0x689   :  { %4497 = vmatprep.subr.bf16.mxu1 %v4972_v24 }
 0x68a   :  { %4514 = vmatpush3.bf16.msra.mxu0 %v4513_v19  ;;  %v4564_v19 = vpack.c.bf16 %v1819_v13, %v1817_v12 }
 0x68b   :  { %4515 = vmatprep.subr.bf16.mxu0 %v4972_v24 }
 0x68c   :  { %4499 = vmatpush3.bf16.msra.mxu1 %v4498_v2  ;;  %v1821_v2 = vld [vmem:[%s6804_s1 + $0x28] sm:$0xff] }
 0x68d   :  { %4500 = vmatprep.subr.bf16.mxu1 %v4972_v24 }
 0x68e   :  { %4517 = vmatpush3.bf16.msra.mxu0 %v4516_v25  ;;  %v1839_v25 = vrot.slane %v5935_v18, 1 }
 0x68f   :  { %4518 = vmatprep.subr.bf16.mxu0 %v4972_v24 }
 0x690   :  { %4502 = vmatpush3.bf16.msra.mxu1 %v4501_v53  ;;  %v4568_v53 = vpack.c.bf16 %v1823_v22, %v1821_v2  ;;  %v1840_v31 = vsel %vm70_vm3, %v1837_v17, %v1839_v25  ;;  %v1722_v22 = vld [vmem:[%s6813_s10] sm:$0x1] }
 0x691   :  { %4503 = vmatprep.subr.bf16.mxu1 %v4972_v24 }
 0x692   :  { %4520 = vmatpush3.bf16.msra.mxu0 %v4519_v29  ;;  %v3745_v29 = vld [vmem:[%s6804_s1 + $0x88] sm:$0xff] }
 0x693   :  { %4521 = vmatprep.subr.bf16.mxu0 %v4972_v24  ;;  %v4574_v34 = vpack.c.bf16 %v3747_v30, %v3745_v29 }
 0x694   :  { %4505 = vmatpush3.bf16.msra.mxu1 %v4504_v32  ;;  %v1841_v32 = vrot.slane %v3723_v27, 1 }
 0x695   :  { %4506 = vmatprep.subr.bf16.mxu1 %v4972_v24 }
 0x696   :  { %4523 = vmatpush3.bf16.msra.mxu0 %v4522_v35  ;;  %v1842_v35 = vsel %vm70_vm3, %v1839_v25, %v1841_v32 }
 0x697   :  { %4539 = vmatprep.subr.bf16.mxu0 %v4972_v24 }
 0x698   :  { %4508 = vmatpush3.bf16.msra.mxu1 %v4507_v36  ;;  %v3744_v36 = vld [vmem:[%s6804_s1 + $0x80] sm:$0xff] }
 0x699   :  { %4094 = vmatmul.mubr.msk.f32.vlgmr.msra.gmra.mrb[14].mxu0 %vm1322_vm7, %v1563_v39  ;;  %4524 = vmatprep.subr.bf16.mxu1 %v4972_v24  ;;  %v3751_v39 = vld [vmem:[%s6804_s1 + $0xb8] sm:$0xf] }
 0x69a   :  { %4139 = vmatprep.mubr.msk.f32.mxu0 %vm4974_vm1, %v4969_v7  ;;  %4541 = vmatpush3.bf16.msra.mxu0 %v4540_v56 }
 0x69b   :  { %4071 = vmatmul.mubr.msk.f32.vlgmr.msra.gmra.mrb[14].mxu1 %vm1322_vm7, %v1478_v41  ;;  %v4578_v41 = vpack.c.bf16 %v3751_v39, %v3749_v38  ;;  %4542 = vmatprep.subr.bf16.mxu0 %v4972_v24 }
 0x69c   :  { %4526 = vmatpush3.bf16.msra.mxu1 %v4525_v40  ;;  %4116 = vmatprep.mubr.msk.f32.mxu1 %vm4974_vm1, %v4969_v7  ;;  %v4576_v40 = vpack.c.bf16 %v3746_v37, %v3744_v36 }
 0x69d   :  { %4527 = vmatprep.subr.bf16.mxu1 %v4972_v24 }
 0x6a0   :  { %4529 = vmatpush3.bf16.msra.mxu1 %v4528_v44  ;;  %v4581_v44 = vpack.c.bf16 %v3750_v43, %v3748_v42 }
 0x6a1   :  { %4530 = vmatprep.subr.bf16.mxu1 %v4972_v24 }
 0x6a4   :  { %4532 = vmatpush3.bf16.msra.mxu1 %v4531_v48  ;;  %v2059_v48 = vsel %vm295_vm5, %v2057_v45, %v2058_v46 }
 0x6a5   :  { %4533 = vmatprep.subr.bf16.mxu1 %v4972_v24 }
 0x6a8   :  { %4535 = vmatpush3.bf16.msra.mxu1 %v4534_v51  ;;  %v2063_v51 = vsel %vm295_vm5, %v2060_v49, %v2062_v50 }
 0x6a9   :  { %4536 = vmatprep.subr.bf16.mxu1 %v4972_v24 }
 0x6ac   :  { %4538 = vmatpush3.bf16.msra.mxu1 %v4537_v57  ;;  %v1728_v57 = vld [vmem:[%s6814_s11 + $0x18] sm:$0xff] }
 0x6ad   :  { %4555 = vmatprep.subr.bf16.mxu1 %v4554_v61  ;;  %v4543_v61 = vpack.c.bf16 %v1728_v57, %v1727_v55 }
 0x6af   :  { %4117 = vmatmul.mubr.msk.f32.vlgmr.msra.gmra.mrb[16].mxu1 %vm1322_vm7, %v1648_v5  ;;  %4544 = vmatpush3.bf16.msra.mxu0 %v4543_v61  ;;  %v1733_v5 = vld [vmem:[%s6814_s11 + $0x40] sm:$0xff] }
 0x6b0   :  { %4557 = vmatpush1.bf16.msra.mxu1 %v4556_v3  ;;  %1921 = vmatprep.mubr.f32.mxu1 %v4969_v7  ;;  %v1732_v3 = vld [vmem:[%s6814_s11 + $0x38] sm:$0xff] }
 0x6b1   :  { %4560 = vmatprep.subr.msk.bf16.mxu1 %vm5069_vm2, %v4558_v6  ;;  %4545 = vmatprep.subr.bf16.mxu0 %v4972_v24  ;;  %v4549_v4 = vpack.c.bf16 %v1732_v3, %v1731_v1  ;;  %v1734_v6 = vld [vmem:[%s6814_s11 + $0x48] sm:$0xff] }
 0x6b2   :  { %v4552_v8 = vpack.c.bf16 %v1734_v6, %v1733_v5 }
 0x6b3   :  { %4547 = vmatpush3.bf16.msra.mxu0 %v4546_v0 }
 0x6b4   :  { %4563 = vmatpush1.bf16.msk.msra.mxu1 %vm5069_vm2, %v4561_v14  ;;  %4548 = vmatprep.subr.bf16.mxu0 %v4972_v24 }
 0x6b5   :  { %4565 = vmatprep.subr.bf16.mxu1 %v4564_v19 }
 0x6b7   :  { %3734 = vmatmul.mubr.msk.f32.vlgmr.msra.gmra.mrb[18].mxu1 %vm78_vm4, %v1838_v23  ;;  %4550 = vmatpush3.bf16.msra.mxu0 %v4549_v4 }
 0x6b8   :  { %1927 = vmatprep.mubr.f32.mxu1 %v4969_v7  ;;  %4567 = vmatpush1.bf16.msra.mxu1 %v4566_v26 }
 0x6b9   :  { %4570 = vmatprep.subr.msk.bf16.mxu1 %vm5069_vm2, %v4568_v53  ;;  %4551 = vmatprep.subr.bf16.mxu0 %v4972_v24  ;;  %v2175_v53 = vld [vmem:[%s6805_s2] sm:$0x3] }
 0x6ba   :  { %v2180_v28 = vrot.slane %v2175_v53, %v5196_v58  ;;  %v2184_v59 = vrot.slane %v2175_v53, %v5201_v60 }
 0x6bb   :  { %3735 = vmatmul.mubr.msk.f32.gmra.mrb[20].mxu1 %vm78_vm4, %v1840_v31  ;;  %4553 = vmatpush3.bf16.msra.mxu0 %v4552_v8 }
 0x6bc   :  { %1933 = vmatprep.mubr.f32.mxu1 %v4969_v7  ;;  %4573 = vmatpush1.bf16.msk.msra.mxu1 %vm5069_vm2, %v4571_v33 }
 0x6bd   :  { %4575 = vmatprep.subr.bf16.mxu1 %v4574_v34 }
 0x6bf   :  { %3736 = vmatmul.mubr.msk.f32.gmra.mrb[22].mxu1 %vm78_vm4, %v1842_v35 }
 0x6c0   :  { %1939 = vmatprep.mubr.f32.mxu1 %v4969_v7 }
 0x6c3   :  { %3737 = vmatmul.mubr.msk.f32.gmra.mrb[24].mxu1 %vm78_vm4, %v1841_v32 }
 0x6c4   :  { %2024 = vmatprep.mubr.f32.mxu1 %v4969_v7 }
 0x6c7   :  { %3740 = vmatmul.mubr.msk.f32.vlgmr.msra.gmra.mrb[18].mxu1 %vm78_vm4, %v5913_v9 }
 0x6c8   :  { %2030 = vmatprep.mubr.f32.mxu1 %v4969_v7  ;;  %4577 = vmatpush1.bf16.msra.mxu1 %v4576_v40 }
 0x6c9   :  { %4580 = vmatprep.subr.msk.bf16.mxu1 %vm5069_vm2, %v4578_v41 }
 0x6cb   :  { %3741 = vmatmul.mubr.msk.f32.gmra.mrb[20].mxu1 %vm78_vm4, %v5918_v11 }
 0x6cc   :  { %2036 = vmatprep.mubr.f32.mxu1 %v4969_v7  ;;  %4583 = vmatpush1.bf16.msk.msra.mxu1 %vm5069_vm2, %v4581_v44  ;;  %vm1809_vm2 = vcmask 73728  }
 0x6cf   :  { %3742 = vmatmul.mubr.msk.f32.gmra.mrb[22].mxu1 %vm78_vm4, %v5935_v18 }
 0x6d0   :  { %2042 = vmatprep.mubr.f32.mxu1 %v4969_v7 }
 0x6d3   :  { %3743 = vmatmul.mubr.msk.f32.gmra.mrb[24].mxu1 %vm78_vm4, %v3723_v27 }
 0x6d4   :  { %2142 = vmatprep.mubr.f32.mxu1 %v4969_v7 }
 0x6d7   :  { %3754 = vmatmul.mubr.msk.f32.vlgmr.msra.gmra.mrb[18].mxu1 %vm78_vm4, %v2059_v48 }
 0x6d8   :  { %2148 = vmatprep.mubr.f32.mxu1 %v4969_v7 }
 0x6db   :  { %3755 = vmatmul.mubr.msk.f32.gmra.mrb[20].mxu1 %vm78_vm4, %v2061_v10 }
 0x6dc   :  { %2154 = vmatprep.mubr.f32.mxu1 %v4969_v7 }
 0x6df   :  { %3756 = vmatmul.mubr.msk.f32.gmra.mrb[22].mxu1 %vm78_vm4, %v2063_v51 }
 0x6e0   :  { %2160 = vmatprep.mubr.f32.mxu1 %v4969_v7 }
 0x6e3   :  { %3757 = vmatmul.mubr.msk.f32.gmra.mrb[24].mxu1 %vm78_vm4, %v2062_v50 }
 0x6e4   :  { %2607 = vmatprep.mubr.f32.mxu1 %v4969_v7 }
 0x758   :  { %v1463_v9 = vpop.f32.mrb[12].mxu0 }
 0x759   :  { %v4049_v11 = vpop.f32.mrb[13].mxu0 }
 0x75a   :  { %v1391_v12 = vpop.f32.mrb[12].mxu1 }
 0x75b   :  { %v1464_v13 = vadd.f32 %v1463_v9, %v1391_v12  ;;  %v4026_v14 = vpop.f32.mrb[13].mxu1 }
 0x76c   :  { %v1632_v15 = vpop.f32.mrb[14].mxu0 }
 0x76d   :  { %v4095_v17 = vpop.f32.mrb[15].mxu0 }
 0x76e   :  { %v1547_v18 = vpop.f32.mrb[14].mxu1 }
 0x76f   :  { %v1551_v19 = vadd.f32 %v1547_v18, %v1464_v13  ;;  %v4072_v20 = vpop.f32.mrb[15].mxu1 }
 0x771   :  { %v1636_v21 = vadd.f32 %v1632_v15, %v1551_v19 }
 0x782   :  { %v1717_v2 = vpop.f32.mrb[16].mxu1 }
 0x783   :  { %v1721_v23 = vadd.f32 %v1717_v2, %v1636_v21  ;;  %v4118_v25 = vpop.f32.mrb[17].mxu1 }
 0x785   :  { %v1723_v26 = vadd.f32 %v1722_v22, %v1721_v23 }
 0x787   :  { %v1724_v27 = vmax.f32 %v1723_v26, 0.0 }
 0x789   :  { %4140 = vmatmul.mubr.msk.f32.vlgmr.msra.gmra.mrb[16].mxu0 %vm1322_vm7, %v1724_v27 }
 0x78a   :  { %2363 = vmatprep.mubr.f32.mxu0 %v4969_v7 }
 0x7aa   :  { %v2144_v29 = vpop.f32.mrb[18].mxu1 }
 0x7ab   :  { %v2187_v30 = vadd.f32 %v2180_v28, %v2144_v29  ;;  %v2146_v31 = vpop.f32.mrb[19].mxu1 }
 0x7ac   :  { %v2188_v32 = vadd.f32 %v2184_v59, %v2146_v31 }
 0x7ad   :  { %v2195_v33 = vmax.f32 %v2187_v30, 0.0 }
 0x7ae   :  { %v2196_v34 = vmax.f32 %v2188_v32, 0.0  ;;  %v2150_v35 = vpop.f32.mrb[20].mxu1 }
 0x7af   :  { %v2189_v36 = vadd.f32 %v2180_v28, %v2150_v35  ;;  %v2152_v37 = vpop.f32.mrb[21].mxu1 }
 0x7b0   :  { %v4915_v38 = vpack.i.bf16 %v2196_v34, %v2195_v33  ;;  %v2190_v39 = vadd.f32 %v2184_v59, %v2152_v37 }
 0x7b1   :  { %v2197_v40 = vmax.f32 %v2189_v36, 0.0 }
 0x7b2   :  { %v2198_v41 = vmax.f32 %v2190_v39, 0.0  ;;  %4916 = vrot.lane.b32.xlu0 %v4915_v38, %s4971_s15  ;;  %v2156_v42 = vpop.f32.mrb[22].mxu1 }
 0x7b3   :  { %v2191_v43 = vadd.f32 %v2180_v28, %v2156_v42  ;;  %v2158_v44 = vpop.f32.mrb[23].mxu1 }
 0x7b4   :  { %v4920_v45 = vpack.i.bf16 %v2198_v41, %v2197_v40  ;;  %v2192_v46 = vadd.f32 %v2184_v59, %v2158_v44 }
 0x7b5   :  { %v2199_v48 = vmax.f32 %v2191_v43, 0.0 }
 0x7b6   :  { %v2200_v49 = vmax.f32 %v2192_v46, 0.0  ;;  %4921 = vrot.lane.b32.xlu1 %v4920_v45, %s4971_s15  ;;  %v2162_v10 = vpop.f32.mrb[24].mxu1 }
 0x7b7   :  { %v2193_v50 = vadd.f32 %v2180_v28, %v2162_v10  ;;  %v2164_v51 = vpop.f32.mrb[25].mxu1  ;;  %v2377_v10 = vld [vmem:[%s6807_s4 + $0x8] sm:$0xff] }
 0x7b8   :  { %v4925_v52 = vpack.i.bf16 %v2200_v49, %v2199_v48  ;;  %v2194_v47 = vadd.f32 %v2184_v59, %v2164_v51  ;;  %v2285_v51 = vld [vmem:[%s6806_s3] sm:$0xff] }
 0x7b9   :  { %v2201_v55 = vmax.f32 %v2193_v50, 0.0 }
 0x7ba   :  { %v2202_v56 = vmax.f32 %v2194_v47, 0.0  ;;  %4926 = vrot.lane.b32.xlu0 %v4925_v52, %s4971_s15  ;;  %v2378_v47 = vld [vmem:[%s6807_s4 + $0x10] sm:$0xff] }
 0x7bc   :  { %v4930_v57 = vpack.i.bf16 %v2202_v56, %v2201_v55 }
 0x7be   :  { %4931 = vrot.lane.b32.xlu1 %v4930_v57, %s4971_s15  ;;  %v2380_v57 = vld [vmem:[%s6807_s4 + $0x20] sm:$0xff] }
 0x824   :  { %v4917_v61 = vpop.permute.xlu0 %4916 }
 0x825   :  { %v4919_v62 = vunpack.i.h.bf16 %v4917_v61  ;;  %v4918_v63 = vunpack.i.l.bf16 %v4917_v61  ;;  %v2381_v61 = vld [vmem:[%s6807_s4 + $0x28] sm:$0xff] }
 0x827   :  { %v2227_v1 = vsel %vm466_vm6, %v4918_v63, %v4919_v62  ;;  %v2240_v5 = vmax.f32 %v2196_v34, %v4919_v62  ;;  %v4601_v62 = vpack.c.bf16 %v2381_v61, %v2380_v57  ;;  %v2382_v63 = vld [vmem:[%s6807_s4 + $0x30] sm:$0xff]  ;;  %v3783_v57 = vld [vmem:[%s6808_s5 + $0x168] sm:$0xff] }
 0x828   :  { %v4922_v0 = vpop.permute.xlu1 %4921  ;;  %v2239_v9 = vmax.f32 %v2195_v33, %v2227_v1 }
 0x829   :  { %v4924_v3 = vunpack.i.h.bf16 %v4922_v0  ;;  %v4923_v4 = vunpack.i.l.bf16 %v4922_v0  ;;  %v2258_v18 = vrot.slane %v2240_v5, 1  ;;  %v2383_v0 = vld [vmem:[%s6807_s4 + $0x38] sm:$0xff] }
 0x82a   :  { %v2255_v21 = vrot.slane %v2239_v9, 1  ;;  %v4604_v1 = vpack.c.bf16 %v2383_v0, %v2382_v63  ;;  %v3780_v63 = vld [vmem:[%s6808_s5 + $0x150] sm:$0xff]  ;;  %v3782_v0 = vld [vmem:[%s6808_s5 + $0x160] sm:$0xff] }
 0x82b   :  { %v2242_v6 = vmax.f32 %v2198_v41, %v4924_v3  ;;  %v2228_v8 = vsel %vm466_vm6, %v4923_v4, %v4924_v3  ;;  %v2384_v3 = vld [vmem:[%s6807_s4 + $0x40] sm:$0xff]  ;;  %v2385_v4 = vld [vmem:[%s6807_s4 + $0x48] sm:$0xff] }
 0x82c   :  { %v2241_v11 = vmax.f32 %v2197_v40, %v2228_v8  ;;  %v4927_v12 = vpop.permute.xlu0 %4926  ;;  %v2387_v8 = vld [vmem:[%s6807_s4 + $0x58] sm:$0xff] }
 0x82d   :  { %v2259_v13 = vrot.slane %v2242_v6, 1  ;;  %v4929_v14 = vunpack.i.h.bf16 %v4927_v12  ;;  %v4928_v15 = vunpack.i.l.bf16 %v4927_v12  ;;  %v2389_v12 = vld [vmem:[%s6807_s4 + $0x68] sm:$0xff] }
 0x82e   :  { %v2256_v17 = vrot.slane %v2241_v11, 1 }
 0x82f   :  { %v2244_v19 = vmax.f32 %v2200_v49, %v4929_v14  ;;  %v2229_v20 = vsel %vm466_vm6, %v4928_v15, %v4929_v14  ;;  %v2260_v27 = vsel %vm70_vm3, %v2258_v18, %v2259_v13  ;;  %v2376_v49 = vld [vmem:[%s6807_s4] sm:$0xff]  ;;  %v2390_v14 = vld [vmem:[%s6807_s4 + $0x70] sm:$0xff]  ;;  %v2391_v15 = vld [vmem:[%s6807_s4 + $0x78] sm:$0xff] }
 0x830   :  { %v2243_v2 = vmax.f32 %v2199_v48, %v2229_v20  ;;  %v4932_v22 = vpop.permute.xlu1 %4931  ;;  %v2257_v28 = vsel %vm70_vm3, %v2255_v21, %v2256_v17  ;;  %v2278_v32 = vmax.f32 %v2240_v5, %v2260_v27  ;;  %v4595_v52 = vpack.c.bf16 %v2377_v10, %v2376_v49  ;;  %v1735_v18 = vld [vmem:[%s6815_s12] sm:$0x1]  ;;  %v2393_v20 = vld [vmem:[%s6807_s4 + $0x88] sm:$0xff]  ;;  %v3772_v49 = vld [vmem:[%s6808_s5 + $0x110] sm:$0xff] }
 0x831   :  { %v2263_v23 = vrot.slane %v2244_v19, 1  ;;  %v4934_v25 = vunpack.i.h.bf16 %v4932_v22  ;;  %v4933_v26 = vunpack.i.l.bf16 %v4932_v22  ;;  %v2277_v36 = vmax.f32 %v2239_v9, %v2257_v28  ;;  %v2397_v28 = vld [vmem:[%s6807_s4 + $0xa8] sm:$0xff]  ;;  %v3774_v10 = vld [vmem:[%s6808_s5 + $0x120] sm:$0xff] }
 0x832   :  { %v2261_v53 = vrot.slane %v2243_v2, 1  ;;  %v4607_v5 = vpack.c.bf16 %v2385_v4, %v2384_v3 }
 0x833   :  { %v2246_v59 = vmax.f32 %v2202_v56, %v4934_v25  ;;  %v2230_v29 = vsel %vm466_vm6, %v4933_v26, %v4934_v25  ;;  %v2264_v30 = vsel %vm70_vm3, %v2259_v13, %v2263_v23  ;;  %v2394_v25 = vld [vmem:[%s6807_s4 + $0x90] sm:$0xff]  ;;  %v2395_v26 = vld [vmem:[%s6807_s4 + $0x98] sm:$0xff] }
 0x834   :  { %v2245_v31 = vmax.f32 %v2201_v55, %v2230_v29  ;;  %v2280_v33 = vmax.f32 %v2242_v6, %v2264_v30  ;;  %v2262_v34 = vsel %vm70_vm3, %v2256_v17, %v2261_v53  ;;  %v2379_v55 = vld [vmem:[%s6807_s4 + $0x18] sm:$0xff]  ;;  %v2386_v6 = vld [vmem:[%s6807_s4 + $0x50] sm:$0xff]  ;;  %v4616_v17 = vpack.c.bf16 %v2391_v15, %v2390_v14 }
 0x835   :  { %v2267_v35 = vrot.slane %v2246_v59, 1  ;;  %v2279_v37 = vmax.f32 %v2241_v11, %v2262_v34  ;;  %v4598_v56 = vpack.c.bf16 %v2379_v55, %v2378_v47  ;;  %v4610_v9 = vpack.c.bf16 %v2387_v8, %v2386_v6  ;;  %v2388_v11 = vld [vmem:[%s6807_s4 + $0x60] sm:$0xff]  ;;  %v2398_v29 = vld [vmem:[%s6807_s4 + $0xb0] sm:$0xff]  ;;  %v2399_v30 = vld [vmem:[%s6807_s4 + $0xb8] sm:$0xff] }
 0x836   :  { %v2265_v38 = vrot.slane %v2245_v31, 1  ;;  %v4584_v39 = vpack.c.bf16 %v2280_v33, %v2278_v32  ;;  %v4613_v13 = vpack.c.bf16 %v2389_v12, %v2388_v11  ;;  %v4622_v27 = vpack.c.bf16 %v2395_v26, %v2394_v25  ;;  %v2400_v32 = vld [vmem:[%s6807_s4 + $0xc0] sm:$0xff]  ;;  %v3765_v33 = vld [vmem:[%s6808_s5 + $0xd8] sm:$0xff]  ;;  %v3767_v34 = vld [vmem:[%s6808_s5 + $0xe8] sm:$0xff] }
 0x837   :  { %v2268_v40 = vsel %vm70_vm3, %v2263_v23, %v2267_v35  ;;  %v2284_v41 = vmax.f32 %v2246_v59, %v2267_v35  ;;  %v4586_v42 = vpack.c.bf16 %v2279_v37, %v2277_v36  ;;  %v3764_v35 = vld [vmem:[%s6808_s5 + $0xd0] sm:$0xff]  ;;  %v4630_v36 = vpack.c.bf16 %v3767_v34, %v3765_v33  ;;  %v3766_v37 = vld [vmem:[%s6808_s5 + $0xe0] sm:$0xff]  ;;  %v3785_v8 = vld [vmem:[%s6808_s5 + $0x178] sm:$0xff] }
 0x838   :  { %v2266_v43 = vsel %vm70_vm3, %v2261_v53, %v2265_v38  ;;  %v2283_v44 = vmax.f32 %v2245_v31, %v2265_v38  ;;  %4585 = vmatprep.subr.bf16.mxu0 %v4584_v39  ;;  %v2282_v45 = vmax.f32 %v2244_v19, %v2268_v40  ;;  %v2392_v19 = vld [vmem:[%s6807_s4 + $0x80] sm:$0xff]  ;;  %v4628_v31 = vpack.c.bf16 %v2399_v30, %v2398_v29  ;;  %v3769_v38 = vld [vmem:[%s6808_s5 + $0xf8] sm:$0xff]  ;;  %v3771_v39 = vld [vmem:[%s6808_s5 + $0x108] sm:$0xff] }
 0x839   :  { %v2281_v46 = vmax.f32 %v2243_v2, %v2266_v43  ;;  %4587 = vmatpush1.bf16.msra.mxu0 %v4586_v42  ;;  %v4619_v23 = vpack.c.bf16 %v2393_v20, %v2392_v19  ;;  %v2396_v53 = vld [vmem:[%s6807_s4 + $0xa0] sm:$0xff]  ;;  %v4632_v40 = vpack.c.bf16 %v3766_v37, %v3764_v35  ;;  %v3768_v42 = vld [vmem:[%s6808_s5 + $0xf0] sm:$0xff]  ;;  %4631 = vmatprep.subr.bf16.mxu1 %v4630_v36  ;;  %v3789_v15 = vld [vmem:[%s6808_s5 + $0x198] sm:$0xff] }
 0x83a   :  { %v4588_v48 = vpack.c.bf16 %v2284_v41, %v2282_v45  ;;  %v4625_v59 = vpack.c.bf16 %v2397_v28, %v2396_v53  ;;  %v4634_v41 = vpack.c.bf16 %v3771_v39, %v3769_v38  ;;  %v3770_v43 = vld [vmem:[%s6808_s5 + $0x100] sm:$0xff]  ;;  %v3775_v45 = vld [vmem:[%s6808_s5 + $0x128] sm:$0xff]  ;;  %v3776_v55 = vld [vmem:[%s6808_s5 + $0x130] sm:$0xff] }
 0x83b   :  { %v4591_v50 = vpack.c.bf16 %v2283_v44, %v2281_v46  ;;  %v3773_v44 = vld [vmem:[%s6808_s5 + $0x118] sm:$0xff]  ;;  %4633 = vmatpush1.bf16.msra.mxu1 %v4632_v40  ;;  %v4636_v46 = vpack.c.bf16 %v3770_v43, %v3768_v42  ;;  %v3784_v12 = vld [vmem:[%s6808_s5 + $0x170] sm:$0xff]  ;;  %v2487_v25 = vld [vmem:[%s6808_s5 + $0x28] sm:$0xff] }
 0x83c   :  { %4590 = vmatprep.subr.msk.bf16.mxu0 %vm5220_vm8, %v4588_v48  ;;  %4635 = vmatprep.subr.bf16.mxu1 %v4634_v41  ;;  %v4638_v48 = vpack.c.bf16 %v3775_v45, %v3773_v44  ;;  %v3788_v19 = vld [vmem:[%s6808_s5 + $0x190] sm:$0xff]  ;;  %v2489_v26 = vld [vmem:[%s6808_s5 + $0x38] sm:$0xff]  ;;  %v2486_v33 = vld [vmem:[%s6808_s5 + $0x20] sm:$0xff] }
 0x83d   :  { %4593 = vmatpush1.bf16.msk.msra.mxu0 %vm5220_vm8, %v4591_v50  ;;  %v3777_v50 = vld [vmem:[%s6808_s5 + $0x138] sm:$0xff]  ;;  %v2488_v34 = vld [vmem:[%s6808_s5 + $0x30] sm:$0xff]  ;;  %v2491_v37 = vld [vmem:[%s6808_s5 + $0x48] sm:$0xff] }
 0x83e   :  { %4594 = vmatprep.subr.bf16.mxu0 %v4972_v24  ;;  %v2493_v38 = vld [vmem:[%s6808_s5 + $0x58] sm:$0xff]  ;;  %v4660_v39 = vpack.c.bf16 %v2488_v34, %v2486_v33  ;;  %v2490_v41 = vld [vmem:[%s6808_s5 + $0x40] sm:$0xff]  ;;  %v2492_v42 = vld [vmem:[%s6808_s5 + $0x50] sm:$0xff] }
 0x83f   :  { %4637 = vmatpush1.bf16.msra.mxu1 %v4636_v46  ;;  %v4662_v40 = vpack.c.bf16 %v2493_v38, %v2491_v37  ;;  %v2495_v43 = vld [vmem:[%s6808_s5 + $0x68] sm:$0xff]  ;;  %v2497_v44 = vld [vmem:[%s6808_s5 + $0x78] sm:$0xff]  ;;  %v4664_v45 = vpack.c.bf16 %v2492_v42, %v2490_v41  ;;  %v3810_v34 = vld [vmem:[%s6808_s5 + $0x220] sm:$0xff] }
 0x840   :  { %3760 = vmatmul.mubr.msk.f32.vlgmr.msra.gmra.mrb[18].mxu0 %vm527_vm9, %v2285_v51  ;;  %v3779_v51 = vld [vmem:[%s6808_s5 + $0x148] sm:$0xff]  ;;  %4639 = vmatprep.subr.bf16.mxu1 %v4638_v48  ;;  %v4666_v46 = vpack.c.bf16 %v2497_v44, %v2495_v43  ;;  %v2494_v48 = vld [vmem:[%s6808_s5 + $0x60] sm:$0xff]  ;;  %v3817_v38 = vld [vmem:[%s6808_s5 + $0x258] sm:$0xff] }
 0x841   :  { %2369 = vmatprep.mubr.f32.mxu0 %v4969_v7  ;;  %4596 = vmatpush1.bf16.msra.mxu0 %v4595_v52  ;;  %v4640_v52 = vpack.c.bf16 %v3774_v10, %v3772_v49  ;;  %v4642_v47 = vpack.c.bf16 %v3779_v51, %v3777_v50  ;;  %v2496_v49 = vld [vmem:[%s6808_s5 + $0x70] sm:$0xff]  ;;  %v2499_v10 = vld [vmem:[%s6808_s5 + $0x88] sm:$0xff]  ;;  %v2501_v50 = vld [vmem:[%s6808_s5 + $0x98] sm:$0xff] }
 0x842   :  { %4597 = vmatprep.subr.bf16.mxu0 %v4972_v24  ;;  %v4668_v51 = vpack.c.bf16 %v2496_v49, %v2494_v48  ;;  %v3815_v37 = vld [vmem:[%s6808_s5 + $0x248] sm:$0xff]  ;;  %v3814_v41 = vld [vmem:[%s6808_s5 + $0x240] sm:$0xff]  ;;  %v3816_v42 = vld [vmem:[%s6808_s5 + $0x250] sm:$0xff] }
 0x843   :  { %4641 = vmatpush1.bf16.msra.mxu1 %v4640_v52  ;;  %v4670_v52 = vpack.c.bf16 %v2501_v50, %v2499_v10  ;;  %v4700_v43 = vpack.c.bf16 %v3816_v42, %v3814_v41  ;;  %v3819_v44 = vld [vmem:[%s6808_s5 + $0x268] sm:$0xff]  ;;  %v2966_v41 = vld [vmem:[%s6811_s8 + $0x50] sm:$0xff]  ;;  %v2967_v42 = vld [vmem:[%s6811_s8 + $0x58] sm:$0xff] }
 0x844   :  { %3761 = vmatmul.mubr.msk.f32.gmra.mrb[20].mxu0 %vm527_vm9, %v2286_v16  ;;  %v3778_v16 = vld [vmem:[%s6808_s5 + $0x140] sm:$0xff]  ;;  %4643 = vmatprep.subr.bf16.mxu1 %v4642_v47 }
 0x845   :  { %4599 = vmatpush1.bf16.msra.mxu0 %v4598_v56  ;;  %v3781_v56 = vld [vmem:[%s6808_s5 + $0x158] sm:$0xff]  ;;  %v4644_v61 = vpack.c.bf16 %v3778_v16, %v3776_v55  ;;  %v2498_v47 = vld [vmem:[%s6808_s5 + $0x80] sm:$0xff]  ;;  %v2500_v55 = vld [vmem:[%s6808_s5 + $0x90] sm:$0xff] }
 0x846   :  { %4600 = vmatprep.subr.bf16.mxu0 %v4972_v24  ;;  %v2503_v16 = vld [vmem:[%s6808_s5 + $0xa8] sm:$0xff] }
 0x847   :  { %4645 = vmatpush1.bf16.msra.mxu1 %v4644_v61 }
 0x849   :  { %4602 = vmatpush1.bf16.msra.mxu0 %v4601_v62  ;;  %v4646_v62 = vpack.c.bf16 %v3783_v57, %v3781_v56  ;;  %v2505_v56 = vld [vmem:[%s6808_s5 + $0xb8] sm:$0xff]  ;;  %v4672_v57 = vpack.c.bf16 %v2500_v55, %v2498_v47 }
 0x84a   :  { %4603 = vmatprep.subr.bf16.mxu0 %v4972_v24  ;;  %v4674_v61 = vpack.c.bf16 %v2505_v56, %v2503_v16 }
 0x84b   :  { %4647 = vmatprep.subr.bf16.mxu1 %v4646_v62  ;;  %v2502_v62 = vld [vmem:[%s6808_s5 + $0xa0] sm:$0xff] }
 0x84d   :  { %4605 = vmatpush1.bf16.msra.mxu0 %v4604_v1  ;;  %v4648_v1 = vpack.c.bf16 %v3782_v0, %v3780_v63  ;;  %v2504_v63 = vld [vmem:[%s6808_s5 + $0xb0] sm:$0xff] }
 0x84e   :  { %4606 = vmatprep.subr.bf16.mxu0 %v4972_v24  ;;  %v4676_v0 = vpack.c.bf16 %v2504_v63, %v2502_v62 }
 0x84f   :  { %4649 = vmatpush1.bf16.msra.mxu1 %v4648_v1  ;;  %v2507_v1 = vld [vmem:[%s6808_s5 + $0xc8] sm:$0xff] }
 0x851   :  { %4608 = vmatpush1.bf16.msra.mxu0 %v4607_v5 }
 0x852   :  { %4609 = vmatprep.subr.bf16.mxu0 %v4972_v24 }
 0x855   :  { %4611 = vmatpush1.bf16.msra.mxu0 %v4610_v9  ;;  %v3787_v9 = vld [vmem:[%s6808_s5 + $0x188] sm:$0xff] }
 0x856   :  { %4612 = vmatprep.subr.bf16.mxu0 %v4972_v24  ;;  %v4650_v11 = vpack.c.bf16 %v3787_v9, %v3785_v8  ;;  %v3799_v8 = vld [vmem:[%s6808_s5 + $0x1c8] sm:$0xff]  ;;  %v3801_v9 = vld [vmem:[%s6808_s5 + $0x1d8] sm:$0xff] }
 0x858   :  { %4651 = vmatprep.subr.bf16.mxu1 %v4650_v11  ;;  %v2506_v11 = vld [vmem:[%s6808_s5 + $0xc0] sm:$0xff] }
 0x859   :  { %4614 = vmatpush1.bf16.msra.mxu0 %v4613_v13  ;;  %v3786_v13 = vld [vmem:[%s6808_s5 + $0x180] sm:$0xff] }
 0x85a   :  { %4615 = vmatprep.subr.bf16.mxu0 %v4972_v24  ;;  %v4652_v14 = vpack.c.bf16 %v3786_v13, %v3784_v12 }
 0x85c   :  { %v1805_v21 = vpop.f32.mrb[16].mxu0  ;;  %4653 = vmatpush1.bf16.msra.mxu1 %v4652_v14  ;;  %v4682_v14 = vpack.c.bf16 %v3801_v9, %v3799_v8 }
 0x85d   :  { %v1806_v2 = vadd.f32 %v1805_v21, %v1735_v18  ;;  %v4141_v22 = vpop.f32.mrb[17].mxu0  ;;  %4617 = vmatpush1.bf16.msra.mxu0 %v4616_v17  ;;  %v2483_v17 = vld [vmem:[%s6808_s5 + $0x8] sm:$0xff]  ;;  %v2485_v18 = vld [vmem:[%s6808_s5 + $0x18] sm:$0xff]  ;;  %2567 = vmatprep.subr.mxu1 %v3789_v15  ;;  %v3798_v15 = vld [vmem:[%s6808_s5 + $0x1c0] sm:$0xff] }
 0x85e   :  { %4618 = vmatprep.subr.bf16.mxu0 %v4972_v24  ;;  %v4654_v20 = vpack.c.bf16 %v2485_v18, %v2483_v17  ;;  %v2482_v22 = vld [vmem:[%s6808_s5] sm:$0xff]  ;;  %v3800_v17 = vld [vmem:[%s6808_s5 + $0x1d0] sm:$0xff]  ;;  %v3803_v18 = vld [vmem:[%s6808_s5 + $0x1e8] sm:$0xff] }
 0x85f   :  { %1810 = vst.msk [vmem:[#allocation2] sm:$0x1] %vm1809_vm2, %v1806_v2 }
 0x860   :  { %2568 = vmatpush1.msra.mxu1 %v3788_v19  ;;  %v3805_v19 = vld [vmem:[%s6808_s5 + $0x1f8] sm:$0xff] }
 0x861   :  { %4620 = vmatpush1.bf16.msra.mxu0 %v4619_v23  ;;  %4655 = vmatprep.subr.bf16.mxu1 %v4654_v20  ;;  %v2484_v23 = vld [vmem:[%s6808_s5 + $0x10] sm:$0xff]  ;;  %v4684_v20 = vpack.c.bf16 %v3800_v17, %v3798_v15 }
 0x862   :  { %4621 = vmatprep.subr.bf16.mxu0 %v4972_v24  ;;  %v4656_v53 = vpack.c.bf16 %v2484_v23, %v2482_v22  ;;  %v3802_v22 = vld [vmem:[%s6808_s5 + $0x1e0] sm:$0xff]  ;;  %v3804_v23 = vld [vmem:[%s6808_s5 + $0x1f0] sm:$0xff] }
 0x865   :  { %4623 = vmatpush1.bf16.msra.mxu0 %v4622_v27 }
 0x866   :  { %4624 = vmatprep.subr.bf16.mxu0 %v4972_v24 }
 0x869   :  { %4626 = vmatpush1.bf16.msra.mxu0 %v4625_v59 }
 0x86a   :  { %4627 = vmatprep.subr.bf16.mxu0 %v4972_v24 }
 0x86d   :  { %4629 = vmatpush1.bf16.msra.mxu0 %v4628_v31 }
 0x86e   :  { %2455 = vmatprep.subr.mxu0 %v4969_v7 }
 0x871   :  { %2456 = vmatpush1.msra.mxu0 %v2400_v32  ;;  %v4658_v32 = vpack.c.bf16 %v2489_v26, %v2487_v25  ;;  %v3807_v25 = vld [vmem:[%s6808_s5 + $0x208] sm:$0xff]  ;;  %v4688_v26 = vpack.c.bf16 %v3804_v23, %v3802_v22 }
 0x913   :  { %v2365_v3 = vpop.f32.mrb[18].mxu0 }
 0x914   :  { %v2367_v4 = vpop.f32.mrb[19].mxu0 }
 0x915   :  { %3762 = vmatprep.mubr.msk.f32.mxu0 %vm643_vm10, %v2367_v4  ;;  %v3797_v4 = vld [vmem:[%s6808_s5 + $0x1b8] sm:$0xff] }
 0x916   :  { %2472 = vmatmul.mubr.f32.vlgmr.msra.gmra.mrb[22].mxu0 %v2365_v3  ;;  %v3795_v3 = vld [vmem:[%s6808_s5 + $0x1a8] sm:$0xff] }
 0x917   :  { %v2371_v5 = vpop.f32.mrb[20].mxu0  ;;  %v4678_v12 = vpack.c.bf16 %v3797_v4, %v3795_v3 }
 0x918   :  { %v2373_v6 = vpop.f32.mrb[21].mxu0 }
 0x919   :  { %3763 = vmatprep.mubr.msk.f32.mxu0 %vm643_vm10, %v2373_v6  ;;  %v3796_v6 = vld [vmem:[%s6808_s5 + $0x1b0] sm:$0xff] }
 0x91a   :  { %2477 = vmatmul.mubr.f32.gmra.mrb[24].mxu0 %v2371_v5  ;;  %v3794_v5 = vld [vmem:[%s6808_s5 + $0x1a0] sm:$0xff] }
 0x91b   :  { %2949 = vmatprep.mubr.f32.mxu0 %v4969_v7  ;;  %v4680_v13 = vpack.c.bf16 %v3796_v6, %v3794_v5 }
 0x9e9   :  { %v6279_v21 = vpop.f32.mrb[22].mxu0 }
 0x9ea   :  { %v2475_v2 = vpop.f32.mrb[23].mxu0  ;;  %v2536_v28 = vrot.slane %v6279_v21, 1  ;;  %v2727_v59 = vrot.slane %v6279_v21, 2 }
 0x9eb   :  { %v4686_v2 = vpack.c.bf16 %v3805_v19, %v3803_v18 }
 0x9ed   :  { %v6293_v27 = vpop.f32.mrb[24].mxu0 }
 0x9ee   :  { %v2537_v29 = vrot.slane %v6293_v27, 1  ;;  %v2728_v30 = vrot.slane %v6293_v27, 2  ;;  %v2480_v31 = vpop.f32.mrb[25].mxu0 }
 0x9ef   :  { %v3813_v31 = vld [vmem:[%s6808_s5 + $0x238] sm:$0xff] }
 0x9f0   :  { %v2538_v35 = vsel %vm70_vm3, %v2536_v28, %v2537_v29  ;;  %v6309_v36 = vsel %vm295_vm5, %v2727_v59, %v2728_v30  ;;  %v3806_v28 = vld [vmem:[%s6808_s5 + $0x200] sm:$0xff]  ;;  %v3808_v59 = vld [vmem:[%s6808_s5 + $0x210] sm:$0xff] }
 0x9f1   :  { %3790 = vmatmul.mubr.msk.f32.vlgmr.msra.gmra.mrb[26].mxu1 %vm783_vm11, %v2538_v35  ;;  %v3812_v35 = vld [vmem:[%s6808_s5 + $0x230] sm:$0xff] }
 0x9f2   :  { %4657 = vmatpush1.bf16.msra.mxu1 %v4656_v53  ;;  %2613 = vmatprep.mubr.f32.mxu1 %v4969_v7 }
 0x9f3   :  { %4659 = vmatprep.subr.bf16.mxu1 %v4658_v32  ;;  %v4692_v32 = vpack.c.bf16 %v3808_v59, %v3806_v28  ;;  %v2958_v59 = vld [vmem:[%s6811_s8 + $0x10] sm:$0xff] }
 0x9f5   :  { %3791 = vmatmul.mubr.msk.f32.gmra.mrb[28].mxu1 %vm783_vm11, %v2537_v29  ;;  %v3811_v29 = vld [vmem:[%s6808_s5 + $0x228] sm:$0xff] }
 0x9f6   :  { %4661 = vmatpush1.bf16.msra.mxu1 %v4660_v39  ;;  %2688 = vmatprep.mubr.f32.mxu1 %v4969_v7  ;;  %v4694_v33 = vpack.c.bf16 %v3813_v31, %v3811_v29  ;;  %v4696_v39 = vpack.c.bf16 %v3812_v35, %v3810_v34  ;;  %v2959_v29 = vld [vmem:[%s6811_s8 + $0x18] sm:$0xff]  ;;  %v2960_v31 = vld [vmem:[%s6811_s8 + $0x20] sm:$0xff]  ;;  %v2962_v34 = vld [vmem:[%s6811_s8 + $0x30] sm:$0xff] }
 0x9f7   :  { %4663 = vmatprep.subr.bf16.mxu1 %v4662_v40  ;;  %v4698_v40 = vpack.c.bf16 %v3817_v38, %v3815_v37  ;;  %v4712_v54 = vpack.c.bf16 %v2959_v29, %v2958_v59  ;;  %v2963_v35 = vld [vmem:[%s6811_s8 + $0x38] sm:$0xff]  ;;  %v2964_v38 = vld [vmem:[%s6811_s8 + $0x40] sm:$0xff]  ;;  %v3839_v59 = vld [vmem:[%s6812_s9 + $0xa8] sm:$0xff] }
 0x9f8   :  { %v4718_v37 = vpack.c.bf16 %v2963_v35, %v2962_v34 }
 0x9fa   :  { %4665 = vmatpush1.bf16.msra.mxu1 %v4664_v45  ;;  %v3818_v45 = vld [vmem:[%s6808_s5 + $0x260] sm:$0xff] }
 0x9fb   :  { %4667 = vmatprep.subr.bf16.mxu1 %v4666_v46  ;;  %v2815_v46 = vld [vmem:[%s6809_s6] sm:$0x3] }
 0x9fc   :  { %v2820_v48 = vrot.slane %v2815_v46, %v5196_v58  ;;  %v2824_v49 = vrot.slane %v2815_v46, %v5201_v60 }
 0x9fe   :  { %4669 = vmatpush1.bf16.msra.mxu1 %v4668_v51 }
 0x9ff   :  { %4671 = vmatprep.subr.bf16.mxu1 %v4670_v52 }
 0xa02   :  { %4673 = vmatpush1.bf16.msra.mxu1 %v4672_v57 }
 0xa03   :  { %4675 = vmatprep.subr.bf16.mxu1 %v4674_v61 }
 0xa06   :  { %4677 = vmatpush1.bf16.msra.mxu1 %v4676_v0 }
 0xa07   :  { %2648 = vmatprep.subr.mxu1 %v2507_v1 }
 0xa0a   :  { %2649 = vmatpush1.msra.mxu1 %v2506_v11 }
 0xa0b   :  { %3792 = vmatmul.mubr.msk.f32.vlgmr.msra.gmra.mrb[26].mxu1 %vm783_vm11, %v6279_v21  ;;  %4679 = vmatprep.subr.bf16.mxu1 %v4678_v12  ;;  %v3809_v21 = vld [vmem:[%s6808_s5 + $0x218] sm:$0xff] }
 0xa0c   :  { %4681 = vmatpush1.bf16.msra.mxu1 %v4680_v13  ;;  %2694 = vmatprep.mubr.f32.mxu1 %v4969_v7  ;;  %v4690_v53 = vpack.c.bf16 %v3809_v21, %v3807_v25  ;;  %v2956_v25 = vld [vmem:[%s6811_s8] sm:$0xff]  ;;  %v2957_v21 = vld [vmem:[%s6811_s8 + $0x8] sm:$0xff] }
 0xa0d   :  { %4683 = vmatprep.subr.bf16.mxu1 %v4682_v14  ;;  %v4709_v28 = vpack.c.bf16 %v2957_v21, %v2956_v25  ;;  %v3835_v25 = vld [vmem:[%s6812_s9 + $0x98] sm:$0xff] }
 0xa0f   :  { %3793 = vmatmul.mubr.msk.f32.gmra.mrb[28].mxu1 %vm783_vm11, %v6293_v27 }
 0xa10   :  { %4685 = vmatpush1.bf16.msra.mxu1 %v4684_v20  ;;  %2798 = vmatprep.mubr.f32.mxu1 %v4969_v7 }
 0xa11   :  { %4687 = vmatprep.subr.bf16.mxu1 %v4686_v2 }
 0xa14   :  { %4689 = vmatpush1.bf16.msra.mxu1 %v4688_v26 }
 0xa15   :  { %4691 = vmatprep.subr.bf16.mxu1 %v4690_v53  ;;  %v2875_v53 = vld [vmem:[%s6810_s7] sm:$0x1f] }
 0xa18   :  { %4693 = vmatpush1.bf16.msra.mxu1 %v4692_v32  ;;  %v2961_v32 = vld [vmem:[%s6811_s8 + $0x28] sm:$0xff] }
 0xa19   :  { %4695 = vmatprep.subr.bf16.mxu1 %v4694_v33  ;;  %v4715_v33 = vpack.c.bf16 %v2961_v32, %v2960_v31  ;;  %v3852_v31 = vld [vmem:[%s6812_s9 + $0x108] sm:$0xff] }
 0xa1c   :  { %4697 = vmatpush1.bf16.msra.mxu1 %v4696_v39  ;;  %v2965_v39 = vld [vmem:[%s6811_s8 + $0x48] sm:$0xff] }
 0xa1d   :  { %4699 = vmatprep.subr.bf16.mxu1 %v4698_v40  ;;  %v4721_v40 = vpack.c.bf16 %v2965_v39, %v2964_v38  ;;  %v3841_v38 = vld [vmem:[%s6812_s9 + $0xb8] sm:$0xff] }
 0xa20   :  { %4701 = vmatpush1.bf16.msra.mxu1 %v4700_v43  ;;  %v4724_v43 = vpack.c.bf16 %v2967_v42, %v2966_v41  ;;  %v3854_v41 = vld [vmem:[%s6812_s9 + $0x118] sm:$0xff] }
 0xa21   :  { %2758 = vmatprep.subr.mxu1 %v3819_v44  ;;  %v2968_v44 = vld [vmem:[%s6811_s8 + $0x60] sm:$0xff] }
 0xa24   :  { %2759 = vmatpush1.msra.mxu1 %v3818_v45  ;;  %v2969_v45 = vld [vmem:[%s6811_s8 + $0x68] sm:$0xff] }
 0xa25   :  { %3820 = vmatmul.mubr.msk.f32.vlgmr.msra.gmra.mrb[26].mxu1 %vm783_vm11, %v6309_v36  ;;  %4753 = vmatprep.subr.bf16.mxu1 %v4972_v24  ;;  %v4727_v46 = vpack.c.bf16 %v2969_v45, %v2968_v44  ;;  %v3843_v44 = vld [vmem:[%s6812_s9 + $0xc8] sm:$0xff] }
 0xa26   :  { %2804 = vmatprep.mubr.f32.mxu1 %v4969_v7 }
 0xa29   :  { %3821 = vmatmul.mubr.msk.f32.gmra.mrb[28].mxu1 %vm783_vm11, %v2728_v30 }
 0xa2a   :  { %4185 = vmatprep.mubr.msk.f32.mxu1 %vm4974_vm1, %v4969_v7 }
 0xaf8   :  { %v2800_v36 = vpop.f32.mrb[26].mxu1 }
 0xaf9   :  { %v2827_v10 = vadd.f32 %v2820_v48, %v2800_v36  ;;  %v2802_v50 = vpop.f32.mrb[27].mxu1 }
 0xafa   :  { %v2828_v51 = vadd.f32 %v2824_v49, %v2802_v50  ;;  %v2973_v50 = vld [vmem:[%s6811_s8 + $0x88] sm:$0xff] }
 0xafb   :  { %v2831_v52 = vmax.f32 %v2827_v10, 0.0  ;;  %v2972_v10 = vld [vmem:[%s6811_s8 + $0x80] sm:$0xff] }
 0xafc   :  { %v2832_v47 = vmax.f32 %v2828_v51, 0.0  ;;  %v2806_v27 = vpop.f32.mrb[28].mxu1  ;;  %v4733_v51 = vpack.c.bf16 %v2973_v50, %v2972_v10  ;;  %v3845_v10 = vld [vmem:[%s6812_s9 + $0xd8] sm:$0xff] }
 0xafd   :  { %v2829_v55 = vadd.f32 %v2820_v48, %v2806_v27  ;;  %v2808_v30 = vpop.f32.mrb[29].mxu1  ;;  %v2970_v48 = vld [vmem:[%s6811_s8 + $0x70] sm:$0xff] }
 0xafe   :  { %v4935_v16 = vpack.i.bf16 %v2832_v47, %v2831_v52  ;;  %v2830_v56 = vadd.f32 %v2824_v49, %v2808_v30  ;;  %v2971_v49 = vld [vmem:[%s6811_s8 + $0x78] sm:$0xff]  ;;  %v3050_v30 = vld [vmem:[%s6812_s9 + $0x8] sm:$0xff] }
 0xaff   :  { %v2833_v57 = vmax.f32 %v2829_v55, 0.0  ;;  %v4730_v36 = vpack.c.bf16 %v2971_v49, %v2970_v48  ;;  %v3049_v55 = vld [vmem:[%s6812_s9] sm:$0xff]  ;;  %v3856_v48 = vld [vmem:[%s6812_s9 + $0x128] sm:$0xff] }
 0xb00   :  { %v2834_v61 = vmax.f32 %v2830_v56, 0.0  ;;  %4936 = vrot.lane.b32.xlu0 %v4935_v16, %s4973_s20  ;;  %v4754_v16 = vpack.c.bf16 %v3050_v30, %v3049_v55  ;;  %v3051_v56 = vld [vmem:[%s6812_s9 + $0x10] sm:$0xff]  ;;  %v3847_v55 = vld [vmem:[%s6812_s9 + $0xe8] sm:$0xff] }
 0xb02   :  { %v4940_v62 = vpack.i.bf16 %v2834_v61, %v2833_v57  ;;  %4755 = vmatpush3.bf16.msra.mxu1 %v4754_v16 }
 0xb03   :  { %4756 = vmatprep.subr.bf16.mxu1 %v4972_v24 }
 0xb04   :  { %4941 = vrot.lane.b32.xlu1 %v4940_v62, %s4973_s20  ;;  %v3053_v62 = vld [vmem:[%s6812_s9 + $0x20] sm:$0xff] }
 0xb72   :  { %v4937_v58 = vpop.permute.xlu0 %4936 }
 0xb73   :  { %v4939_v60 = vunpack.i.h.bf16 %v4937_v58  ;;  %v4938_v63 = vunpack.i.l.bf16 %v4937_v58  ;;  %v3054_v58 = vld [vmem:[%s6812_s9 + $0x28] sm:$0xff] }
 0xb75   :  { %v2847_v0 = vsel %vm1093_vm12, %v4938_v63, %v4939_v60  ;;  %v2854_v3 = vmax.f32 %v2832_v47, %v4939_v60  ;;  %v2975_v47 = vld [vmem:[%s6811_s8 + $0x98] sm:$0xff]  ;;  %v4760_v60 = vpack.c.bf16 %v3054_v58, %v3053_v62  ;;  %v3055_v63 = vld [vmem:[%s6812_s9 + $0x30] sm:$0xff] }
 0xb76   :  { %v4942_v1 = vpop.permute.xlu1 %4941  ;;  %v2853_v6 = vmax.f32 %v2831_v52, %v2847_v0  ;;  %v2974_v52 = vld [vmem:[%s6811_s8 + $0x90] sm:$0xff]  ;;  %v3056_v0 = vld [vmem:[%s6812_s9 + $0x38] sm:$0xff] }
 0xb77   :  { %v4944_v4 = vunpack.i.h.bf16 %v4942_v1  ;;  %v4943_v5 = vunpack.i.l.bf16 %v4942_v1  ;;  %v2864_v12 = vrot.slane %v2854_v3, 1  ;;  %v4736_v27 = vpack.c.bf16 %v2975_v47, %v2974_v52  ;;  %v3858_v52 = vld [vmem:[%s6812_s9 + $0x138] sm:$0xff] }
 0xb78   :  { %v2861_v14 = vrot.slane %v2853_v6, 1  ;;  %v4763_v1 = vpack.c.bf16 %v3056_v0, %v3055_v63  ;;  %v3863_v63 = vld [vmem:[%s6812_s9 + $0x158] sm:$0xff] }
 0xb79   :  { %v2856_v8 = vmax.f32 %v2834_v61, %v4944_v4  ;;  %v2848_v9 = vsel %vm1093_vm12, %v4943_v5, %v4944_v4  ;;  %v3058_v4 = vld [vmem:[%s6812_s9 + $0x48] sm:$0xff] }
 0xb7a   :  { %v2855_v11 = vmax.f32 %v2833_v57, %v2848_v9  ;;  %v3052_v57 = vld [vmem:[%s6812_s9 + $0x18] sm:$0xff] }
 0xb7b   :  { %v2865_v13 = vrot.slane %v2856_v8, 1  ;;  %v4757_v61 = vpack.c.bf16 %v3052_v57, %v3051_v56  ;;  %v3860_v56 = vld [vmem:[%s6812_s9 + $0x140] sm:$0xff]  ;;  %v3861_v57 = vld [vmem:[%s6812_s9 + $0x148] sm:$0xff] }
 0xb7c   :  { %v2862_v15 = vrot.slane %v2855_v11, 1  ;;  %v4799_v62 = vpack.c.bf16 %v3861_v57, %v3860_v56 }
 0xb7d   :  { %v2866_v17 = vsel %vm70_vm3, %v2864_v12, %v2865_v13  ;;  %v2874_v18 = vmax.f32 %v2856_v8, %v2865_v13  ;;  %4758 = vmatpush3.bf16.msra.mxu1 %v4757_v61  ;;  %v3827_v8 = vld [vmem:[%s6812_s9 + $0x58] sm:$0xff]  ;;  %v3828_v13 = vld [vmem:[%s6812_s9 + $0x60] sm:$0xff] }
 0xb7e   :  { %v2872_v19 = vmax.f32 %v2854_v3, %v2866_v17  ;;  %v2863_v20 = vsel %vm70_vm3, %v2861_v14, %v2862_v15  ;;  %v2873_v2 = vmax.f32 %v2855_v11, %v2862_v15  ;;  %4759 = vmatprep.subr.bf16.mxu1 %v4972_v24  ;;  %v3057_v3 = vld [vmem:[%s6812_s9 + $0x40] sm:$0xff]  ;;  %v3829_v14 = vld [vmem:[%s6812_s9 + $0x68] sm:$0xff]  ;;  %v3830_v17 = vld [vmem:[%s6812_s9 + $0x70] sm:$0xff] }
 0xb7f   :  { %v2871_v22 = vmax.f32 %v2853_v6, %v2863_v20  ;;  %v4766_v5 = vpack.c.bf16 %v3058_v4, %v3057_v3  ;;  %v3826_v6 = vld [vmem:[%s6812_s9 + $0x50] sm:$0xff]  ;;  %v4742_v15 = vpack.c.bf16 %v3829_v14, %v3828_v13  ;;  %v3832_v20 = vld [vmem:[%s6812_s9 + $0x80] sm:$0xff]  ;;  %v3865_v3 = vld [vmem:[%s6812_s9 + $0x168] sm:$0xff] }
 0xb80   :  { %v4702_v23 = vpack.c.bf16 %v2874_v18, %v2872_v19  ;;  %v4739_v11 = vpack.c.bf16 %v3827_v8, %v3826_v6  ;;  %v3831_v18 = vld [vmem:[%s6812_s9 + $0x78] sm:$0xff]  ;;  %v3868_v8 = vld [vmem:[%s6812_s9 + $0x180] sm:$0xff]  ;;  %v3471_v14 = vld [vmem:[%s6814_s11 + $0x8] sm:$0xff] }
 0xb81   :  { %v4705_v26 = vpack.c.bf16 %v2873_v2, %v2871_v22  ;;  %4761 = vmatpush3.bf16.msra.mxu1 %v4760_v60  ;;  %v4745_v19 = vpack.c.bf16 %v3831_v18, %v3830_v17  ;;  %v3833_v2 = vld [vmem:[%s6812_s9 + $0x88] sm:$0xff]  ;;  %v3862_v60 = vld [vmem:[%s6812_s9 + $0x150] sm:$0xff]  ;;  %v3470_v13 = vld [vmem:[%s6814_s11] sm:$0xff] }
 0xb82   :  { %4704 = vmatprep.subr.msk.bf16.mxu0 %vm5605_vm14, %v4702_v23  ;;  %4762 = vmatprep.subr.bf16.mxu1 %v4972_v24  ;;  %v4748_v22 = vpack.c.bf16 %v3833_v2, %v3832_v20  ;;  %v3834_v23 = vld [vmem:[%s6812_s9 + $0x90] sm:$0xff]  ;;  %v4802_v0 = vpack.c.bf16 %v3863_v63, %v3862_v60  ;;  %v4814_v17 = vpack.c.bf16 %v3471_v14, %v3470_v13  ;;  %v3473_v18 = vld [vmem:[%s6814_s11 + $0x18] sm:$0xff]  ;;  %v3474_v20 = vld [vmem:[%s6814_s11 + $0x20] sm:$0xff] }
 0xb83   :  { %4707 = vmatpush1.bf16.msk.msra.mxu0 %vm5605_vm14, %v4705_v26  ;;  %v4751_v21 = vpack.c.bf16 %v3835_v25, %v3834_v23  ;;  %v3849_v26 = vld [vmem:[%s6812_s9 + $0xf0] sm:$0xff]  ;;  %v3475_v2 = vld [vmem:[%s6814_s11 + $0x28] sm:$0xff]  ;;  %v3477_v25 = vld [vmem:[%s6814_s11 + $0x38] sm:$0xff] }
 0xb84   :  { %4708 = vmatprep.subr.bf16.mxu0 %v4972_v24  ;;  %v3476_v23 = vld [vmem:[%s6814_s11 + $0x30] sm:$0xff] }
 0xb85   :  { %4764 = vmatpush3.bf16.msra.mxu1 %v4763_v1  ;;  %v3864_v1 = vld [vmem:[%s6812_s9 + $0x160] sm:$0xff] }
 0xb86   :  { %3824 = vmatmul.mubr.msk.f32.vlgmr.msra.gmra.mrb[26].mxu0 %vm1123_vm15, %v2875_v53  ;;  %4765 = vmatprep.subr.bf16.mxu1 %v4972_v24  ;;  %v3850_v53 = vld [vmem:[%s6812_s9 + $0xf8] sm:$0xff]  ;;  %v4805_v4 = vpack.c.bf16 %v3865_v3, %v3864_v1 }
 0xb87   :  { %4710 = vmatpush1.bf16.msra.mxu0 %v4709_v28  ;;  %v3838_v28 = vld [vmem:[%s6812_s9 + $0xa0] sm:$0xff]  ;;  %v4784_v29 = vpack.c.bf16 %v3850_v53, %v3849_v26  ;;  %v3479_v53 = vld [vmem:[%s6814_s11 + $0x48] sm:$0xff] }
 0xb88   :  { %4711 = vmatprep.subr.bf16.mxu0 %v4972_v24  ;;  %v3478_v26 = vld [vmem:[%s6814_s11 + $0x40] sm:$0xff] }
 0xb89   :  { %4767 = vmatpush3.bf16.msra.mxu1 %v4766_v5  ;;  %v3866_v5 = vld [vmem:[%s6812_s9 + $0x170] sm:$0xff] }
 0xb8a   :  { %4783 = vmatprep.subr.bf16.mxu1 %v4972_v24 }
 0xb8b   :  { %4713 = vmatpush1.bf16.msra.mxu0 %v4712_v54  ;;  %v3851_v54 = vld [vmem:[%s6812_s9 + $0x100] sm:$0xff] }
 0xb8c   :  { %4714 = vmatprep.subr.bf16.mxu0 %v4972_v24  ;;  %v4787_v39 = vpack.c.bf16 %v3852_v31, %v3851_v54 }
 0xb8f   :  { %4716 = vmatpush1.bf16.msra.mxu0 %v4715_v33  ;;  %v4769_v33 = vpack.c.bf16 %v3839_v59, %v3838_v28  ;;  %v4826_v28 = vpack.c.bf16 %v3479_v53, %v3478_v26 }
 0xb90   :  { %4717 = vmatprep.subr.bf16.mxu0 %v4972_v24 }
 0xb93   :  { %4719 = vmatpush1.bf16.msra.mxu0 %v4718_v37  ;;  %v3840_v37 = vld [vmem:[%s6812_s9 + $0xb0] sm:$0xff] }
 0xb94   :  { %4720 = vmatprep.subr.bf16.mxu0 %v4972_v24  ;;  %v4772_v42 = vpack.c.bf16 %v3841_v38, %v3840_v37 }
 0xb97   :  { %4722 = vmatpush1.bf16.msra.mxu0 %v4721_v40  ;;  %v3853_v40 = vld [vmem:[%s6812_s9 + $0x110] sm:$0xff] }
 0xb98   :  { %4723 = vmatprep.subr.bf16.mxu0 %v4972_v24  ;;  %v4790_v45 = vpack.c.bf16 %v3854_v41, %v3853_v40  ;;  %v3467_v40 = vld [vmem:[%s6813_s10] sm:$0x1] }
 0xb9b   :  { %4725 = vmatpush1.bf16.msra.mxu0 %v4724_v43  ;;  %v3842_v43 = vld [vmem:[%s6812_s9 + $0xc0] sm:$0xff] }
 0xb9c   :  { %4726 = vmatprep.subr.bf16.mxu0 %v4972_v24  ;;  %v4775_v49 = vpack.c.bf16 %v3843_v44, %v3842_v43 }
 0xb9f   :  { %4728 = vmatpush1.bf16.msra.mxu0 %v4727_v46  ;;  %v3855_v46 = vld [vmem:[%s6812_s9 + $0x120] sm:$0xff] }
 0xba0   :  { %4729 = vmatprep.subr.bf16.mxu0 %v4972_v24  ;;  %v4793_v50 = vpack.c.bf16 %v3856_v48, %v3855_v46 }
 0xba3   :  { %4731 = vmatpush1.bf16.msra.mxu0 %v4730_v36  ;;  %v3844_v36 = vld [vmem:[%s6812_s9 + $0xd0] sm:$0xff] }
 0xba4   :  { %4732 = vmatprep.subr.bf16.mxu0 %v4972_v24  ;;  %v4778_v47 = vpack.c.bf16 %v3845_v10, %v3844_v36 }
 0xba7   :  { %4734 = vmatpush1.bf16.msra.mxu0 %v4733_v51  ;;  %v3857_v51 = vld [vmem:[%s6812_s9 + $0x130] sm:$0xff] }
 0xba8   :  { %4735 = vmatprep.subr.bf16.mxu0 %v4972_v24  ;;  %v4796_v30 = vpack.c.bf16 %v3858_v52, %v3857_v51 }
 0xbab   :  { %4737 = vmatpush1.bf16.msra.mxu0 %v4736_v27  ;;  %v3846_v27 = vld [vmem:[%s6812_s9 + $0xe0] sm:$0xff] }
 0xbac   :  { %4738 = vmatprep.subr.bf16.mxu0 %v4972_v24  ;;  %v4781_v16 = vpack.c.bf16 %v3847_v55, %v3846_v27 }
 0xc59   :  { %v2951_v9 = vpop.f32.mrb[26].mxu0 }
 0xc5a   :  { %v2953_v12 = vpop.f32.mrb[27].mxu0 }
 0xc5b   :  { %3825 = vmatprep.mubr.msk.f32.mxu0 %vm1225_vm0, %v2953_v12 }
 0xc5c   :  { %3044 = vmatmul.mubr.f32.vlgmr.msra.gmra.mrb[28].mxu0 %v2951_v9  ;;  %v3869_v9 = vld [vmem:[%s6812_s9 + $0x188] sm:$0xff] }
 0xc5d   :  { %4740 = vmatpush3.bf16.msra.mxu0 %v4739_v11  ;;  %4162 = vmatprep.mubr.msk.f32.mxu0 %vm4974_vm1, %v4969_v7  ;;  %v4811_v11 = vpack.c.bf16 %v3869_v9, %v3868_v8 }
 0xc5e   :  { %4741 = vmatprep.subr.bf16.mxu0 %v4972_v24 }
 0xc61   :  { %4743 = vmatpush3.bf16.msra.mxu0 %v4742_v15  ;;  %v3472_v15 = vld [vmem:[%s6814_s11 + $0x10] sm:$0xff]  ;;  %s4975_s11 = smov [#allocation2]  }
 0xc62   :  { %4744 = vmatprep.subr.bf16.mxu0 %v4972_v24  ;;  %s3561_s22 = sshll.u32 %s4975_s11, 4  ;;  %s3562_s22 = int_to_ptr.vmem [resolvable:$true] %s3561_s22 }
 0xc63   :  { %s4945_s24 = scalar_lea.vmem %s3562_s22, 32  ;;  %p4950_p1 = scmp.lt.s32.totalorder %s3562_s22, %s3562_s22 }
 0xc64   :  { %p4946_p0 = scmp.ne.s32.totalorder %s3562_s22, %s4945_s24  ;;  %p4951_p2 = scmp.lt.s32.totalorder %s4945_s24, %s4945_s24 }
 0xc65   :  { %4746 = vmatpush3.bf16.msra.mxu0 %v4745_v19  ;;  %v4817_v19 = vpack.c.bf16 %v3473_v18, %v3472_v15 }
 0xc66   :  { %4747 = vmatprep.subr.bf16.mxu0 %v4972_v24  ;;  %p4952_p3 = por %p4951_p2, %p4950_p1 }
 0xc68   :  { %p4953_p4 = pnand %p4952_p3, %p4946_p0 }
 0xc69   :  { %4749 = vmatpush3.bf16.msra.mxu0 %v4748_v22  ;;  %v4820_v22 = vpack.c.bf16 %v3475_v2, %v3474_v20 }
 0xc6a   :  { %4750 = vmatprep.subr.bf16.mxu0 %v4972_v24 }
 0xc6d   :  { %4752 = vmatpush3.bf16.msra.mxu0 %v4751_v21  ;;  %v4823_v21 = vpack.c.bf16 %v3477_v25, %v3476_v23 }
 0xc6e   :  { %4768 = vmatprep.subr.bf16.mxu0 %v4972_v24 }
 0xd2f   :  { %v6643_v32 = vpop.f32.mrb[28].mxu0 }
 0xd30   :  { %v3070_v34 = vrot.slane %v6643_v32, 1  ;;  %4186 = vmatmul.mubr.msk.f32.vlgmr.msra.gmra.mrb[30].mxu1 %vm1322_vm7, %v6643_v32  ;;  %v3047_v35 = vpop.f32.mrb[29].mxu0  ;;  %v3309_v61 = vrot.slane %v6643_v32, 3  ;;  %v3225_v58 = vrot.slane %v6643_v32, 2  ;;  %v3393_v12 = vrot.slane %v6643_v32, 4 }
 0xd31   :  { %4785 = vmatpush3.bf16.msra.mxu1 %v4784_v29  ;;  %4231 = vmatprep.mubr.msk.f32.mxu1 %vm4974_vm1, %v4969_v7 }
 0xd32   :  { %4163 = vmatmul.mubr.msk.f32.vlgmr.msra.gmra.mrb[30].mxu0 %vm1322_vm7, %v3070_v34  ;;  %4786 = vmatprep.subr.bf16.mxu1 %v4972_v24 }
 0xd33   :  { %4770 = vmatpush3.bf16.msra.mxu0 %v4769_v33  ;;  %4208 = vmatprep.mubr.msk.f32.mxu0 %vm4974_vm1, %v4969_v7 }
 0xd34   :  { %4771 = vmatprep.subr.bf16.mxu0 %v4972_v24 }
 0xd35   :  { %4788 = vmatpush3.bf16.msra.mxu1 %v4787_v39 }
 0xd36   :  { %4789 = vmatprep.subr.bf16.mxu1 %v4972_v24 }
 0xd37   :  { %4773 = vmatpush3.bf16.msra.mxu0 %v4772_v42 }
 0xd38   :  { %4774 = vmatprep.subr.bf16.mxu0 %v4972_v24 }
 0xd39   :  { %4791 = vmatpush3.bf16.msra.mxu1 %v4790_v45  ;;  %v3480_v45 = vld [vmem:[%s6815_s12] sm:$0x1] }
 0xd3a   :  { %4792 = vmatprep.subr.bf16.mxu1 %v4972_v24 }
 0xd3b   :  { %4776 = vmatpush3.bf16.msra.mxu0 %v4775_v49 }
 0xd3c   :  { %4777 = vmatprep.subr.bf16.mxu0 %v4972_v24 }
 0xd3d   :  { %4794 = vmatpush3.bf16.msra.mxu1 %v4793_v50 }
 0xd3e   :  { %4795 = vmatprep.subr.bf16.mxu1 %v4972_v24 }
 0xd3f   :  { %4779 = vmatpush3.bf16.msra.mxu0 %v4778_v47 }
 0xd40   :  { %4780 = vmatprep.subr.bf16.mxu0 %v4972_v24 }
 0xd41   :  { %4797 = vmatpush3.bf16.msra.mxu1 %v4796_v30 }
 0xd42   :  { %4813 = vmatprep.subr.bf16.mxu1 %v4972_v24 }
 0xd43   :  { %4782 = vmatpush3.bf16.msra.mxu0 %v4781_v16 }
 0xd44   :  { %4232 = vmatmul.mubr.msk.f32.vlgmr.msra.gmra.mrb[32].mxu1 %vm1322_vm7, %v3309_v61  ;;  %4798 = vmatprep.subr.bf16.mxu0 %v4972_v24 }
 0xd45   :  { %4277 = vmatprep.mubr.msk.f32.mxu1 %vm4974_vm1, %v4969_v7  ;;  %4815 = vmatpush3.bf16.msra.mxu1 %v4814_v17 }
 0xd46   :  { %4209 = vmatmul.mubr.msk.f32.vlgmr.msra.gmra.mrb[32].mxu0 %vm1322_vm7, %v3225_v58  ;;  %4816 = vmatprep.subr.bf16.mxu1 %v4972_v24 }
 0xd47   :  { %4800 = vmatpush3.bf16.msra.mxu0 %v4799_v62  ;;  %4254 = vmatprep.mubr.msk.f32.mxu0 %vm4974_vm1, %v4969_v7  ;;  %v3867_v7 = vld [vmem:[%s6812_s9 + $0x178] sm:$0xff] }
 0xd48   :  { %4801 = vmatprep.subr.bf16.mxu0 %v4972_v24  ;;  %v4808_v6 = vpack.c.bf16 %v3867_v7, %v3866_v5 }
 0xd49   :  { %4818 = vmatpush3.bf16.msra.mxu1 %v4817_v19 }
 0xd4a   :  { %4819 = vmatprep.subr.bf16.mxu1 %v4972_v24 }
 0xd4b   :  { %4803 = vmatpush3.bf16.msra.mxu0 %v4802_v0 }
 0xd4c   :  { %4804 = vmatprep.subr.bf16.mxu0 %v4972_v24 }
 0xd4d   :  { %4821 = vmatpush3.bf16.msra.mxu1 %v4820_v22 }
 0xd4e   :  { %4822 = vmatprep.subr.bf16.mxu1 %v4972_v24 }
 0xd4f   :  { %4806 = vmatpush3.bf16.msra.mxu0 %v4805_v4 }
 0xd50   :  { %4807 = vmatprep.subr.bf16.mxu0 %v4972_v24 }
 0xd51   :  { %4824 = vmatpush3.bf16.msra.mxu1 %v4823_v21 }
 0xd52   :  { %4825 = vmatprep.subr.bf16.mxu1 %v4972_v24 }
 0xd53   :  { %4809 = vmatpush3.bf16.msra.mxu0 %v4808_v6 }
 0xd54   :  { %4810 = vmatprep.subr.bf16.mxu0 %v4972_v24 }
 0xd55   :  { %4827 = vmatpush3.bf16.msra.mxu1 %v4826_v28 }
 0xd57   :  { %4812 = vmatpush3.bf16.msra.mxu0 %v4811_v11 }
 0xd5a   :  { %4255 = vmatmul.mubr.msk.f32.vlgmr.msra.gmra.mrb[34].mxu0 %vm1322_vm7, %v3393_v12 }
 0xe03   :  { %v3211_v59 = vpop.f32.mrb[30].mxu1 }
 0xe04   :  { %v4187_v29 = vpop.f32.mrb[31].mxu1 }
 0xe05   :  { %v3139_v54 = vpop.f32.mrb[30].mxu0 }
 0xe06   :  { %v3212_v31 = vadd.f32 %v3211_v59, %v3139_v54  ;;  %v4164_v32 = vpop.f32.mrb[31].mxu0 }
 0xe17   :  { %v3378_v33 = vpop.f32.mrb[32].mxu1 }
 0xe18   :  { %v4233_v34 = vpop.f32.mrb[33].mxu1 }
 0xe19   :  { %v3294_v35 = vpop.f32.mrb[32].mxu0 }
 0xe1a   :  { %v3298_v37 = vadd.f32 %v3294_v35, %v3212_v31  ;;  %v4210_v24 = vpop.f32.mrb[33].mxu0 }
 0xe1c   :  { %v3382_v38 = vadd.f32 %v3378_v33, %v3298_v37 }
 0xe2d   :  { %v3462_v39 = vpop.f32.mrb[34].mxu0 }
 0xe2e   :  { %v3466_v41 = vadd.f32 %v3462_v39, %v3382_v38  ;;  %v4256_v42 = vpop.f32.mrb[35].mxu0 }
 0xe30   :  { %v3468_v43 = vadd.f32 %v3467_v40, %v3466_v41 }
 0xe32   :  { %v3469_v44 = vmax.f32 %v3468_v43, 0.0 }
 0xe34   :  { %4278 = vmatmul.mubr.msk.f32.vlgmr.msra.gmra.mrb[34].mxu1 %vm1322_vm7, %v3469_v44 }
 0xf07   :  { %v3550_v46 = vpop.f32.mrb[34].mxu1 }
 0xf08   :  { %v3551_v48 = vadd.f32 %v3550_v46, %v3480_v45  ;;  %v4279_v49 = vpop.f32.mrb[35].mxu1 }
 0xf0a   :  { %3555 = vst.msk [vmem:[#allocation2 + $0x1] sm:$0x1] %vm1809_vm2, %v3551_v48 }
 0xf0b   :  { %4956 = shalt.err (!%p4953_p4)
}
 0xf0c   :  { %s4957_s25 = scalar_lea.hbm %s6816_s13, 32 }
 0xf0d   :  { %p4958_p5 = scmp.ne.s32.totalorder %s6816_s13, %s4957_s25  ;;  %p4961_p6 = scmp.lt.u32.totalorder %s4957_s25, %s6816_s13 }
 0xf0f   :  { %p4963_p7 = pnand %p4961_p6, %p4958_p5 }
 0xf11   :  { %4966 = shalt.err (!%p4963_p7)
}
 0xf12   :  { %s4976_s27 = smov 16   ;;  %s4977_s2 = smov 1  }
 0xf13   :  { %3567 = dma.vmem_to_hbm [thread:$0]  %s3562_s22, 32, %s6816_s13, [#allocation3], %s4976_s27, %s4976_s27, %s4977_s2  }
 0xf14   :  { %4967 = dma.done.wait [#allocation3], 32  }
 0xf15   :  { %4968 = vsyncadd [#allocation3], 4294967264 }
 0xf16   :  { %3571 = vsyncpa [#allocation3], 1 }

</bundles_post_ra>
